<compile_context>
chip_gen: v5e
topology: v5e:2x2
jax: 0.10.0
libtpu: 0.0.40
codegen_flags: <defaults>
</compile_context>

<pallas_src>
import functools

import jax
import jax.numpy as jnp
from jax.experimental import pallas as pl
from jax.experimental.pallas import tpu as pltpu


def _upsample_conv_kernel(x_ref, halo_ref, w_ref, b_ref, o_ref):
    """One (batch, row-tile) per grid step.

    x_ref   : (1, tho, W+2, Cin)    bf16  main padded rows of this tile
    halo_ref: (1, 2, W+2, Cin)      bf16  the 2 padded rows just below the tile
    w_ref   : (16, Cin, Cout)       bf16  [4*phase + 2*dy + dx] effective 2x2 taps
    b_ref   : (1, Cout)             f32
    o_ref   : (1, 4*tho*W, Cout)    f32   phase-major, spatially flattened
    """
    tho = x_ref.shape[1]
    wp = x_ref.shape[2]
    cin = x_ref.shape[3]
    cout = o_ref.shape[2]
    w_out = wp - 2

    # (tho+2, W+2, Cin) working rows for this tile (concat along the major axis).
    rows = jnp.concatenate([x_ref[0], halo_ref[0]], axis=0)
    bias = b_ref[...]                                   # (1, Cout)

    # Hoist the three column shifts (sublane-axis slices) out of the tap loop and
    # flatten pixels->rows once per shift; the per-tap row windows below are then
    # cheap major-axis views (aligned when W is a multiple of 8).
    flats = [
        rows[:, j:j + w_out, :].reshape((tho + 2) * w_out, cin)
        for j in range(3)
    ]

    for pa in range(2):            # output row phase (a)
        for pb in range(2):        # output col phase (b)
            p = 2 * pa + pb
            acc = jnp.zeros((tho * w_out, cout), dtype=jnp.float32)
            for dy in range(2):
                for dx in range(2):
                    r0 = (pa + dy) * w_out
                    patch = flats[pb + dx][r0:r0 + tho * w_out]   # (tho*W, Cin)
                    acc = acc + jnp.dot(
                        patch, w_ref[4 * p + 2 * dy + dx],
                        preferred_element_type=jnp.float32)
            o_ref[0, p * tho * w_out:(p + 1) * tho * w_out] = (
                acc + bias).astype(o_ref.dtype)


def _choose_row_tile(h, w, cin, cout, target_bytes=2 * 1024 * 1024):
    """Largest divisor of H whose per-step VMEM working set stays small (v7x-safe)."""
    per_row = (
        4 * (w + 2) * cin      # double-buffered bf16 input block
        + 6 * w * cin          # 3 column-shifted bf16 slabs in the kernel
        + 32 * w * cout        # double-buffered f32 output block (4 phases)
        + 4 * w * cout         # one live f32 accumulator
    )
    tho = int(max(1, min(h, target_bytes // max(per_row, 1))))
    while h % tho:
        tho -= 1
    return tho


@functools.partial(jax.jit, static_argnames=("use_conv",))
def upsample_forward(x_nchw, weight_oihw=None, bias=None, use_conv=True):
    """Equivalent of Upsample.forward for dims=2.

    x_nchw      : (N, C, H, W)  float32  (PyTorch layout)
    weight_oihw : (Cout, Cin, 3, 3)
    bias        : (Cout,)
    returns     : (N, Cout, 2H, 2W)  (NCHW, like PyTorch)
    """
    n, c, h, w = x_nchw.shape

    if not use_conv:
        # Pure nearest-neighbour 2x upsample.
        return jnp.repeat(jnp.repeat(x_nchw, 2, axis=2), 2, axis=3)

    cout = weight_oihw.shape[0]

    # ---- cheap original-resolution prep (no 2x intermediate is ever built) ----
    x = jnp.transpose(x_nchw, (0, 2, 3, 1)).astype(jnp.bfloat16)   # (N, H, W, C)
    xpad = jnp.pad(x, ((0, 0), (1, 1), (1, 1), (0, 0)))            # (N, H+2, W+2, C)

    tho = _choose_row_tile(h, w, c, cout)
    n_tiles = h // tho

    # Halo: the 2 padded rows just below each tile's main block.
    row_idx = (jnp.arange(n_tiles) * tho + tho)[:, None] + jnp.arange(2)[None, :]
    halo = xpad[:, row_idx]                                        # (N, T, 2, W+2, C)
    halo = halo.reshape(n * n_tiles, 2, w + 2, c)

    # Effective per-phase 2x2 weights from the 3x3 kernel (computed in f32, cast bf16).
    w_hw = jnp.transpose(weight_oihw, (2, 3, 1, 0)).astype(jnp.float32)  # (3,3,Cin,Cout)
    sel = jnp.array([[[1., 0., 0.], [0., 1., 1.]],
                     [[1., 1., 0.], [0., 0., 1.]]], dtype=jnp.float32)   # (phase, d, k)
    w_eff = jnp.einsum("ady,bex,yxio->abdeio", sel, sel, w_hw)
    w_eff = w_eff.reshape(16, c, cout).astype(jnp.bfloat16)
    b_k = bias.reshape(1, cout).astype(jnp.float32)

    flops = 2 * n * h * w * 16 * c * cout
    bytes_accessed = (xpad.size * 2 + halo.size * 2 + w_eff.size * 2
                      + b_k.size * 4 + n * 4 * h * w * cout * 4)

    out = pl.pallas_call(
        _upsample_conv_kernel,
        out_shape=jax.ShapeDtypeStruct((n * n_tiles, 4 * tho * w, cout), jnp.float32),
        grid_spec=pltpu.PrefetchScalarGridSpec(
            num_scalar_prefetch=0,
            grid=(n, n_tiles),
            in_specs=[
                pl.BlockSpec((1, tho, w + 2, c), lambda b, t: (b, t, 0, 0)),
                pl.BlockSpec((1, 2, w + 2, c),
                             lambda b, t: (b * n_tiles + t, 0, 0, 0)),
                pl.BlockSpec((16, c, cout), lambda b, t: (0, 0, 0)),
                pl.BlockSpec((1, cout), lambda b, t: (0, 0)),
            ],
            out_specs=pl.BlockSpec((1, 4 * tho * w, cout),
                                   lambda b, t: (b * n_tiles + t, 0, 0)),
        ),
        compiler_params=pltpu.CompilerParams(
            dimension_semantics=("parallel", "parallel"),
            vmem_limit_bytes=32 * 1024 * 1024),
        cost_estimate=pl.CostEstimate(flops=flops, transcendentals=0,
                                      bytes_accessed=bytes_accessed),
    )(xpad, halo, w_eff, b_k)

    # (N*T, 4*tho*W, Cout) -> (N, Cout, 2H, 2W): one fused transpose in the wrapper.
    out = out.reshape(n, n_tiles, 2, 2, tho, w, cout)   # (n, t, a, b, i, j, c)
    out = jnp.transpose(out, (0, 6, 1, 4, 2, 5, 3))     # (n, c, t, i, a, j, b)
    return out.reshape(n, cout, 2 * h, 2 * w)


def _reference(x_nchw, weight_oihw, bias):
    """Pure-JAX f32 reference: nearest 2x upsample + 3x3 conv (padding=1), NCHW."""
    x_up = jnp.repeat(jnp.repeat(x_nchw, 2, axis=2), 2, axis=3)
    y = jax.lax.conv_general_dilated(
        x_up, weight_oihw, window_strides=(1, 1), padding=((1, 1), (1, 1)),
        dimension_numbers=("NCHW", "OIHW", "NCHW"))
    return y + bias[None, :, None, None]


if __name__ == "__main__":
    # Module config: channels=4, use_conv=True, dims=2, out_channels=4, padding=1
    channels = 4
    out_channels = 4
    batch, h, w = 2, 16, 16

    key = jax.random.PRNGKey(0)
    kx, kw, kb = jax.random.split(key, 3)
    x = jax.random.normal(kx, (batch, channels, h, w), dtype=jnp.float32)
    weight = 0.1 * jax.random.normal(kw, (out_channels, channels, 3, 3),
                                     dtype=jnp.float32)
    bias = 0.1 * jax.random.normal(kb, (out_channels,), dtype=jnp.float32)

    y = upsample_forward(x, weight, bias, use_conv=True)
    y = jax.block_until_ready(y)

    y_ref = _reference(x, weight, bias)
    assert y.shape == (batch, out_channels, 2 * h, 2 * w), y.shape
    max_err = float(jnp.max(jnp.abs(y - y_ref)))
    # bf16 operands with f32 accumulation -> loosened tolerance vs f32 reference.
    assert jnp.allclose(y, y_ref, atol=3e-2, rtol=3e-2), max_err

    # use_conv=False path (pure nearest upsample).
    y_nc = jax.block_until_ready(upsample_forward(x, None, None, use_conv=False))
    assert y_nc.shape == (batch, channels, 2 * h, 2 * w)
    assert jnp.allclose(y_nc, jnp.repeat(jnp.repeat(x, 2, axis=2), 2, axis=3))

    print("KERNEL_OK")
</pallas_src>

<mosaic_0001>
module attributes {stable_mosaic.version = 11 : i64} {
  func.func @_upsample_conv_kernel(%arg0: i32, %arg1: i32, %arg2: memref<1x16x18x4xbf16, #tpu.memory_space<vmem>>, %arg3: memref<1x2x18x4xbf16, #tpu.memory_space<vmem>>, %arg4: memref<16x4x4xbf16, #tpu.memory_space<vmem>>, %arg5: memref<1x4xf32, #tpu.memory_space<vmem>>, %arg6: memref<1x1024x4xf32, #tpu.memory_space<vmem>>) attributes {dimension_semantics = [#tpu.dimension_semantics<parallel>, #tpu.dimension_semantics<parallel>], iteration_bounds = array<i64: 2, 1>, scalar_prefetch = 0 : i64, scratch_operands = 0 : i64, tpu.core_type = #tpu.core_type<tc>, window_params = [{transform_indices = @transform_0, window_bounds = array<i64: 1, 16, 18, 4>}, {transform_indices = @transform_1, window_bounds = array<i64: 1, 2, 18, 4>}, {pipeline_mode = #tpu.pipeline_mode<synchronous>, transform_indices = @transform_2, window_bounds = array<i64: 16, 4, 4>}, {pipeline_mode = #tpu.pipeline_mode<synchronous>, transform_indices = @transform_3, window_bounds = array<i64: 1, 4>}, {transform_indices = @transform_4, window_bounds = array<i64: 1, 1024, 4>}]} {
    %c0 = arith.constant 0 : index
    %c0_0 = arith.constant 0 : index
    %c0_1 = arith.constant 0 : index
    %c0_2 = arith.constant 0 : index
    %0 = vector.load %arg2[%c0, %c0_0, %c0_1, %c0_2] : memref<1x16x18x4xbf16, #tpu.memory_space<vmem>>, vector<1x16x18x4xbf16>
    %1 = vector.shape_cast %0 : vector<1x16x18x4xbf16> to vector<16x18x4xbf16>
    %c0_3 = arith.constant 0 : index
    %c0_4 = arith.constant 0 : index
    %c0_5 = arith.constant 0 : index
    %c0_6 = arith.constant 0 : index
    %2 = vector.load %arg3[%c0_3, %c0_4, %c0_5, %c0_6] : memref<1x2x18x4xbf16, #tpu.memory_space<vmem>>, vector<1x2x18x4xbf16>
    %3 = vector.shape_cast %2 : vector<1x2x18x4xbf16> to vector<2x18x4xbf16>
    %4 = tpu.concatenate %1, %3 in 0 : vector<16x18x4xbf16>, vector<2x18x4xbf16> -> vector<18x18x4xbf16>
    %c0_7 = arith.constant 0 : index
    %c0_8 = arith.constant 0 : index
    %5 = vector.load %arg5[%c0_7, %c0_8] : memref<1x4xf32, #tpu.memory_space<vmem>>, vector<1x4xf32>
    %6 = vector.extract_strided_slice %4 {offsets = [0, 0, 0], sizes = [18, 16, 4], strides = [1, 1, 1]} : vector<18x18x4xbf16> to vector<18x16x4xbf16>
    %7 = vector.shape_cast %6 : vector<18x16x4xbf16> to vector<288x4xbf16>
    %8 = vector.extract_strided_slice %4 {offsets = [0, 1, 0], sizes = [18, 16, 4], strides = [1, 1, 1]} : vector<18x18x4xbf16> to vector<18x16x4xbf16>
    %9 = vector.shape_cast %8 : vector<18x16x4xbf16> to vector<288x4xbf16>
    %10 = vector.extract_strided_slice %4 {offsets = [0, 2, 0], sizes = [18, 16, 4], strides = [1, 1, 1]} : vector<18x18x4xbf16> to vector<18x16x4xbf16>
    %11 = vector.shape_cast %10 : vector<18x16x4xbf16> to vector<288x4xbf16>
    %cst = arith.constant 0.000000e+00 : f32
    %12 = vector.broadcast %cst : f32 to vector<256x4xf32>
    %13 = vector.extract_strided_slice %7 {offsets = [0, 0], sizes = [256, 4], strides = [1, 1]} : vector<288x4xbf16> to vector<256x4xbf16>
    %c0_9 = arith.constant 0 : index
    %c0_10 = arith.constant 0 : index
    %c0_11 = arith.constant 0 : index
    %14 = vector.load %arg4[%c0_9, %c0_10, %c0_11] : memref<16x4x4xbf16, #tpu.memory_space<vmem>>, vector<1x4x4xbf16>
    %15 = vector.shape_cast %14 : vector<1x4x4xbf16> to vector<4x4xbf16>
    %cst_12 = arith.constant dense<0.000000e+00> : vector<256x4xf32>
    %16 = tpu.matmul %13, %15, %cst_12 {dimension_numbers = #tpu.dot_dimension_numbers<[1], [0], [0], [1], [0, 0, 1, 1], [], []>} : vector<256x4xbf16>, vector<4x4xbf16>, vector<256x4xf32> -> vector<256x4xf32>
    %17 = arith.addf %12, %16 : vector<256x4xf32>
    %18 = vector.extract_strided_slice %9 {offsets = [0, 0], sizes = [256, 4], strides = [1, 1]} : vector<288x4xbf16> to vector<256x4xbf16>
    %c1 = arith.constant 1 : index
    %c0_13 = arith.constant 0 : index
    %c0_14 = arith.constant 0 : index
    %19 = vector.load %arg4[%c1, %c0_13, %c0_14] : memref<16x4x4xbf16, #tpu.memory_space<vmem>>, vector<1x4x4xbf16>
    %20 = vector.shape_cast %19 : vector<1x4x4xbf16> to vector<4x4xbf16>
    %cst_15 = arith.constant dense<0.000000e+00> : vector<256x4xf32>
    %21 = tpu.matmul %18, %20, %cst_15 {dimension_numbers = #tpu.dot_dimension_numbers<[1], [0], [0], [1], [0, 0, 1, 1], [], []>} : vector<256x4xbf16>, vector<4x4xbf16>, vector<256x4xf32> -> vector<256x4xf32>
    %22 = arith.addf %17, %21 : vector<256x4xf32>
    %23 = vector.extract_strided_slice %7 {offsets = [16, 0], sizes = [256, 4], strides = [1, 1]} : vector<288x4xbf16> to vector<256x4xbf16>
    %c2 = arith.constant 2 : index
    %c0_16 = arith.constant 0 : index
    %c0_17 = arith.constant 0 : index
    %24 = vector.load %arg4[%c2, %c0_16, %c0_17] : memref<16x4x4xbf16, #tpu.memory_space<vmem>>, vector<1x4x4xbf16>
    %25 = vector.shape_cast %24 : vector<1x4x4xbf16> to vector<4x4xbf16>
    %cst_18 = arith.constant dense<0.000000e+00> : vector<256x4xf32>
    %26 = tpu.matmul %23, %25, %cst_18 {dimension_numbers = #tpu.dot_dimension_numbers<[1], [0], [0], [1], [0, 0, 1, 1], [], []>} : vector<256x4xbf16>, vector<4x4xbf16>, vector<256x4xf32> -> vector<256x4xf32>
    %27 = arith.addf %22, %26 : vector<256x4xf32>
    %28 = vector.extract_strided_slice %9 {offsets = [16, 0], sizes = [256, 4], strides = [1, 1]} : vector<288x4xbf16> to vector<256x4xbf16>
    %c3 = arith.constant 3 : index
    %c0_19 = arith.constant 0 : index
    %c0_20 = arith.constant 0 : index
    %29 = vector.load %arg4[%c3, %c0_19, %c0_20] : memref<16x4x4xbf16, #tpu.memory_space<vmem>>, vector<1x4x4xbf16>
    %30 = vector.shape_cast %29 : vector<1x4x4xbf16> to vector<4x4xbf16>
    %cst_21 = arith.constant dense<0.000000e+00> : vector<256x4xf32>
    %31 = tpu.matmul %28, %30, %cst_21 {dimension_numbers = #tpu.dot_dimension_numbers<[1], [0], [0], [1], [0, 0, 1, 1], [], []>} : vector<256x4xbf16>, vector<4x4xbf16>, vector<256x4xf32> -> vector<256x4xf32>
    %32 = arith.addf %27, %31 : vector<256x4xf32>
    %33 = vector.broadcast %5 : vector<1x4xf32> to vector<256x4xf32>
    %34 = arith.addf %32, %33 : vector<256x4xf32>
    %c0_22 = arith.constant 0 : index
    %c0_23 = arith.constant 0 : index
    %c0_24 = arith.constant 0 : index
    %35 = vector.load %arg6[%c0_22, %c0_23, %c0_24] : memref<1x1024x4xf32, #tpu.memory_space<vmem>>, vector<1x256x4xf32>
    %36 = vector.shape_cast %35 : vector<1x256x4xf32> to vector<256x4xf32>
    %37 = vector.shape_cast %34 : vector<256x4xf32> to vector<1x256x4xf32>
    tpu.vector_store %arg6[%c0_22, %c0_23, %c0_24], %37 {strides = array<i32>} : memref<1x1024x4xf32, #tpu.memory_space<vmem>>, vector<1x256x4xf32>,
    %cst_25 = arith.constant 0.000000e+00 : f32
    %38 = vector.broadcast %cst_25 : f32 to vector<256x4xf32>
    %39 = vector.extract_strided_slice %9 {offsets = [0, 0], sizes = [256, 4], strides = [1, 1]} : vector<288x4xbf16> to vector<256x4xbf16>
    %c4 = arith.constant 4 : index
    %c0_26 = arith.constant 0 : index
    %c0_27 = arith.constant 0 : index
    %40 = vector.load %arg4[%c4, %c0_26, %c0_27] : memref<16x4x4xbf16, #tpu.memory_space<vmem>>, vector<1x4x4xbf16>
    %41 = vector.shape_cast %40 : vector<1x4x4xbf16> to vector<4x4xbf16>
    %cst_28 = arith.constant dense<0.000000e+00> : vector<256x4xf32>
    %42 = tpu.matmul %39, %41, %cst_28 {dimension_numbers = #tpu.dot_dimension_numbers<[1], [0], [0], [1], [0, 0, 1, 1], [], []>} : vector<256x4xbf16>, vector<4x4xbf16>, vector<256x4xf32> -> vector<256x4xf32>
    %43 = arith.addf %38, %42 : vector<256x4xf32>
    %44 = vector.extract_strided_slice %11 {offsets = [0, 0], sizes = [256, 4], strides = [1, 1]} : vector<288x4xbf16> to vector<256x4xbf16>
    %c5 = arith.constant 5 : index
    %c0_29 = arith.constant 0 : index
    %c0_30 = arith.constant 0 : index
    %45 = vector.load %arg4[%c5, %c0_29, %c0_30] : memref<16x4x4xbf16, #tpu.memory_space<vmem>>, vector<1x4x4xbf16>
    %46 = vector.shape_cast %45 : vector<1x4x4xbf16> to vector<4x4xbf16>
    %cst_31 = arith.constant dense<0.000000e+00> : vector<256x4xf32>
    %47 = tpu.matmul %44, %46, %cst_31 {dimension_numbers = #tpu.dot_dimension_numbers<[1], [0], [0], [1], [0, 0, 1, 1], [], []>} : vector<256x4xbf16>, vector<4x4xbf16>, vector<256x4xf32> -> vector<256x4xf32>
    %48 = arith.addf %43, %47 : vector<256x4xf32>
    %49 = vector.extract_strided_slice %9 {offsets = [16, 0], sizes = [256, 4], strides = [1, 1]} : vector<288x4xbf16> to vector<256x4xbf16>
    %c6 = arith.constant 6 : index
    %c0_32 = arith.constant 0 : index
    %c0_33 = arith.constant 0 : index
    %50 = vector.load %arg4[%c6, %c0_32, %c0_33] : memref<16x4x4xbf16, #tpu.memory_space<vmem>>, vector<1x4x4xbf16>
    %51 = vector.shape_cast %50 : vector<1x4x4xbf16> to vector<4x4xbf16>
    %cst_34 = arith.constant dense<0.000000e+00> : vector<256x4xf32>
    %52 = tpu.matmul %49, %51, %cst_34 {dimension_numbers = #tpu.dot_dimension_numbers<[1], [0], [0], [1], [0, 0, 1, 1], [], []>} : vector<256x4xbf16>, vector<4x4xbf16>, vector<256x4xf32> -> vector<256x4xf32>
    %53 = arith.addf %48, %52 : vector<256x4xf32>
    %54 = vector.extract_strided_slice %11 {offsets = [16, 0], sizes = [256, 4], strides = [1, 1]} : vector<288x4xbf16> to vector<256x4xbf16>
    %c7 = arith.constant 7 : index
    %c0_35 = arith.constant 0 : index
    %c0_36 = arith.constant 0 : index
    %55 = vector.load %arg4[%c7, %c0_35, %c0_36] : memref<16x4x4xbf16, #tpu.memory_space<vmem>>, vector<1x4x4xbf16>
    %56 = vector.shape_cast %55 : vector<1x4x4xbf16> to vector<4x4xbf16>
    %cst_37 = arith.constant dense<0.000000e+00> : vector<256x4xf32>
    %57 = tpu.matmul %54, %56, %cst_37 {dimension_numbers = #tpu.dot_dimension_numbers<[1], [0], [0], [1], [0, 0, 1, 1], [], []>} : vector<256x4xbf16>, vector<4x4xbf16>, vector<256x4xf32> -> vector<256x4xf32>
    %58 = arith.addf %53, %57 : vector<256x4xf32>
    %59 = vector.broadcast %5 : vector<1x4xf32> to vector<256x4xf32>
    %60 = arith.addf %58, %59 : vector<256x4xf32>
    %c0_38 = arith.constant 0 : index
    %c256 = arith.constant 256 : index
    %c0_39 = arith.constant 0 : index
    %61 = vector.load %arg6[%c0_38, %c256, %c0_39] : memref<1x1024x4xf32, #tpu.memory_space<vmem>>, vector<1x256x4xf32>
    %62 = vector.shape_cast %61 : vector<1x256x4xf32> to vector<256x4xf32>
    %63 = vector.shape_cast %60 : vector<256x4xf32> to vector<1x256x4xf32>
    tpu.vector_store %arg6[%c0_38, %c256, %c0_39], %63 {strides = array<i32>} : memref<1x1024x4xf32, #tpu.memory_space<vmem>>, vector<1x256x4xf32>,
    %cst_40 = arith.constant 0.000000e+00 : f32
    %64 = vector.broadcast %cst_40 : f32 to vector<256x4xf32>
    %65 = vector.extract_strided_slice %7 {offsets = [16, 0], sizes = [256, 4], strides = [1, 1]} : vector<288x4xbf16> to vector<256x4xbf16>
    %c8 = arith.constant 8 : index
    %c0_41 = arith.constant 0 : index
    %c0_42 = arith.constant 0 : index
    %66 = vector.load %arg4[%c8, %c0_41, %c0_42] : memref<16x4x4xbf16, #tpu.memory_space<vmem>>, vector<1x4x4xbf16>
    %67 = vector.shape_cast %66 : vector<1x4x4xbf16> to vector<4x4xbf16>
    %cst_43 = arith.constant dense<0.000000e+00> : vector<256x4xf32>
    %68 = tpu.matmul %65, %67, %cst_43 {dimension_numbers = #tpu.dot_dimension_numbers<[1], [0], [0], [1], [0, 0, 1, 1], [], []>} : vector<256x4xbf16>, vector<4x4xbf16>, vector<256x4xf32> -> vector<256x4xf32>
    %69 = arith.addf %64, %68 : vector<256x4xf32>
    %70 = vector.extract_strided_slice %9 {offsets = [16, 0], sizes = [256, 4], strides = [1, 1]} : vector<288x4xbf16> to vector<256x4xbf16>
    %c9 = arith.constant 9 : index
    %c0_44 = arith.constant 0 : index
    %c0_45 = arith.constant 0 : index
    %71 = vector.load %arg4[%c9, %c0_44, %c0_45] : memref<16x4x4xbf16, #tpu.memory_space<vmem>>, vector<1x4x4xbf16>
    %72 = vector.shape_cast %71 : vector<1x4x4xbf16> to vector<4x4xbf16>
    %cst_46 = arith.constant dense<0.000000e+00> : vector<256x4xf32>
    %73 = tpu.matmul %70, %72, %cst_46 {dimension_numbers = #tpu.dot_dimension_numbers<[1], [0], [0], [1], [0, 0, 1, 1], [], []>} : vector<256x4xbf16>, vector<4x4xbf16>, vector<256x4xf32> -> vector<256x4xf32>
    %74 = arith.addf %69, %73 : vector<256x4xf32>
    %75 = vector.extract_strided_slice %7 {offsets = [32, 0], sizes = [256, 4], strides = [1, 1]} : vector<288x4xbf16> to vector<256x4xbf16>
    %c10 = arith.constant 10 : index
    %c0_47 = arith.constant 0 : index
    %c0_48 = arith.constant 0 : index
    %76 = vector.load %arg4[%c10, %c0_47, %c0_48] : memref<16x4x4xbf16, #tpu.memory_space<vmem>>, vector<1x4x4xbf16>
    %77 = vector.shape_cast %76 : vector<1x4x4xbf16> to vector<4x4xbf16>
    %cst_49 = arith.constant dense<0.000000e+00> : vector<256x4xf32>
    %78 = tpu.matmul %75, %77, %cst_49 {dimension_numbers = #tpu.dot_dimension_numbers<[1], [0], [0], [1], [0, 0, 1, 1], [], []>} : vector<256x4xbf16>, vector<4x4xbf16>, vector<256x4xf32> -> vector<256x4xf32>
    %79 = arith.addf %74, %78 : vector<256x4xf32>
    %80 = vector.extract_strided_slice %9 {offsets = [32, 0], sizes = [256, 4], strides = [1, 1]} : vector<288x4xbf16> to vector<256x4xbf16>
    %c11 = arith.constant 11 : index
    %c0_50 = arith.constant 0 : index
    %c0_51 = arith.constant 0 : index
    %81 = vector.load %arg4[%c11, %c0_50, %c0_51] : memref<16x4x4xbf16, #tpu.memory_space<vmem>>, vector<1x4x4xbf16>
    %82 = vector.shape_cast %81 : vector<1x4x4xbf16> to vector<4x4xbf16>
    %cst_52 = arith.constant dense<0.000000e+00> : vector<256x4xf32>
    %83 = tpu.matmul %80, %82, %cst_52 {dimension_numbers = #tpu.dot_dimension_numbers<[1], [0], [0], [1], [0, 0, 1, 1], [], []>} : vector<256x4xbf16>, vector<4x4xbf16>, vector<256x4xf32> -> vector<256x4xf32>
    %84 = arith.addf %79, %83 : vector<256x4xf32>
    %85 = vector.broadcast %5 : vector<1x4xf32> to vector<256x4xf32>
    %86 = arith.addf %84, %85 : vector<256x4xf32>
    %c0_53 = arith.constant 0 : index
    %c512 = arith.constant 512 : index
    %c0_54 = arith.constant 0 : index
    %87 = vector.load %arg6[%c0_53, %c512, %c0_54] : memref<1x1024x4xf32, #tpu.memory_space<vmem>>, vector<1x256x4xf32>
    %88 = vector.shape_cast %87 : vector<1x256x4xf32> to vector<256x4xf32>
    %89 = vector.shape_cast %86 : vector<256x4xf32> to vector<1x256x4xf32>
    tpu.vector_store %arg6[%c0_53, %c512, %c0_54], %89 {strides = array<i32>} : memref<1x1024x4xf32, #tpu.memory_space<vmem>>, vector<1x256x4xf32>,
    %cst_55 = arith.constant 0.000000e+00 : f32
    %90 = vector.broadcast %cst_55 : f32 to vector<256x4xf32>
    %91 = vector.extract_strided_slice %9 {offsets = [16, 0], sizes = [256, 4], strides = [1, 1]} : vector<288x4xbf16> to vector<256x4xbf16>
    %c12 = arith.constant 12 : index
    %c0_56 = arith.constant 0 : index
    %c0_57 = arith.constant 0 : index
    %92 = vector.load %arg4[%c12, %c0_56, %c0_57] : memref<16x4x4xbf16, #tpu.memory_space<vmem>>, vector<1x4x4xbf16>
    %93 = vector.shape_cast %92 : vector<1x4x4xbf16> to vector<4x4xbf16>
    %cst_58 = arith.constant dense<0.000000e+00> : vector<256x4xf32>
    %94 = tpu.matmul %91, %93, %cst_58 {dimension_numbers = #tpu.dot_dimension_numbers<[1], [0], [0], [1], [0, 0, 1, 1], [], []>} : vector<256x4xbf16>, vector<4x4xbf16>, vector<256x4xf32> -> vector<256x4xf32>
    %95 = arith.addf %90, %94 : vector<256x4xf32>
    %96 = vector.extract_strided_slice %11 {offsets = [16, 0], sizes = [256, 4], strides = [1, 1]} : vector<288x4xbf16> to vector<256x4xbf16>
    %c13 = arith.constant 13 : index
    %c0_59 = arith.constant 0 : index
    %c0_60 = arith.constant 0 : index
    %97 = vector.load %arg4[%c13, %c0_59, %c0_60] : memref<16x4x4xbf16, #tpu.memory_space<vmem>>, vector<1x4x4xbf16>
    %98 = vector.shape_cast %97 : vector<1x4x4xbf16> to vector<4x4xbf16>
    %cst_61 = arith.constant dense<0.000000e+00> : vector<256x4xf32>
    %99 = tpu.matmul %96, %98, %cst_61 {dimension_numbers = #tpu.dot_dimension_numbers<[1], [0], [0], [1], [0, 0, 1, 1], [], []>} : vector<256x4xbf16>, vector<4x4xbf16>, vector<256x4xf32> -> vector<256x4xf32>
    %100 = arith.addf %95, %99 : vector<256x4xf32>
    %101 = vector.extract_strided_slice %9 {offsets = [32, 0], sizes = [256, 4], strides = [1, 1]} : vector<288x4xbf16> to vector<256x4xbf16>
    %c14 = arith.constant 14 : index
    %c0_62 = arith.constant 0 : index
    %c0_63 = arith.constant 0 : index
    %102 = vector.load %arg4[%c14, %c0_62, %c0_63] : memref<16x4x4xbf16, #tpu.memory_space<vmem>>, vector<1x4x4xbf16>
    %103 = vector.shape_cast %102 : vector<1x4x4xbf16> to vector<4x4xbf16>
    %cst_64 = arith.constant dense<0.000000e+00> : vector<256x4xf32>
    %104 = tpu.matmul %101, %103, %cst_64 {dimension_numbers = #tpu.dot_dimension_numbers<[1], [0], [0], [1], [0, 0, 1, 1], [], []>} : vector<256x4xbf16>, vector<4x4xbf16>, vector<256x4xf32> -> vector<256x4xf32>
    %105 = arith.addf %100, %104 : vector<256x4xf32>
    %106 = vector.extract_strided_slice %11 {offsets = [32, 0], sizes = [256, 4], strides = [1, 1]} : vector<288x4xbf16> to vector<256x4xbf16>
    %c15 = arith.constant 15 : index
    %c0_65 = arith.constant 0 : index
    %c0_66 = arith.constant 0 : index
    %107 = vector.load %arg4[%c15, %c0_65, %c0_66] : memref<16x4x4xbf16, #tpu.memory_space<vmem>>, vector<1x4x4xbf16>
    %108 = vector.shape_cast %107 : vector<1x4x4xbf16> to vector<4x4xbf16>
    %cst_67 = arith.constant dense<0.000000e+00> : vector<256x4xf32>
    %109 = tpu.matmul %106, %108, %cst_67 {dimension_numbers = #tpu.dot_dimension_numbers<[1], [0], [0], [1], [0, 0, 1, 1], [], []>} : vector<256x4xbf16>, vector<4x4xbf16>, vector<256x4xf32> -> vector<256x4xf32>
    %110 = arith.addf %105, %109 : vector<256x4xf32>
    %111 = vector.broadcast %5 : vector<1x4xf32> to vector<256x4xf32>
    %112 = arith.addf %110, %111 : vector<256x4xf32>
    %c0_68 = arith.constant 0 : index
    %c768 = arith.constant 768 : index
    %c0_69 = arith.constant 0 : index
    %113 = vector.load %arg6[%c0_68, %c768, %c0_69] : memref<1x1024x4xf32, #tpu.memory_space<vmem>>, vector<1x256x4xf32>
    %114 = vector.shape_cast %113 : vector<1x256x4xf32> to vector<256x4xf32>
    %115 = vector.shape_cast %112 : vector<256x4xf32> to vector<1x256x4xf32>
    tpu.vector_store %arg6[%c0_68, %c768, %c0_69], %115 {strides = array<i32>} : memref<1x1024x4xf32, #tpu.memory_space<vmem>>, vector<1x256x4xf32>,
    return
  }
  func.func @transform_0(%arg0: i32, %arg1: i32) -> (i32, i32, i32, i32) {
    %c0_i32 = arith.constant 0 : i32
    %c0_i32_0 = arith.constant 0 : i32
    %c0_i32_1 = arith.constant 0 : i32
    return %arg0, %arg1, %c0_i32, %c0_i32_0 : i32, i32, i32, i32
  }
  func.func @transform_1(%arg0: i32, %arg1: i32) -> (i32, i32, i32, i32) {
    %c1_i32 = arith.constant 1 : i32
    %0 = arith.muli %arg0, %c1_i32 : i32
    %1 = arith.addi %0, %arg1 : i32
    %c0_i32 = arith.constant 0 : i32
    %c0_i32_0 = arith.constant 0 : i32
    %c0_i32_1 = arith.constant 0 : i32
    %c0_i32_2 = arith.constant 0 : i32
    return %1, %c0_i32, %c0_i32_0, %c0_i32_1 : i32, i32, i32, i32
  }
  func.func @transform_2(%arg0: i32, %arg1: i32) -> (i32, i32, i32) {
    %c0_i32 = arith.constant 0 : i32
    %c0_i32_0 = arith.constant 0 : i32
    %c0_i32_1 = arith.constant 0 : i32
    %c0_i32_2 = arith.constant 0 : i32
    return %c0_i32, %c0_i32_0, %c0_i32_1 : i32, i32, i32
  }
  func.func @transform_3(%arg0: i32, %arg1: i32) -> (i32, i32) {
    %c0_i32 = arith.constant 0 : i32
    %c0_i32_0 = arith.constant 0 : i32
    %c0_i32_1 = arith.constant 0 : i32
    return %c0_i32, %c0_i32_0 : i32, i32
  }
  func.func @transform_4(%arg0: i32, %arg1: i32) -> (i32, i32, i32) {
    %c1_i32 = arith.constant 1 : i32
    %0 = arith.muli %arg0, %c1_i32 : i32
    %1 = arith.addi %0, %arg1 : i32
    %c0_i32 = arith.constant 0 : i32
    %c0_i32_0 = arith.constant 0 : i32
    %c0_i32_1 = arith.constant 0 : i32
    return %1, %c0_i32, %c0_i32_0 : i32, i32, i32
  }
}

</mosaic_0001>

<bundles_post_ra>
// kernel: upsample_forward.1
= control target key start
LH: loop header
LB: loop body
LE: loop exit
PB: predicated region body
PF: predicated region fallthrough
CT: control target
= control target key end

     0   :  { %s3929_s15 = smov 0   ;;  %s3931_s16 = smov 0   ;;  %s5278_s0 = inlined_call_operand.vmem [shape: bf16[2,18,18,4], index: 0, kind: input, shape index: {}]   ;;  %s5279_s1 = inlined_call_operand.vmem [shape: bf16[2,2,18,4], index: 1, kind: input, shape index: {}]   ;;  %s5280_s2 = inlined_call_operand.vmem [shape: bf16[16,4,4], index: 2, kind: input, shape index: {}]   ;;  %s5281_s3 = inlined_call_operand.vmem [shape: f32[1,4], index: 3, kind: input, shape index: {}]   ;;  %s5282_s4 = inlined_call_operand.vmem [shape: f32[2,1024,4], index: 4, kind: output, shape index: {}]  }
   0x1   :  { %s3933_s17 = smov 0  }
   0x2 LB: > { %s26_s18 = sadd.s32 1, %s3898_s16  ;;  %p3396_p0 = scmp.ge.s32.totalorder %s3902_s17, 1  ;;  %s3902_s17 = sphi %s3933_s17, %s14_s17   ;;  %s3898_s16 = sphi %s3931_s16, %s5288_s16   ;;  %s3894_s15 = sphi %s3929_s15, %s5287_s15  }
   0x3   : > { %p28_p1 = scmp.ge.s32.totalorder %s26_s18, 2  ;;  %p208_p2 = scmp.lt.s32.totalorder %s3902_s17, 3 }
   0x5   : > { %s5290_s18 = smov (%p28_p1, %s26_s18), 0  ;;  %p209_p3 = pnand %p3396_p0, %p208_p2 }
   0x6   : > { %p257_p4 = scmp.lt.s32.totalorder (!%p209_p3), %s3894_s15, 1 }
   0x7   : > { %212 = sbr.rel (%p209_p3) target bundleno = 1190 (0x4a6), region = 36 }
   0xc   : > { %vm1060_vm0 = vcmask 1041408   ;;  %v3516_v0 = vld [vmem:[%s5280_s2 + $0x4] sm:$0x3]  ;;  %v960_v2 = vld [vmem:[%s5280_s2] sm:$0x3]  ;;  %s5292_s15 = smov (!%p257_p4, %s3894_s15), 1 }
   0xd   : > { %v1350_v1 = vsel %vm1060_vm0, %v3516_v0, 0  ;;  %v3419_v3 = vld [vmem:[%s5280_s2 + $0x2] sm:$0x3]  ;;  %v1250_v4 = vsel %vm1060_vm0, %v960_v2, 0  ;;  %v3537_v6 = vld [vmem:[%s5280_s2 + $0x6] sm:$0x3] }
   0xe   : > { %1359 = vmatpush.bf16.msra.mxu2 %v1350_v1  ;;  %v1062_v5 = vsel %vm1060_vm0, %v3419_v3, 0  ;;  %1259 = vmatpush.bf16.msra.mxu1 %v1250_v4  ;;  %v1482_v7 = vsel %vm1060_vm0, %v3537_v6, 0  ;;  %v3588_v8 = vld [vmem:[%s5280_s2 + $0xc] sm:$0x3]  ;;  %s3783_s29 = smul.u32 216, %s5292_s15  ;;  %vm1011_vm1 = vcmask 31744  }
   0xf   : > { %1071 = vmatpush.bf16.msra.mxu0 %v1062_v5  ;;  %1491 = vmatpush.bf16.msra.mxu3 %v1482_v7  ;;  %v1959_v9 = vsel %vm1060_vm0, %v3588_v8, 0  ;;  %v3605_v10 = vld [vmem:[%s5280_s2 + $0xe] sm:$0x3]  ;;  %v3555_v12 = vld [vmem:[%s5280_s2 + $0xa] sm:$0x3]  ;;  %s3764_s13 = sshll.u32 %s5292_s15, 10 }
  0x10   : > { %v2091_v11 = vsel %vm1060_vm0, %v3605_v10, 0  ;;  %v3554_v13 = vld [vmem:[%s5280_s2 + $0x8] sm:$0x3]  ;;  %s3983_s12 = scalar_lea.vmem %s5278_s0, %s3783_s29  ;;  %v1773_v14 = vsel %vm1060_vm0, %v3555_v12, 0  ;;  %vm342_vm2 = vsmask.f32 3328  ;;  %s4171_s22 = scalar_lea.vmem %s5282_s4, %s3764_s13 }
  0x11   : > { %v1865_v15 = vsel %vm1060_vm0, %v3554_v13, 0  ;;  %v3988_v16 = vld [vmem:[%s3983_s12 + $0xc] sm:$0xff]  ;;  %v3765_v17 = vld [vmem:[%s3983_s12] sm:$0xff]  ;;  %v289_v20 = vld [vmem:[%s3983_s12 + $0x8] sm:$0x1]  ;;  %s3784_s23 = smul.u32 24, %s5292_s15 }
  0x12   : > { %1968 = vmatpush.bf16.msrb.mxu2 %v1959_v9  ;;  %v287_v18 = vld [vmem:[%s3983_s12] sm:$0xf]  ;;  %1874 = vmatpush.bf16.msrb.mxu1 %v1865_v15  ;;  %v288_v19 = vld [vmem:[%s3983_s12 + $0x4] sm:$0xf]  ;;  %v365_v25 = vshll.u32 %v289_v20, 16  ;;  %v3767_v8 = vld [vmem:[%s3983_s12 + $0x18] sm:$0xff] }
  0x13   : > { %2100 = vmatpush.bf16.msrb.mxu3 %v2091_v11  ;;  %1782 = vmatpush.bf16.msrb.mxu0 %v1773_v14  ;;  %v346_v21 = vshrl.u32 %v287_v18, 16  ;;  %v349_v22 = vshll.u32 %v287_v18, 16  ;;  %v355_v23 = vshll.u32 %v288_v19, 16  ;;  %v359_v24 = vshrl.u32 %v288_v19, 16  ;;  %v290_v26 = vld [vmem:[%s3983_s12 + $0xc] sm:$0xf]  ;;  %s4276_s25 = scalar_lea.vmem %s5279_s1, %s3784_s23 }
  0x14   : > { %3521 = vmatmul.msk.bf16.vlgmr.msra.gmra.mxu2 %vm1011_vm1, %v3988_v16  ;;  %3500 = vmatmul.msk.bf16.vlgmr.msra.gmra.mxu1 %vm1011_vm1, %v3765_v17  ;;  %vm343_vm3 = vsmask.f32 7440  ;;  %v291_v29 = vld [vmem:[%s3983_s12 + $0x10] sm:$0xf]  ;;  %v292_v32 = vld [vmem:[%s3983_s12 + $0x14] sm:$0x1] }
  0x15   : > { %v348_v27 = vrot.slane %v346_v21, 4  ;;  %v351_v28 = vrot.slane %v349_v22, 5  ;;  %v357_v30 = vrot.slane %v355_v23, 5  ;;  %v361_v31 = vrot.slane %v359_v24, 4  ;;  %v293_v38 = vld [vmem:[%s3983_s12 + $0x18] sm:$0xf]  ;;  %vm4002_vm4 = vmor %vm342_vm2, %vm343_vm3 }
  0x16   : > { %v370_v33 = vshrl.u32 %v290_v26, 16  ;;  %v367_v35 = vrot.slane %v365_v25, 5  ;;  %v373_v36 = vshll.u32 %v290_v26, 16  ;;  %v379_v37 = vshll.u32 %v291_v29, 16  ;;  %v294_v44 = vld [vmem:[%s3983_s12 + $0x1c] sm:$0xf] }
  0x17   : > { %v352_v34 = vor.u32 %v351_v28, %v348_v27  ;;  %v362_v40 = vor.u32 %v361_v31, %v357_v30  ;;  %v383_v42 = vshrl.u32 %v291_v29, 16  ;;  %v389_v43 = vshll.u32 %v292_v32, 16  ;;  %v295_v4 = vld [vmem:[%s3983_s12 + $0x20] sm:$0x1]  ;;  %v296_v18 = vld [vmem:[%s3983_s12 + $0x24] sm:$0xf] }
  0x18   : > { %v372_v41 = vrot.slane %v370_v33, 4  ;;  %v375_v46 = vrot.slane %v373_v36, 5  ;;  %v381_v47 = vrot.slane %v379_v37, 5  ;;  %v394_v50 = vshrl.u32 %v293_v38, 16  ;;  %v297_v19 = vld [vmem:[%s3983_s12 + $0x28] sm:$0xf] }
  0x19   : > { %v353_v45 = vrot.slane %v352_v34, 4  ;;  %v363_v48 = vrot.slane %v362_v40, 4  ;;  %v385_v49 = vrot.slane %v383_v42, 4  ;;  %v397_v51 = vshll.u32 %v293_v38, 16  ;;  %v298_v31 = vld [vmem:[%s3983_s12 + $0x2c] sm:$0x1] }
  0x1a   : > { %v376_v53 = vor.u32 %v375_v46, %v372_v41  ;;  %v403_v54 = vshll.u32 %v294_v44, 16  ;;  %v391_v58 = vrot.slane %v389_v43, 5  ;;  %v407_v61 = vshrl.u32 %v294_v44, 16  ;;  %v3768_v32 = vld [vmem:[%s3983_s12 + $0x24] sm:$0xff]  ;;  %v299_v37 = vld [vmem:[%s3983_s12 + $0x30] sm:$0xf] }
  0x1b   : > { %v358_v52 = vsel %vm4002_vm4, %v353_v45, %v357_v30  ;;  %v368_v55 = vsel %vm4002_vm4, %v363_v48, %v367_v35  ;;  %v386_v57 = vor.u32 %v385_v49, %v381_v47  ;;  %v396_v63 = vrot.slane %v394_v50, 4  ;;  %v300_v38 = vld [vmem:[%s3983_s12 + $0x34] sm:$0xf] }
  0x1c   : > { %v963_v56 = vunpack.c.l.b16 %v358_v52  ;;  %v964_v59 = vunpack.c.l.b16 %v368_v55  ;;  %v377_v60 = vrot.slane %v376_v53, 4  ;;  %v399_v0 = vrot.slane %v397_v51, 5  ;;  %v301_v55 = vld [vmem:[%s3983_s12 + $0x38] sm:$0x1] }
  0x1d   : > { %v387_v62 = vrot.slane %v386_v57, 4  ;;  %v405_v1 = vrot.slane %v403_v54, 5  ;;  %v409_v5 = vrot.slane %v407_v61, 4  ;;  %v413_v12 = vshll.u32 %v295_v4, 16 }
  0x1e   : > { %v4011_v2 = vpack.c.b16 %v964_v59, %v963_v56  ;;  %v382_v3 = vsel %vm4002_vm4, %v377_v60, %v381_v47  ;;  %v400_v10 = vor.u32 %v399_v0, %v396_v63  ;;  %v418_v20 = vshrl.u32 %v296_v18, 16  ;;  %v3769_v56 = vld [vmem:[%s3983_s12 + $0x30] sm:$0xff]  ;;  %v302_v0 = vld [vmem:[%s3983_s12 + $0x3c] sm:$0xf] }
  0x1f   : > { %v392_v6 = vsel %vm4002_vm4, %v387_v62, %v391_v58  ;;  %v965_v7 = vunpack.c.l.b16 %v382_v3  ;;  %v410_v11 = vor.u32 %v409_v5, %v405_v1  ;;  %v415_v17 = vrot.slane %v413_v12, 5 }
  0x20   : > { %3420 = vmatmul.msk.bf16.vlgmr.msra.gmra.mxu0 %vm1011_vm1, %v4011_v2  ;;  %v966_v9 = vunpack.c.l.b16 %v392_v6  ;;  %v401_v14 = vrot.slane %v400_v10, 4  ;;  %v421_v21 = vshll.u32 %v296_v18, 16  ;;  %v427_v24 = vshll.u32 %v297_v19, 16  ;;  %v3770_v18 = vld [vmem:[%s3983_s12 + $0x3c] sm:$0xff] }
  0x21   : > { %v411_v15 = vrot.slane %v410_v11, 4  ;;  %v420_v27 = vrot.slane %v418_v20, 4  ;;  %v437_v36 = vshll.u32 %v298_v31, 16  ;;  %v442_v43 = vshrl.u32 %v299_v37, 16 }
  0x22   : > { %v4021_v13 = vpack.c.b16 %v966_v9, %v965_v7  ;;  %v406_v22 = vsel %vm4002_vm4, %v401_v14, %v405_v1  ;;  %v423_v28 = vrot.slane %v421_v21, 5  ;;  %v429_v29 = vrot.slane %v427_v24, 5  ;;  %v303_v1 = vld [vmem:[%s3983_s12 + $0x40] sm:$0xf] }
  0x23   : > { %v416_v23 = vsel %vm4002_vm4, %v411_v15, %v415_v17  ;;  %v967_v25 = vunpack.c.l.b16 %v406_v22  ;;  %v439_v42 = vrot.slane %v437_v36, 5  ;;  %v445_v44 = vshll.u32 %v299_v37, 16  ;;  %v304_v17 = vld [vmem:[%s3983_s12 + $0x44] sm:$0x1] }
  0x24   : > { %3522 = vmatmul.msk.bf16.gmra.mxu2 %vm1011_vm1, %v3767_v8  ;;  %3501 = vmatmul.msk.bf16.gmra.mxu1 %vm1011_vm1, %v3988_v16  ;;  %v431_v16 = vshrl.u32 %v297_v19, 16  ;;  %v968_v26 = vunpack.c.l.b16 %v416_v23  ;;  %v424_v34 = vor.u32 %v423_v28, %v420_v27  ;;  %v451_v45 = vshll.u32 %v300_v38, 16 }
  0x25   : > { %3538 = vmatmul.msk.bf16.vlgmr.msra.gmra.mxu3 %vm1011_vm1, %v4021_v13  ;;  %v455_v46 = vshrl.u32 %v300_v38, 16  ;;  %v444_v49 = vrot.slane %v442_v43, 4  ;;  %v447_v50 = vrot.slane %v445_v44, 5  ;;  %v461_v59 = vshll.u32 %v301_v55, 16 }
  0x26   : > { %v433_v30 = vrot.slane %v431_v16, 4  ;;  %v4038_v33 = vpack.c.b16 %v968_v26, %v967_v25  ;;  %v425_v40 = vrot.slane %v424_v34, 4  ;;  %v453_v51 = vrot.slane %v451_v45, 5  ;;  %v305_v25 = vld [vmem:[%s3983_s12 + $0x48] sm:$0xf] }
  0x27   : > { %v457_v52 = vrot.slane %v455_v46, 4  ;;  %v448_v57 = vor.u32 %v447_v50, %v444_v49  ;;  %v463_v63 = vrot.slane %v461_v59, 5  ;;  %v466_v5 = vshrl.u32 %v302_v0, 16  ;;  %v306_v26 = vld [vmem:[%s3983_s12 + $0x4c] sm:$0xf] }
  0x28   : > { %v434_v35 = vor.u32 %v433_v30, %v429_v29  ;;  %v430_v47 = vsel %vm4002_vm4, %v425_v40, %v429_v29  ;;  %v469_v6 = vshll.u32 %v302_v0, 16  ;;  %v475_v7 = vshll.u32 %v303_v1, 16 }
  0x29   : > { %v969_v53 = vunpack.c.l.b16 %v430_v47  ;;  %v458_v58 = vor.u32 %v457_v52, %v453_v51  ;;  %v449_v61 = vrot.slane %v448_v57, 4  ;;  %v468_v11 = vrot.slane %v466_v5, 4  ;;  %v308_v47 = vld [vmem:[%s3983_s12 + $0x54] sm:$0xf] }
  0x2a   : > { %v435_v41 = vrot.slane %v434_v35, 4  ;;  %v471_v12 = vrot.slane %v469_v6, 5  ;;  %v477_v14 = vrot.slane %v475_v7, 5  ;;  %v485_v22 = vshll.u32 %v304_v17, 16 }
  0x2b   : > { %v459_v62 = vrot.slane %v458_v58, 4  ;;  %v454_v3 = vsel %vm4002_vm4, %v449_v61, %v453_v51  ;;  %v490_v29 = vshrl.u32 %v305_v25, 16  ;;  %v493_v30 = vshll.u32 %v305_v25, 16 }
  0x2c   : > { %v440_v48 = vsel %vm4002_vm4, %v435_v41, %v439_v42  ;;  %v971_v9 = vunpack.c.l.b16 %v454_v3  ;;  %v472_v20 = vor.u32 %v471_v12, %v468_v11  ;;  %v487_v16 = vrot.slane %v485_v22, 5  ;;  %v307_v41 = vld [vmem:[%s3983_s12 + $0x50] sm:$0x1]  ;;  %v3771_v42 = vld [vmem:[%s3983_s12 + $0x48] sm:$0xff]  ;;  %v3772_v3 = vld [vmem:[%s3983_s12 + $0x54] sm:$0xff] }
  0x2d   : > { %v970_v54 = vunpack.c.l.b16 %v440_v48  ;;  %v464_v4 = vsel %vm4002_vm4, %v459_v62, %v463_v63  ;;  %v499_v31 = vshll.u32 %v306_v26, 16  ;;  %v492_v36 = vrot.slane %v490_v29, 4  ;;  %v309_v48 = vld [vmem:[%s3983_s12 + $0x58] sm:$0xf]  ;;  %v311_v11 = vld [vmem:[%s3983_s12 + $0x60] sm:$0xf] }
  0x2e   : > { %v972_v10 = vunpack.c.l.b16 %v464_v4  ;;  %v473_v23 = vrot.slane %v472_v20, 4  ;;  %v495_v37 = vrot.slane %v493_v30, 5  ;;  %v509_v46 = vshll.u32 %v307_v41, 16  ;;  %v312_v12 = vld [vmem:[%s3983_s12 + $0x64] sm:$0xf] }
  0x2f   : > { %v4054_v60 = vpack.c.b16 %v970_v54, %v969_v53  ;;  %v501_v38 = vrot.slane %v499_v31, 5  ;;  %v514_v52 = vshrl.u32 %v308_v47, 16  ;;  %v517_v53 = vshll.u32 %v308_v47, 16 }
  0x30   : > { %3421 = vmatmul.msk.bf16.gmra.mxu0 %vm1011_vm1, %v4021_v13  ;;  %v4070_v19 = vpack.c.b16 %v972_v10, %v971_v9  ;;  %v478_v27 = vsel %vm4002_vm4, %v473_v23, %v477_v14  ;;  %v496_v44 = vor.u32 %v495_v37, %v492_v36  ;;  %v511_v51 = vrot.slane %v509_v46, 5  ;;  %v314_v37 = vld [vmem:[%s3983_s12 + $0x6c] sm:$0xf] }
  0x31   : > { %v973_v34 = vunpack.c.l.b16 %v478_v27  ;;  %v523_v54 = vshll.u32 %v309_v48, 16  ;;  %v527_v55 = vshrl.u32 %v309_v48, 16  ;;  %v516_v58 = vrot.slane %v514_v52, 4  ;;  %v313_v27 = vld [vmem:[%s3983_s12 + $0x68] sm:$0x1] }
  0x32   : > { %v497_v49 = vrot.slane %v496_v44, 4  ;;  %v519_v59 = vrot.slane %v517_v53, 5  ;;  %v538_v17 = vshrl.u32 %v311_v11, 16  ;;  %v547_v20 = vshll.u32 %v312_v12, 16  ;;  %v316_v53 = vld [vmem:[%s3983_s12 + $0x74] sm:$0x1] }
  0x33   : > { %v525_v61 = vrot.slane %v523_v54, 5  ;;  %v529_v62 = vrot.slane %v527_v55, 4  ;;  %v565_v44 = vshll.u32 %v314_v37, 16  ;;  %v3774_v54 = vld [vmem:[%s3983_s12 + $0x6c] sm:$0xff]  ;;  %vm831_vm5 = vcmask 1042432  }
  0x34   : > { %3523 = vmatmul.msk.bf16.gmra.mxu2 %vm1011_vm1, %v3768_v32  ;;  %3502 = vmatmul.msk.bf16.gmra.mxu1 %vm1011_vm1, %v3767_v8  ;;  %v479_v8 = vshrl.u32 %v303_v1, 16  ;;  %v310_v1 = vld [vmem:[%s3983_s12 + $0x5c] sm:$0x1]  ;;  %v520_v4 = vor.u32 %v519_v59, %v516_v58  ;;  %v549_v25 = vrot.slane %v547_v20, 5  ;;  %v581_v59 = vshll.u32 %v316_v53, 16 }
  0x35   : > { %3539 = vmatmul.msk.bf16.gmra.mxu3 %vm1011_vm1, %v4038_v33  ;;  %v530_v5 = vor.u32 %v529_v62, %v525_v61  ;;  %v533_v6 = vshll.u32 %v310_v1, 16  ;;  %v318_v1 = vld [vmem:[%s3983_s12 + $0x7c] sm:$0xf]  ;;  %vm832_vm6 = vcmask 1046532  }
  0x36   : > { %v481_v15 = vrot.slane %v479_v8, 4  ;;  %v521_v8 = vrot.slane %v520_v4, 4  ;;  %vm4303_vm7 = vmor %vm831_vm5, %vm832_vm6 }
  0x37   : > { %v531_v9 = vrot.slane %v530_v5, 4  ;;  %v535_v10 = vrot.slane %v533_v6, 5 }
  0x38   : > { %v482_v21 = vor.u32 %v481_v15, %v477_v14  ;;  %v526_v14 = vsel %vm4002_vm4, %v521_v8, %v525_v61  ;;  %v317_v61 = vld [vmem:[%s3983_s12 + $0x78] sm:$0xf]  ;;  %v595_v8 = vshll.u32 %v318_v1, 16 }
  0x39   : > { %v536_v15 = vsel %vm4002_vm4, %v531_v9, %v535_v10  ;;  %v977_v22 = vunpack.c.l.b16 %v526_v14  ;;  %v586_v4 = vshrl.u32 %v317_v61, 16  ;;  %v589_v5 = vshll.u32 %v317_v61, 16 }
  0x3a   : > { %v483_v24 = vrot.slane %v482_v21, 4  ;;  %v551_v21 = vshrl.u32 %v312_v12, 16  ;;  %v978_v23 = vunpack.c.l.b16 %v536_v15  ;;  %v599_v9 = vshrl.u32 %v318_v1, 16 }
  0x3b   : > { %v588_v12 = vrot.slane %v586_v4, 4  ;;  %v591_v14 = vrot.slane %v589_v5, 5  ;;  %v3776_v5 = vld [vmem:[%s3983_s12 + $0x84] sm:$0xff] }
  0x3c   : > { %v488_v28 = vsel %vm4002_vm4, %v483_v24, %v487_v16  ;;  %v540_v24 = vrot.slane %v538_v17, 4  ;;  %v4118_v29 = vpack.c.b16 %v978_v23, %v977_v22  ;;  %v601_v20 = vrot.slane %v599_v9, 4  ;;  %v319_v22 = vld [vmem:[%s3983_s12 + $0x80] sm:$0x1] }
  0x3d   : > { %v974_v35 = vunpack.c.l.b16 %v488_v28  ;;  %v3773_v28 = vld [vmem:[%s3983_s12 + $0x60] sm:$0xff] }
  0x3f   : > { %v4086_v43 = vpack.c.b16 %v974_v35, %v973_v34 }
  0x40   : > { %3422 = vmatmul.msk.bf16.gmra.mxu0 %vm1011_vm1, %v4038_v33 }
  0x44   : > { %3524 = vmatmul.msk.bf16.gmra.mxu2 %vm1011_vm1, %v3769_v56  ;;  %3503 = vmatmul.msk.bf16.gmra.mxu1 %vm1011_vm1, %v3768_v32  ;;  %v503_v32 = vshrl.u32 %v306_v26, 16  ;;  %v553_v26 = vrot.slane %v551_v21, 4 }
  0x45   : > { %3540 = vmatmul.msk.bf16.gmra.mxu3 %vm1011_vm1, %v4054_v60 }
  0x46   : > { %v505_v40 = vrot.slane %v503_v32, 4  ;;  %v554_v31 = vor.u32 %v553_v26, %v549_v25  ;;  %v557_v32 = vshll.u32 %v313_v27, 16 }
  0x48   : > { %v506_v45 = vor.u32 %v505_v40, %v501_v38  ;;  %v555_v35 = vrot.slane %v554_v31, 4  ;;  %v559_v36 = vrot.slane %v557_v32, 5 }
  0x4a   : > { %v507_v50 = vrot.slane %v506_v45, 4  ;;  %v560_v41 = vsel %vm4002_vm4, %v555_v35, %v559_v36  ;;  %v320_v36 = vld [vmem:[%s3983_s12 + $0x84] sm:$0xf] }
  0x4b   : > { %v980_v48 = vunpack.c.l.b16 %v560_v41 }
  0x4c   : > { %v512_v57 = vsel %vm4002_vm4, %v507_v50, %v511_v51  ;;  %v567_v50 = vrot.slane %v565_v44, 5 }
  0x4d   : > { %v976_v0 = vunpack.c.l.b16 %v512_v57 }
  0x50   : > { %3423 = vmatmul.msk.bf16.gmra.mxu0 %vm1011_vm1, %v4054_v60 }
  0x54   : > { %3525 = vmatmul.msk.bf16.gmra.mxu2 %vm1011_vm1, %v3770_v18  ;;  %3504 = vmatmul.msk.bf16.gmra.mxu1 %vm1011_vm1, %v3769_v56  ;;  %v502_v56 = vsel %vm4002_vm4, %v497_v49, %v501_v38  ;;  %v315_v38 = vld [vmem:[%s3983_s12 + $0x70] sm:$0xf] }
  0x55   : > { %3541 = vmatmul.msk.bf16.gmra.mxu3 %vm1011_vm1, %v4070_v19  ;;  %v975_v63 = vunpack.c.l.b16 %v502_v56  ;;  %v571_v45 = vshll.u32 %v315_v38, 16  ;;  %v575_v46 = vshrl.u32 %v315_v38, 16  ;;  %v321_v38 = vld [vmem:[%s3983_s12 + $0x88] sm:$0xf] }
  0x57   : > { %v4102_v7 = vpack.c.b16 %v976_v0, %v975_v63  ;;  %v573_v51 = vrot.slane %v571_v45, 5  ;;  %v577_v52 = vrot.slane %v575_v46, 4  ;;  %v583_v0 = vrot.slane %v581_v59, 5 }
  0x58   : > { %v610_v45 = vshrl.u32 %v320_v36, 16  ;;  %v613_v46 = vshll.u32 %v320_v36, 16 }
  0x59   : > { %v578_v58 = vor.u32 %v577_v52, %v573_v51 }
  0x5b   : > { %v579_v63 = vrot.slane %v578_v58, 4  ;;  %v615_v58 = vrot.slane %v613_v46, 5 }
  0x60   : > { %3424 = vmatmul.msk.bf16.gmra.mxu0 %vm1011_vm1, %v4070_v19 }
  0x64   : > { %3526 = vmatmul.msk.bf16.gmra.mxu2 %vm1011_vm1, %v3771_v42  ;;  %3505 = vmatmul.msk.bf16.gmra.mxu1 %vm1011_vm1, %v3770_v18  ;;  %v541_v18 = vshll.u32 %v311_v11, 16  ;;  %v584_v11 = vsel %vm4002_vm4, %v579_v63, %v583_v0  ;;  %v322_v63 = vld [vmem:[%s3983_s12 + $0x8c] sm:$0x1] }
  0x65   : > { %3542 = vmatmul.msk.bf16.gmra.mxu3 %vm1011_vm1, %v4086_v43  ;;  %v982_v17 = vunpack.c.l.b16 %v584_v11 }
  0x66   : > { %v543_v16 = vrot.slane %v541_v18, 5  ;;  %v597_v18 = vrot.slane %v595_v8, 5 }
  0x68   : > { %v544_v30 = vor.u32 %v543_v16, %v540_v24  ;;  %v3775_v24 = vld [vmem:[%s3983_s12 + $0x78] sm:$0xff]  ;;  %v592_v16 = vor.u32 %v591_v14, %v588_v12  ;;  %v629_v12 = vshll.u32 %v322_v63, 16 }
  0x6a   : > { %v545_v34 = vrot.slane %v544_v30, 4  ;;  %v605_v30 = vshll.u32 %v319_v22, 16  ;;  %v593_v31 = vrot.slane %v592_v16, 4 }
  0x6c   : > { %v550_v40 = vsel %vm4002_vm4, %v545_v34, %v549_v25  ;;  %v607_v35 = vrot.slane %v605_v30, 5  ;;  %v598_v44 = vsel %vm4002_vm4, %v593_v31, %v597_v18 }
  0x6d   : > { %v979_v47 = vunpack.c.l.b16 %v550_v40  ;;  %v4162_v40 = vld [vmem:[%s5281_s3] ss:$0 sm:$0xff] }
  0x6f   : > { %v4134_v55 = vpack.c.b16 %v980_v48, %v979_v47 }
  0x70   : > { %3425 = vmatmul.msk.bf16.gmra.mxu0 %vm1011_vm1, %v4086_v43 }
  0x74   : > { %3527 = vmatmul.msk.bf16.gmra.mxu2 %vm1011_vm1, %v3772_v3  ;;  %3506 = vmatmul.msk.bf16.gmra.mxu1 %vm1011_vm1, %v3771_v42  ;;  %v562_v42 = vshrl.u32 %v314_v37, 16 }
  0x75   : > { %3543 = vmatmul.msk.bf16.gmra.mxu3 %vm1011_vm1, %v4102_v7 }
  0x76   : > { %v564_v49 = vrot.slane %v562_v42, 4 }
  0x78   : > { %v568_v57 = vor.u32 %v567_v50, %v564_v49  ;;  %v619_v50 = vshll.u32 %v321_v38, 16 }
  0x7a   : > { %v569_v62 = vrot.slane %v568_v57, 4  ;;  %v612_v57 = vrot.slane %v610_v45, 4  ;;  %v621_v59 = vrot.slane %v619_v50, 5 }
  0x7c   : > { %v574_v10 = vsel %vm4002_vm4, %v569_v62, %v573_v51  ;;  %v623_v51 = vshrl.u32 %v321_v38, 16  ;;  %v616_v8 = vor.u32 %v615_v58, %v612_v57 }
  0x7d   : > { %v981_v15 = vunpack.c.l.b16 %v574_v10 }
  0x7e   : > { %v625_v61 = vrot.slane %v623_v51, 4 }
  0x7f   : > { %v4150_v26 = vpack.c.b16 %v982_v17, %v981_v15  ;;  %v617_v15 = vrot.slane %v616_v8, 4 }
  0x80   : > { %3426 = vmatmul.msk.bf16.gmra.mxu0 %vm1011_vm1, %v4102_v7  ;;  %v626_v11 = vor.u32 %v625_v61, %v621_v59 }
  0x84   : > { %3528 = vmatmul.msk.bf16.gmra.mxu2 %vm1011_vm1, %v3773_v28  ;;  %3507 = vmatmul.msk.bf16.gmra.mxu1 %vm1011_vm1, %v3772_v3 }
  0x85   : > { %3544 = vmatmul.msk.bf16.gmra.mxu3 %vm1011_vm1, %v4118_v29 }
  0x90   : > { %3427 = vmatmul.msk.bf16.gmra.mxu0 %vm1011_vm1, %v4118_v29 }
  0x91   : > { %v1261_v56 = vpop.f32.mrf.mxu1 }
  0x94   : > { %3529 = vmatmul.msk.bf16.gmra.mxu2 %vm1011_vm1, %v3774_v54  ;;  %3508 = vmatmul.msk.bf16.gmra.mxu1 %vm1011_vm1, %v3773_v28  ;;  %v602_v28 = vor.u32 %v601_v20, %v597_v18  ;;  %v627_v18 = vrot.slane %v626_v11, 4  ;;  %v631_v20 = vrot.slane %v629_v12, 5 }
  0x95   : > { %3545 = vmatmul.msk.bf16.gmra.mxu3 %vm1011_vm1, %v4134_v55 }
  0x96   : > { %v603_v34 = vrot.slane %v602_v28, 4 }
  0x97   : > { %v1361_v3 = vpop.f32.mrf.mxu2 }
  0x98   : > { %v608_v49 = vsel %vm4002_vm4, %v603_v34, %v607_v35 }
  0x99   : > { %v1263_v6 = vpop.f32.mrf.mxu1 }
  0x9d   : > { %v1073_v21 = vpop.f32.mrf.mxu0 }
  0x9e   : > { %v1262_v25 = vadd.f32 %v1261_v56, %v1073_v21  ;;  %v984_v56 = vunpack.c.l.b16 %v608_v49  ;;  %v323_v21 = vld [vmem:[%s3983_s12 + $0x90] sm:$0xf]  ;;  %v325_v49 = vld [vmem:[%s3983_s12 + $0x98] sm:$0x1] }
  0x9f   : > { %v1363_v23 = vpop.f32.mrf.mxu2  ;;  %v634_v28 = vshrl.u32 %v323_v21, 16  ;;  %v653_v61 = vshll.u32 %v325_v49, 16 }
  0xa0   : > { %3428 = vmatmul.msk.bf16.gmra.mxu0 %vm1011_vm1, %v4134_v55  ;;  %v1441_v32 = vadd.f32 %v1361_v3, %v1262_v25 }
  0xa1   : > { %v1266_v27 = vpop.f32.mrf.mxu1 }
  0xa4   : > { %3530 = vmatmul.msk.bf16.gmra.mxu2 %vm1011_vm1, %v3775_v24  ;;  %3509 = vmatmul.msk.bf16.gmra.mxu1 %vm1011_vm1, %v3774_v54  ;;  %v983_v54 = vunpack.c.l.b16 %v598_v44 }
  0xa5   : > { %3546 = vmatmul.msk.bf16.gmra.mxu3 %vm1011_vm1, %v4150_v26  ;;  %v1075_v37 = vpop.f32.mrf.mxu0 }
  0xa6   : > { %v1264_v53 = vadd.f32 %v1263_v6, %v1075_v37  ;;  %v4177_v4 = vpack.c.b16 %v984_v56, %v983_v54  ;;  %v3777_v54 = vld [vmem:[%s3983_s12 + $0x90] sm:$0xff] }
  0xa7   : > { %v1366_v41 = vpop.f32.mrf.mxu2 }
  0xa8   : > { %v1493_v42 = vpop.f32.mrf.mxu3  ;;  %v1442_v0 = vadd.f32 %v1363_v23, %v1264_v53  ;;  %v324_v23 = vld [vmem:[%s3983_s12 + $0x94] sm:$0xf] }
  0xa9   : > { %v1573_v47 = vadd.f32 %v1493_v42, %v1441_v32  ;;  %v1268_v48 = vpop.f32.mrf.mxu1  ;;  %v632_v32 = vsel %vm4002_vm4, %v627_v18, %v631_v20  ;;  %v643_v34 = vshll.u32 %v324_v23, 16  ;;  %v647_v35 = vshrl.u32 %v324_v23, 16 }
  0xaa   : > { %v636_v42 = vrot.slane %v634_v28, 4 }
  0xab   : > { %v1608_v52 = vadd.f32 %v4162_v40, %v1573_v47  ;;  %v645_v45 = vrot.slane %v643_v34, 5  ;;  %v649_v46 = vrot.slane %v647_v35, 4 }
  0xad   : > { %1640 = vst.msk [vmem:[%s4171_s22] sm:$0xff] %vm1011_vm1, %v1608_v52  ;;  %v1078_v62 = vpop.f32.mrf.mxu0 }
  0xae   : > { %v1267_v9 = vadd.f32 %v1266_v27, %v1078_v62  ;;  %v622_v27 = vsel %vm4002_vm4, %v617_v15, %v621_v59  ;;  %v650_v59 = vor.u32 %v649_v46, %v645_v45 }
  0xaf   : > { %v1368_v1 = vpop.f32.mrf.mxu2  ;;  %v985_v38 = vunpack.c.l.b16 %v622_v27 }
  0xb0   : > { %v1495_v3 = vpop.f32.mrf.mxu3  ;;  %3429 = vmatmul.msk.bf16.gmra.mxu0 %vm1011_vm1, %v4150_v26  ;;  %v1443_v17 = vadd.f32 %v1366_v41, %v1267_v9  ;;  %v986_v41 = vunpack.c.l.b16 %v632_v32  ;;  %v326_v9 = vld [vmem:[%s3983_s12 + $0x9c] sm:$0xf] }
  0xb1   : > { %v1574_v6 = vadd.f32 %v1495_v3, %v1442_v0  ;;  %v1271_v10 = vpop.f32.mrf.mxu1  ;;  %v655_v3 = vrot.slane %v653_v61, 5  ;;  %v661_v18 = vshll.u32 %v326_v9, 16 }
  0xb2   : > { %v4199_v53 = vpack.c.b16 %v986_v41, %v985_v38  ;;  %v3778_v38 = vld [vmem:[%s3983_s12 + $0x9c] sm:$0xff] }
  0xb3   : > { %v1609_v14 = vadd.f32 %v4162_v40, %v1574_v6 }
  0xb4   : > { %3531 = vmatmul.msk.bf16.gmra.mxu2 %vm1011_vm1, %v3776_v5  ;;  %3510 = vmatmul.msk.bf16.gmra.mxu1 %vm1011_vm1, %v3775_v24  ;;  %v637_v24 = vshll.u32 %v323_v21, 16 }
  0xb5   : > { %1641 = vst.msk [vmem:[%s4171_s22 + $0x8] sm:$0xff] %vm1011_vm1, %v1609_v14  ;;  %3547 = vmatmul.msk.bf16.gmra.mxu3 %vm1011_vm1, %v4177_v4  ;;  %v1080_v22 = vpop.f32.mrf.mxu0 }
  0xb6   : > { %v1269_v37 = vadd.f32 %v1268_v48, %v1080_v22  ;;  %v639_v44 = vrot.slane %v637_v24, 5  ;;  %v663_v24 = vrot.slane %v661_v18, 5 }
  0xb7   : > { %v1371_v16 = vpop.f32.mrf.mxu2 }
  0xb8   : > { %v1498_v25 = vpop.f32.mrf.mxu3  ;;  %v1444_v50 = vadd.f32 %v1368_v1, %v1269_v37  ;;  %v640_v56 = vor.u32 %v639_v44, %v636_v42  ;;  %v651_v1 = vrot.slane %v650_v59, 4  ;;  %v330_v59 = vld [vmem:[%s3983_s12 + $0xac] sm:$0xf] }
  0xb9   : > { %v1575_v30 = vadd.f32 %v1498_v25, %v1443_v17  ;;  %v1273_v31 = vpop.f32.mrf.mxu1  ;;  %v658_v17 = vshrl.u32 %v326_v9, 16 }
  0xba   : > { %v641_v0 = vrot.slane %v640_v56, 4  ;;  %v656_v15 = vsel %vm4002_vm4, %v651_v1, %v655_v3 }
  0xbb   : > { %v1610_v36 = vadd.f32 %v4162_v40, %v1575_v30  ;;  %v988_v25 = vunpack.c.l.b16 %v656_v15  ;;  %v660_v28 = vrot.slane %v658_v17, 4 }
  0xbd   : > { %1642 = vst.msk [vmem:[%s4171_s22 + $0x10] sm:$0xff] %vm1011_vm1, %v1610_v36  ;;  %v1083_v47 = vpop.f32.mrf.mxu0  ;;  %v328_v36 = vld [vmem:[%s3983_s12 + $0xa4] sm:$0x1] }
  0xbe   : > { %v1272_v48 = vadd.f32 %v1271_v10, %v1083_v47  ;;  %v327_v10 = vld [vmem:[%s3983_s12 + $0xa0] sm:$0xf]  ;;  %v677_v47 = vshll.u32 %v328_v36, 16 }
  0xbf   : > { %v1373_v51 = vpop.f32.mrf.mxu2  ;;  %v667_v20 = vshll.u32 %v327_v10, 16  ;;  %v671_v21 = vshrl.u32 %v327_v10, 16 }
  0xc0   : > { %v1500_v52 = vpop.f32.mrf.mxu3  ;;  %3430 = vmatmul.msk.bf16.gmra.mxu0 %vm1011_vm1, %v4177_v4  ;;  %v1445_v63 = vadd.f32 %v1371_v16, %v1272_v48  ;;  %v329_v48 = vld [vmem:[%s3983_s12 + $0xa8] sm:$0xf] }
  0xc1   : > { %v1576_v57 = vadd.f32 %v1500_v52, %v1444_v50  ;;  %v1276_v58 = vpop.f32.mrf.mxu1  ;;  %v669_v30 = vrot.slane %v667_v20, 5  ;;  %v673_v32 = vrot.slane %v671_v21, 4  ;;  %v685_v1 = vshll.u32 %v329_v48, 16 }
  0xc3   : > { %v1611_v62 = vadd.f32 %v4162_v40, %v1576_v57  ;;  %v674_v46 = vor.u32 %v673_v32, %v669_v30  ;;  %v679_v57 = vrot.slane %v677_v47, 5  ;;  %v687_v15 = vrot.slane %v685_v1, 5 }
  0xc4   : > { %3532 = vmatmul.msk.bf16.gmra.mxu2 %vm1011_vm1, %v3777_v54  ;;  %3511 = vmatmul.msk.bf16.gmra.mxu1 %vm1011_vm1, %v3776_v5  ;;  %v646_v5 = vsel %vm4002_vm4, %v641_v0, %v645_v45  ;;  %v664_v45 = vor.u32 %v663_v24, %v660_v28  ;;  %v682_v0 = vshrl.u32 %v329_v48, 16 }
  0xc5   : > { %1643 = vst.msk [vmem:[%s4171_s22 + $0x18] sm:$0xff] %vm1011_vm1, %v1611_v62  ;;  %3548 = vmatmul.msk.bf16.gmra.mxu3 %vm1011_vm1, %v4199_v53  ;;  %v1085_v8 = vpop.f32.mrf.mxu0  ;;  %v987_v16 = vunpack.c.l.b16 %v646_v5  ;;  %v675_v56 = vrot.slane %v674_v46, 4 }
  0xc6   : > { %v1274_v23 = vadd.f32 %v1273_v31, %v1085_v8  ;;  %v665_v52 = vrot.slane %v664_v45, 4  ;;  %v691_v8 = vshll.u32 %v330_v59, 16  ;;  %v684_v5 = vrot.slane %v682_v0, 4 }
  0xc7   : > { %v1376_v6 = vpop.f32.mrf.mxu2  ;;  %v4224_v31 = vpack.c.b16 %v988_v25, %v987_v16  ;;  %v680_v3 = vsel %vm4002_vm4, %v675_v56, %v679_v57  ;;  %v3779_v25 = vld [vmem:[%s3983_s12 + $0xa8] sm:$0xff] }
  0xc8   : > { %v1503_v11 = vpop.f32.mrf.mxu3  ;;  %v1446_v34 = vadd.f32 %v1373_v51, %v1274_v23  ;;  %v693_v18 = vrot.slane %v691_v8, 5  ;;  %v331_v23 = vld [vmem:[%s3983_s12 + $0xb0] sm:$0x1] }
  0xc9   : > { %v1577_v12 = vadd.f32 %v1503_v11, %v1445_v63  ;;  %v1278_v14 = vpop.f32.mrf.mxu1 }
  0xcb   : > { %v1612_v22 = vadd.f32 %v4162_v40, %v1577_v12  ;;  %v990_v12 = vunpack.c.l.b16 %v680_v3  ;;  %v334_v3 = vld [vmem:[%s3983_s12 + $0xbc] sm:$0x1] }
  0xcd   : > { %1644 = vst.msk [vmem:[%s4171_s22 + $0x20] sm:$0xff] %vm1011_vm1, %v1612_v22  ;;  %v1088_v27 = vpop.f32.mrf.mxu0 }
  0xce   : > { %v1277_v42 = vadd.f32 %v1276_v58, %v1088_v27 }
  0xcf   : > { %v1378_v35 = vpop.f32.mrf.mxu2 }
  0xd0   : > { %v1505_v37 = vpop.f32.mrf.mxu3  ;;  %3431 = vmatmul.msk.bf16.gmra.mxu0 %vm1011_vm1, %v4199_v53  ;;  %v1447_v50 = vadd.f32 %v1376_v6, %v1277_v42  ;;  %v695_v6 = vshrl.u32 %v330_v59, 16 }
  0xd1   : > { %v1578_v41 = vadd.f32 %v1505_v37, %v1446_v34  ;;  %v1281_v44 = vpop.f32.mrf.mxu1  ;;  %v701_v34 = vshll.u32 %v331_v23, 16  ;;  %v333_v37 = vld [vmem:[%s3983_s12 + $0xb8] sm:$0xf] }
  0xd2   : > { %v697_v20 = vrot.slane %v695_v6, 4 }
  0xd3   : > { %v1613_v49 = vadd.f32 %v4162_v40, %v1578_v41  ;;  %v703_v46 = vrot.slane %v701_v34, 5 }
  0xd4   : > { %3533 = vmatmul.msk.bf16.gmra.mxu2 %vm1011_vm1, %v3778_v38  ;;  %3512 = vmatmul.msk.bf16.gmra.mxu1 %vm1011_vm1, %v3777_v54  ;;  %v670_v54 = vsel %vm4002_vm4, %v665_v52, %v669_v30  ;;  %v688_v30 = vor.u32 %v687_v15, %v684_v5  ;;  %v698_v32 = vor.u32 %v697_v20, %v693_v18  ;;  %v719_v52 = vshrl.u32 %v333_v37, 16 }
  0xd5   : > { %1645 = vst.msk [vmem:[%s4171_s22 + $0x28] sm:$0xff] %vm1011_vm1, %v1613_v49  ;;  %3549 = vmatmul.msk.bf16.gmra.mxu3 %vm1011_vm1, %v4224_v31  ;;  %v1090_v51 = vpop.f32.mrf.mxu0  ;;  %v989_v11 = vunpack.c.l.b16 %v670_v54  ;;  %v725_v15 = vshll.u32 %v334_v3, 16 }
  0xd6   : > { %v1279_v10 = vadd.f32 %v1278_v14, %v1090_v51  ;;  %v689_v42 = vrot.slane %v688_v30, 4  ;;  %v699_v45 = vrot.slane %v698_v32, 4  ;;  %v715_v51 = vshll.u32 %v333_v37, 16  ;;  %v336_v32 = vld [vmem:[%s4276_s25 + $0x4] sm:$0xf] }
  0xd7   : > { %v1381_v58 = vpop.f32.mrf.mxu2  ;;  %v4246_v14 = vpack.c.b16 %v990_v12, %v989_v11  ;;  %v721_v54 = vrot.slane %v719_v52, 4 }
  0xd8   : > { %v1508_v61 = vpop.f32.mrf.mxu3  ;;  %v1448_v21 = vadd.f32 %v1378_v35, %v1279_v10  ;;  %v332_v35 = vld [vmem:[%s3983_s12 + $0xb4] sm:$0xf]  ;;  %v694_v48 = vsel %vm4002_vm4, %v689_v42, %v693_v18  ;;  %v717_v1 = vrot.slane %v715_v51, 5  ;;  %v3811_v51 = vld [vmem:[%s3983_s12] sm:$0xf] }
  0xd9   : > { %v1579_v62 = vadd.f32 %v1508_v61, %v1447_v50  ;;  %v1283_v63 = vpop.f32.mrf.mxu1  ;;  %v706_v47 = vshrl.u32 %v332_v35, 16  ;;  %v709_v49 = vshll.u32 %v332_v35, 16  ;;  %v991_v8 = vunpack.c.l.b16 %v694_v48  ;;  %v4267_v18 = vld [vmem:[%s3983_s12 + $0xb4] sm:$0xff] }
  0xda   : > { %v722_v5 = vor.u32 %v721_v54, %v717_v1  ;;  %v3401_v52 = vrot.slane %v3811_v51, 9 }
  0xdb   : > { %v1614_v9 = vadd.f32 %v4162_v40, %v1579_v62  ;;  %v708_v59 = vrot.slane %v706_v47, 4  ;;  %v711_v61 = vrot.slane %v709_v49, 5  ;;  %v743_v47 = vshrl.u32 %v336_v32, 16 }
  0xdd   : > { %1646 = vst.msk [vmem:[%s4171_s22 + $0x30] sm:$0xff] %vm1011_vm1, %v1614_v9  ;;  %v1093_v17 = vpop.f32.mrf.mxu0  ;;  %v712_v12 = vor.u32 %v711_v61, %v708_v59  ;;  %v745_v3 = vrot.slane %v743_v47, 4 }
  0xde   : > { %v1282_v28 = vadd.f32 %v1281_v44, %v1093_v17 }
  0xdf   : > { %v1383_v22 = vpop.f32.mrf.mxu2 }
  0xe0   : > { %v1510_v16 = vpop.f32.mrf.mxu3  ;;  %3432 = vmatmul.msk.bf16.gmra.mxu0 %vm1011_vm1, %v4224_v31  ;;  %v1449_v41 = vadd.f32 %v1381_v58, %v1282_v28  ;;  %v704_v58 = vsel %vm4002_vm4, %v699_v45, %v703_v46  ;;  %v727_v28 = vrot.slane %v725_v15, 5  ;;  %v739_v46 = vshll.u32 %v336_v32, 16 }
  0xe1   : > { %v1580_v27 = vadd.f32 %v1510_v16, %v1448_v21  ;;  %v1286_v24 = vpop.f32.mrf.mxu1  ;;  %v992_v6 = vunpack.c.l.b16 %v704_v58  ;;  %v713_v16 = vrot.slane %v712_v12, 4 }
  0xe2   : > { %v741_v54 = vrot.slane %v739_v46, 5  ;;  %v3623_v46 = vld [vmem:[%s5280_s2 + $0x12] sm:$0x3] }
  0xe3   : > { %v1615_v36 = vadd.f32 %v4162_v40, %v1580_v27  ;;  %v4271_v21 = vpack.c.b16 %v992_v6, %v991_v8  ;;  %v723_v27 = vrot.slane %v722_v5, 4  ;;  %v718_v35 = vsel %vm4002_vm4, %v713_v16, %v717_v1  ;;  %v337_v8 = vld [vmem:[%s4276_s25 + $0x8] sm:$0x1] }
  0xe4   : > { %3534 = vmatmul.msk.bf16.gmra.mxu2 %vm1011_vm1, %v3779_v25  ;;  %3513 = vmatmul.msk.bf16.gmra.mxu1 %vm1011_vm1, %v3778_v38 }
  0xe5   : > { %1647 = vst.msk [vmem:[%s4171_s22 + $0x38] sm:$0xff] %vm1011_vm1, %v1615_v36  ;;  %3550 = vmatmul.msk.bf16.gmra.mxu3 %vm1011_vm1, %v4246_v14  ;;  %v1095_v44 = vpop.f32.mrf.mxu0  ;;  %v728_v37 = vsel %vm4002_vm4, %v723_v27, %v727_v28 }
  0xe6   : > { %v1284_v0 = vadd.f32 %v1283_v63, %v1095_v44 }
  0xe7   : > { %v1386_v50 = vpop.f32.mrf.mxu2 }
  0xe8   : > { %v1513_v38 = vpop.f32.mrf.mxu3  ;;  %v1450_v10 = vadd.f32 %v1383_v22, %v1284_v0  ;;  %v3812_v0 = vld [vmem:[%s3983_s12 + $0x8] sm:$0x1] }
  0xe9   : > { %v1581_v56 = vadd.f32 %v1513_v38, %v1449_v41  ;;  %v1288_v57 = vpop.f32.mrf.mxu1  ;;  %v993_v38 = vunpack.c.l.b16 %v718_v35  ;;  %v839_v1 = vrot.slane %v3812_v0, 5 }
  0xeb   : > { %v1616_v62 = vadd.f32 %v4162_v40, %v1581_v56  ;;  %v994_v56 = vunpack.c.l.b16 %v728_v37 }
  0xed   : > { %1648 = vst.msk [vmem:[%s4171_s22 + $0x40] sm:$0xff] %vm1011_vm1, %v1616_v62  ;;  %v1098_v9 = vpop.f32.mrf.mxu0 }
  0xee   : > { %v1287_v63 = vadd.f32 %v1286_v24, %v1098_v9  ;;  %v335_v24 = vld [vmem:[%s4276_s25] sm:$0xf] }
  0xef   : > { %v1388_v11 = vpop.f32.mrf.mxu2  ;;  %v730_v41 = vshrl.u32 %v335_v24, 16  ;;  %v733_v42 = vshll.u32 %v335_v24, 16 }
  0xf0   : > { %v1515_v17 = vpop.f32.mrf.mxu3  ;;  %3433 = vmatmul.msk.bf16.gmra.mxu0 %vm1011_vm1, %v4246_v14  ;;  %v1451_v30 = vadd.f32 %v1386_v50, %v1287_v63  ;;  %v749_v63 = vshll.u32 %v337_v8, 16 }
  0xf1   : > { %v1582_v20 = vadd.f32 %v1515_v17, %v1450_v10  ;;  %v1291_v23 = vpop.f32.mrf.mxu1  ;;  %v732_v59 = vrot.slane %v730_v41, 4  ;;  %v735_v61 = vrot.slane %v733_v42, 5  ;;  %v4301_v10 = vpack.c.b16 %v994_v56, %v993_v38  ;;  %v3781_v17 = vld [vmem:[%s4276_s25] sm:$0xff]  ;;  %v3656_v42 = vld [vmem:[%s5280_s2 + $0x14] sm:$0x3] }
  0xf2   : > { %v751_v41 = vrot.slane %v749_v63, 5 }
  0xf3   : > { %v1617_v22 = vadd.f32 %v4162_v40, %v1582_v20  ;;  %v736_v5 = vor.u32 %v735_v61, %v732_v59  ;;  %v746_v20 = vor.u32 %v745_v3, %v741_v54 }
  0xf4   : > { %3535 = vmatmul.msk.bf16.gmra.mxu2 %vm1011_vm1, %v4267_v18  ;;  %3514 = vmatmul.msk.bf16.gmra.mxu1 %vm1011_vm1, %v3779_v25  ;;  %v3810_v25 = vld [vmem:[%s3983_s12 + $0x4] sm:$0xf] }
  0xf5   : > { %1649 = vst.msk [vmem:[%s4171_s22 + $0x48] sm:$0xff] %vm1011_vm1, %v1617_v22  ;;  %3551 = vmatmul.msk.bf16.gmra.mxu3 %vm1011_vm1, %v4271_v21  ;;  %v1100_v34 = vpop.f32.mrf.mxu0  ;;  %v836_v44 = vrot.slane %v3810_v25, 5  ;;  %v737_v35 = vrot.slane %v736_v5, 4  ;;  %v747_v37 = vrot.slane %v746_v20, 4  ;;  %v3677_v25 = vld [vmem:[%s5280_s2 + $0x16] sm:$0x3] }
  0xf6   : > { %v1289_v58 = vadd.f32 %v1288_v57, %v1100_v34 }
  0xf7   : > { %v1391_v36 = vpop.f32.mrf.mxu2  ;;  %v838_v62 = vrot.slane %v836_v44, 4  ;;  %v837_v22 = vsel %vm4303_vm7, %v3401_v52, %v836_v44 }
  0xf8   : > { %v1518_v45 = vpop.f32.mrf.mxu3  ;;  %v1452_v9 = vadd.f32 %v1388_v11, %v1289_v58  ;;  %v1676_v24 = vunpack.c.l.b16 %v837_v22  ;;  %v752_v58 = vsel %vm4002_vm4, %v747_v37, %v751_v41  ;;  %v3814_v22 = vld [vmem:[%s3983_s12 + $0xc] sm:$0xf] }
  0xf9   : > { %v1583_v49 = vadd.f32 %v1518_v45, %v1451_v30  ;;  %v4293_v50 = vpop.f32.mrf.mxu1  ;;  %v840_v16 = vsel %vm4303_vm7, %v838_v62, %v839_v1  ;;  %v2607_v45 = vsel %vm1060_vm0, %v3677_v25, 0  ;;  %v1476_v0 = vunpack.c.l.b16 %v752_v58  ;;  %v3817_v58 = vld [vmem:[%s3983_s12 + $0x18] sm:$0xf] }
  0xfa   : > { %v1677_v30 = vunpack.c.l.b16 %v840_v16  ;;  %2616 = vmatpush.bf16.msra.mxu3 %v2607_v45  ;;  %v3402_v16 = vrot.slane %v3814_v22, 9 }
  0xfb   : > { %v1618_v48 = vadd.f32 %v4162_v40, %v1583_v49  ;;  %v2283_v49 = vsel %vm1060_vm0, %v3623_v46, 0 }
  0xfc   : > { %v4315_v34 = vpack.c.b16 %v1677_v30, %v1676_v24  ;;  %2292 = vmatpush.bf16.msra.mxu0 %v2283_v49 }
  0xfd   : > { %1650 = vst.msk [vmem:[%s4171_s22 + $0x50] sm:$0xff] %vm1011_vm1, %v1618_v48  ;;  %v1103_v6 = vpop.f32.mrf.mxu0  ;;  %v742_v48 = vsel %vm4002_vm4, %v737_v35, %v741_v54 }
  0xfe   : > { %v1292_v27 = vadd.f32 %v1291_v23, %v1103_v6  ;;  %v1475_v62 = vunpack.c.l.b16 %v742_v48 }
  0xff   : > { %v1393_v12 = vpop.f32.mrf.mxu2 }
 0x100   : > { %v1520_v15 = vpop.f32.mrf.mxu3  ;;  %3434 = vmatmul.msk.bf16.gmra.mxu0 %vm1011_vm1, %v4271_v21  ;;  %v1453_v23 = vadd.f32 %v1391_v36, %v1292_v27  ;;  %v3622_v36 = vld [vmem:[%s5280_s2 + $0x10] sm:$0x3]  ;;  %v4350_v5 = vpack.c.b16 %v1476_v0, %v1475_v62  ;;  %v3815_v27 = vld [vmem:[%s3983_s12 + $0x14] sm:$0x1]  ;;  %v3818_v62 = vld [vmem:[%s3983_s12 + $0x20] sm:$0x1] }
 0x101   : > { %v1584_v11 = vadd.f32 %v1520_v15, %v1452_v9  ;;  %v1296_v28 = vpop.f32.mrf.mxu1  ;;  %v2375_v51 = vsel %vm1060_vm0, %v3622_v36, 0  ;;  %v853_v0 = vrot.slane %v3818_v62, 5 }
 0x102   : > { %2384 = vmatpush.bf16.msra.mxu1 %v2375_v51 }
 0x103   : > { %v1619_v32 = vadd.f32 %v4162_v40, %v1584_v11 }
 0x104   : > { %3536 = vmatmul.msk.bf16.gmra.mxu2 %vm1011_vm1, %v3781_v17  ;;  %3515 = vmatmul.msk.bf16.gmra.mxu1 %vm1011_vm1, %v4267_v18  ;;  %v2475_v18 = vsel %vm1060_vm0, %v3656_v42, 0 }
 0x105   : > { %1651 = vst.msk [vmem:[%s4171_s22 + $0x58] sm:$0xff] %vm1011_vm1, %v1619_v32  ;;  %3552 = vmatmul.msk.bf16.gmra.mxu3 %vm1011_vm1, %v4301_v10  ;;  %v1105_v44 = vpop.f32.mrf.mxu0  ;;  %2484 = vmatpush.bf16.msra.mxu2 %v2475_v18 }
 0x106   : > { %v1294_v61 = vadd.f32 %v4293_v50, %v1105_v44  ;;  %v3813_v50 = vld [vmem:[%s3983_s12 + $0x10] sm:$0xf] }
 0x107   : > { %v1396_v47 = vpop.f32.mrf.mxu2  ;;  %v843_v17 = vrot.slane %v3813_v50, 5 }
 0x108   : > { %v1523_v52 = vpop.f32.mrf.mxu3  ;;  %v1454_v3 = vadd.f32 %v1393_v12, %v1294_v61 }
 0x109   : > { %v1585_v38 = vadd.f32 %v1523_v52, %v1453_v23  ;;  %v1298_v56 = vpop.f32.mrf.mxu1  ;;  %v845_v11 = vrot.slane %v843_v17, 4  ;;  %v3816_v52 = vld [vmem:[%s3983_s12 + $0x1c] sm:$0xf] }
 0x10b   : > { %v1620_v59 = vadd.f32 %v4162_v40, %v1585_v38  ;;  %v850_v38 = vrot.slane %v3816_v52, 5 }
 0x10d   : > { %1652 = vst.msk [vmem:[%s4171_s22 + $0x60] sm:$0xff] %vm1011_vm1, %v1620_v59  ;;  %v1108_v1 = vpop.f32.mrf.mxu0  ;;  %v3403_v59 = vrot.slane %v3817_v58, 9  ;;  %v852_v61 = vrot.slane %v850_v38, 4 }
 0x10e   : > { %v1297_v54 = vadd.f32 %v1296_v28, %v1108_v1  ;;  %v846_v28 = vrot.slane %v3815_v27, 5 }
 0x10f   : > { %v1398_v8 = vpop.f32.mrf.mxu2 }
 0x110   : > { %v1525_v6 = vpop.f32.mrf.mxu3  ;;  %3435 = vmatmul.msk.bf16.gmra.mxu0 %vm1011_vm1, %v4301_v10  ;;  %v1455_v12 = vadd.f32 %v1396_v47, %v1297_v54  ;;  %v847_v37 = vsel %vm4303_vm7, %v845_v11, %v846_v28  ;;  %v854_v54 = vsel %vm4303_vm7, %v852_v61, %v853_v0 }
 0x111   : > { %v1586_v9 = vadd.f32 %v1525_v6, %v1454_v3  ;;  %v1301_v15 = vpop.f32.mrf.mxu1  ;;  %v1679_v25 = vunpack.c.l.b16 %v847_v37 }
 0x113   : > { %v1621_v20 = vadd.f32 %v4162_v40, %v1586_v9  ;;  %v851_v9 = vsel %vm4303_vm7, %v3403_v59, %v850_v38 }
 0x114   : > { %3589 = vmatmul.msk.bf16.vlgmr.msrb.gmra.mxu2 %vm1011_vm1, %v4021_v13  ;;  %3572 = vmatmul.msk.bf16.vlgmr.msrb.gmra.mxu1 %vm1011_vm1, %v4011_v2  ;;  %v844_v2 = vsel %vm4303_vm7, %v3402_v16, %v843_v17  ;;  %v1680_v17 = vunpack.c.l.b16 %v851_v9 }
 0x115   : > { %1653 = vst.msk [vmem:[%s4171_s22 + $0x68] sm:$0xff] %vm1011_vm1, %v1621_v20  ;;  %3553 = vmatmul.msk.bf16.gmra.mxu3 %vm1011_vm1, %v4350_v5  ;;  %v1110_v63 = vpop.f32.mrf.mxu0  ;;  %v1678_v42 = vunpack.c.l.b16 %v844_v2  ;;  %v1681_v20 = vunpack.c.l.b16 %v854_v54 }
 0x116   : > { %v1299_v41 = vadd.f32 %v1298_v56, %v1110_v63 }
 0x117   : > { %v1401_v24 = vpop.f32.mrf.mxu2  ;;  %v4373_v49 = vpack.c.b16 %v1679_v25, %v1678_v42  ;;  %v4396_v28 = vpack.c.b16 %v1681_v20, %v1680_v17  ;;  %v3821_v25 = vld [vmem:[%s3983_s12 + $0x2c] sm:$0x1] }
 0x118   : > { %v1528_v30 = vpop.f32.mrf.mxu3  ;;  %v1456_v18 = vadd.f32 %v1398_v8, %v1299_v41 }
 0x119   : > { %v1587_v32 = vadd.f32 %v1528_v30, %v1455_v12  ;;  %v1303_v35 = vpop.f32.mrf.mxu1  ;;  %v3819_v30 = vld [vmem:[%s3983_s12 + $0x28] sm:$0xf] }
 0x11b   : > { %v1622_v23 = vadd.f32 %v4162_v40, %v1587_v32  ;;  %v857_v32 = vrot.slane %v3819_v30, 5 }
 0x11d   : > { %1654 = vst.msk [vmem:[%s4171_s22 + $0x70] sm:$0xff] %vm1011_vm1, %v1622_v23  ;;  %v1113_v44 = vpop.f32.mrf.mxu0  ;;  %v3820_v23 = vld [vmem:[%s3983_s12 + $0x24] sm:$0xf]  ;;  %v859_v42 = vrot.slane %v857_v32, 4 }
 0x11e   : > { %v1302_v47 = vadd.f32 %v1301_v15, %v1113_v44  ;;  %v3404_v41 = vrot.slane %v3820_v23, 9  ;;  %v860_v44 = vrot.slane %v3821_v25, 5 }
 0x11f   : > { %v1403_v45 = vpop.f32.mrf.mxu2 }
 0x120   : > { %v1530_v46 = vpop.f32.mrf.mxu3  ;;  %3556 = vmatmul.msk.bf16.vlgmr.msrb.gmra.mxu0 %vm1011_vm1, %v4315_v34  ;;  %v1457_v34 = vadd.f32 %v1401_v24, %v1302_v47  ;;  %v858_v47 = vsel %vm4303_vm7, %v3404_v41, %v857_v32 }
 0x121   : > { %v1588_v36 = vadd.f32 %v1530_v46, %v1456_v18  ;;  %v1306_v51 = vpop.f32.mrf.mxu1 }
 0x123   : > { %v1623_v56 = vadd.f32 %v4162_v40, %v1588_v36 }
 0x124   : > { %3590 = vmatmul.msk.bf16.gmra.mxu2 %vm1011_vm1, %v4038_v33  ;;  %3573 = vmatmul.msk.bf16.gmra.mxu1 %vm1011_vm1, %v4021_v13 }
 0x125   : > { %1655 = vst.msk [vmem:[%s4171_s22 + $0x78] sm:$0xff] %vm1011_vm1, %v1623_v56  ;;  %3606 = vmatmul.msk.bf16.vlgmr.msrb.gmra.mxu3 %vm1011_vm1, %v4373_v49  ;;  %v1115_v48 = vpop.f32.mrf.mxu0  ;;  %v1682_v56 = vunpack.c.l.b16 %v858_v47 }
 0x126   : > { %v1304_v50 = vadd.f32 %v1303_v35, %v1115_v48 }
 0x127   : > { %v1406_v1 = vpop.f32.mrf.mxu2 }
 0x128   : > { %v1533_v3 = vpop.f32.mrf.mxu3  ;;  %v1458_v63 = vadd.f32 %v1403_v45, %v1304_v50  ;;  %v3823_v50 = vld [vmem:[%s3983_s12 + $0x30] sm:$0xf] }
 0x129   : > { %v1589_v8 = vadd.f32 %v1533_v3, %v1457_v34  ;;  %v1308_v6 = vpop.f32.mrf.mxu1  ;;  %v3405_v17 = vrot.slane %v3823_v50, 9 }
 0x12b   : > { %v1624_v15 = vadd.f32 %v4162_v40, %v1589_v8  ;;  %v3822_v8 = vld [vmem:[%s3983_s12 + $0x34] sm:$0xf] }
 0x12d   : > { %1656 = vst.msk [vmem:[%s4171_s22 + $0x80] sm:$0xff] %vm1011_vm1, %v1624_v15  ;;  %v1118_v12 = vpop.f32.mrf.mxu0 }
 0x12e   : > { %v1307_v27 = vadd.f32 %v1306_v51, %v1118_v12  ;;  %v861_v51 = vsel %vm4303_vm7, %v859_v42, %v860_v44  ;;  %v3824_v12 = vld [vmem:[%s3983_s12 + $0x38] sm:$0x1] }
 0x12f   : > { %v1408_v22 = vpop.f32.mrf.mxu2  ;;  %v1683_v34 = vunpack.c.l.b16 %v861_v51 }
 0x130   : > { %v1535_v16 = vpop.f32.mrf.mxu3  ;;  %3557 = vmatmul.msk.bf16.gmra.mxu0 %vm1011_vm1, %v4373_v49  ;;  %v1459_v2 = vadd.f32 %v1406_v1, %v1307_v27 }
 0x131   : > { %v1590_v11 = vadd.f32 %v1535_v16, %v1458_v63  ;;  %v1311_v24 = vpop.f32.mrf.mxu1  ;;  %v4419_v1 = vpack.c.b16 %v1683_v34, %v1682_v56  ;;  %v867_v63 = vrot.slane %v3824_v12, 5  ;;  %v3826_v56 = vld [vmem:[%s3983_s12 + $0x3c] sm:$0xf] }
 0x132   : > { %v3406_v34 = vrot.slane %v3826_v56, 9 }
 0x133   : > { %v1625_v35 = vadd.f32 %v4162_v40, %v1590_v11 }
 0x134   : > { %3591 = vmatmul.msk.bf16.gmra.mxu2 %vm1011_vm1, %v4054_v60  ;;  %3574 = vmatmul.msk.bf16.gmra.mxu1 %vm1011_vm1, %v4038_v33 }
 0x135   : > { %1657 = vst.msk [vmem:[%s4171_s22 + $0x88] sm:$0xff] %vm1011_vm1, %v1625_v35  ;;  %3607 = vmatmul.msk.bf16.gmra.mxu3 %vm1011_vm1, %v4396_v28  ;;  %v1120_v37 = vpop.f32.mrf.mxu0 }
 0x136   : > { %v1309_v38 = vadd.f32 %v1308_v6, %v1120_v37  ;;  %v864_v6 = vrot.slane %v3822_v8, 5 }
 0x137   : > { %v1411_v18 = vpop.f32.mrf.mxu2 }
 0x138   : > { %v1538_v45 = vpop.f32.mrf.mxu3  ;;  %v1460_v58 = vadd.f32 %v1408_v22, %v1309_v38  ;;  %v866_v20 = vrot.slane %v864_v6, 4 }
 0x139   : > { %v1591_v46 = vadd.f32 %v1538_v45, %v1459_v2  ;;  %v1313_v36 = vpop.f32.mrf.mxu1 }
 0x13a   : > { %v868_v30 = vsel %vm4303_vm7, %v866_v20, %v867_v63 }
 0x13b   : > { %v1626_v52 = vadd.f32 %v4162_v40, %v1591_v46  ;;  %v1685_v37 = vunpack.c.l.b16 %v868_v30 }
 0x13d   : > { %1658 = vst.msk [vmem:[%s4171_s22 + $0x90] sm:$0xff] %vm1011_vm1, %v1626_v52  ;;  %v1123_v48 = vpop.f32.mrf.mxu0 }
 0x13e   : > { %v1312_v0 = vadd.f32 %v1311_v24, %v1123_v48  ;;  %v865_v24 = vsel %vm4303_vm7, %v3405_v17, %v864_v6 }
 0x13f   : > { %v1413_v59 = vpop.f32.mrf.mxu2  ;;  %v1684_v2 = vunpack.c.l.b16 %v865_v24 }
 0x140   : > { %v1540_v61 = vpop.f32.mrf.mxu3  ;;  %3558 = vmatmul.msk.bf16.gmra.mxu0 %vm1011_vm1, %v4396_v28  ;;  %v1461_v54 = vadd.f32 %v1411_v18, %v1312_v0 }
 0x141   : > { %v1592_v62 = vadd.f32 %v1540_v61, %v1460_v58  ;;  %v1316_v3 = vpop.f32.mrf.mxu1  ;;  %v4442_v45 = vpack.c.b16 %v1685_v37, %v1684_v2  ;;  %v3827_v58 = vld [vmem:[%s3983_s12 + $0x44] sm:$0x1]  ;;  %v3829_v37 = vld [vmem:[%s3983_s12 + $0x48] sm:$0xf] }
 0x143   : > { %v1627_v9 = vadd.f32 %v4162_v40, %v1592_v62 }
 0x144   : > { %3592 = vmatmul.msk.bf16.gmra.mxu2 %vm1011_vm1, %v4070_v19  ;;  %3575 = vmatmul.msk.bf16.gmra.mxu1 %vm1011_vm1, %v4054_v60 }
 0x145   : > { %1659 = vst.msk [vmem:[%s4171_s22 + $0x98] sm:$0xff] %vm1011_vm1, %v1627_v9  ;;  %3608 = vmatmul.msk.bf16.gmra.mxu3 %vm1011_vm1, %v4419_v1  ;;  %v1125_v15 = vpop.f32.mrf.mxu0 }
 0x146   : > { %v1314_v35 = vadd.f32 %v1313_v36, %v1125_v15  ;;  %v3825_v36 = vld [vmem:[%s3983_s12 + $0x40] sm:$0xf] }
 0x147   : > { %v1416_v22 = vpop.f32.mrf.mxu2  ;;  %v871_v47 = vrot.slane %v3825_v36, 5 }
 0x148   : > { %v1543_v16 = vpop.f32.mrf.mxu3  ;;  %v1462_v41 = vadd.f32 %v1413_v59, %v1314_v35  ;;  %v874_v59 = vrot.slane %v3827_v58, 5 }
 0x149   : > { %v1593_v11 = vadd.f32 %v1543_v16, %v1461_v54  ;;  %v1318_v27 = vpop.f32.mrf.mxu1  ;;  %v873_v48 = vrot.slane %v871_v47, 4  ;;  %v872_v8 = vsel %vm4303_vm7, %v3406_v34, %v871_v47 }
 0x14a   : > { %v1686_v15 = vunpack.c.l.b16 %v872_v8 }
 0x14b   : > { %v1628_v32 = vadd.f32 %v4162_v40, %v1593_v11  ;;  %v875_v6 = vsel %vm4303_vm7, %v873_v48, %v874_v59 }
 0x14c   : > { %v1687_v50 = vunpack.c.l.b16 %v875_v6 }
 0x14d   : > { %1660 = vst.msk [vmem:[%s4171_s22 + $0xa0] sm:$0xff] %vm1011_vm1, %v1628_v32  ;;  %v1128_v23 = vpop.f32.mrf.mxu0 }
 0x14e   : > { %v1317_v18 = vadd.f32 %v1316_v3, %v1128_v23  ;;  %v4465_v11 = vpack.c.b16 %v1687_v50, %v1686_v15  ;;  %v3407_v23 = vrot.slane %v3829_v37, 9 }
 0x14f   : > { %v1418_v42 = vpop.f32.mrf.mxu2 }
 0x150   : > { %v1545_v25 = vpop.f32.mrf.mxu3  ;;  %3559 = vmatmul.msk.bf16.gmra.mxu0 %vm1011_vm1, %v4419_v1  ;;  %v1463_v52 = vadd.f32 %v1416_v22, %v1317_v18 }
 0x151   : > { %v1594_v44 = vadd.f32 %v1545_v25, %v1462_v41  ;;  %v1321_v46 = vpop.f32.mrf.mxu1 }
 0x153   : > { %v1629_v51 = vadd.f32 %v4162_v40, %v1594_v44 }
 0x154   : > { %3593 = vmatmul.msk.bf16.gmra.mxu2 %vm1011_vm1, %v4086_v43  ;;  %3576 = vmatmul.msk.bf16.gmra.mxu1 %vm1011_vm1, %v4070_v19 }
 0x155   : > { %1661 = vst.msk [vmem:[%s4171_s22 + $0xa8] sm:$0xff] %vm1011_vm1, %v1629_v51  ;;  %3609 = vmatmul.msk.bf16.gmra.mxu3 %vm1011_vm1, %v4442_v45  ;;  %v1130_v38 = vpop.f32.mrf.mxu0 }
 0x156   : > { %v1319_v54 = vadd.f32 %v1318_v27, %v1130_v38  ;;  %v3828_v27 = vld [vmem:[%s3983_s12 + $0x4c] sm:$0xf] }
 0x157   : > { %v1421_v61 = vpop.f32.mrf.mxu2  ;;  %v878_v30 = vrot.slane %v3828_v27, 5 }
 0x158   : > { %v1548_v62 = vpop.f32.mrf.mxu3  ;;  %v1464_v20 = vadd.f32 %v1418_v42, %v1319_v54  ;;  %v3830_v42 = vld [vmem:[%s3983_s12 + $0x50] sm:$0x1] }
 0x159   : > { %v1595_v0 = vadd.f32 %v1548_v62, %v1463_v52  ;;  %v1323_v3 = vpop.f32.mrf.mxu1  ;;  %v880_v41 = vrot.slane %v878_v30, 4  ;;  %v881_v25 = vrot.slane %v3830_v42, 5  ;;  %v879_v47 = vsel %vm4303_vm7, %v3407_v23, %v878_v30 }
 0x15a   : > { %v1688_v56 = vunpack.c.l.b16 %v879_v47 }
 0x15b   : > { %v1630_v9 = vadd.f32 %v4162_v40, %v1595_v0  ;;  %v882_v51 = vsel %vm4303_vm7, %v880_v41, %v881_v25 }
 0x15c   : > { %v1689_v34 = vunpack.c.l.b16 %v882_v51 }
 0x15d   : > { %1662 = vst.msk [vmem:[%s4171_s22 + $0xb0] sm:$0xff] %vm1011_vm1, %v1630_v9  ;;  %v1133_v17 = vpop.f32.mrf.mxu0 }
 0x15e   : > { %v1322_v16 = vadd.f32 %v1321_v46, %v1133_v17  ;;  %v4488_v8 = vpack.c.b16 %v1689_v34, %v1688_v56  ;;  %v3832_v17 = vld [vmem:[%s3983_s12 + $0x54] sm:$0xf] }
 0x15f   : > { %v1423_v12 = vpop.f32.mrf.mxu2 }
 0x160   : > { %v1550_v63 = vpop.f32.mrf.mxu3  ;;  %3560 = vmatmul.msk.bf16.gmra.mxu0 %vm1011_vm1, %v4442_v45  ;;  %v1465_v35 = vadd.f32 %v1421_v61, %v1322_v16 }
 0x161   : > { %v1596_v22 = vadd.f32 %v1550_v63, %v1464_v20  ;;  %v1326_v24 = vpop.f32.mrf.mxu1  ;;  %v3408_v20 = vrot.slane %v3832_v17, 9  ;;  %v3833_v63 = vld [vmem:[%s3983_s12 + $0x5c] sm:$0x1] }
 0x163   : > { %v1631_v32 = vadd.f32 %v4162_v40, %v1596_v22  ;;  %v888_v22 = vrot.slane %v3833_v63, 5 }
 0x164   : > { %3594 = vmatmul.msk.bf16.gmra.mxu2 %vm1011_vm1, %v4102_v7  ;;  %3577 = vmatmul.msk.bf16.gmra.mxu1 %vm1011_vm1, %v4086_v43 }
 0x165   : > { %1663 = vst.msk [vmem:[%s4171_s22 + $0xb8] sm:$0xff] %vm1011_vm1, %v1631_v32  ;;  %3610 = vmatmul.msk.bf16.gmra.mxu3 %vm1011_vm1, %v4465_v11  ;;  %v1135_v2 = vpop.f32.mrf.mxu0 }
 0x166   : > { %v1324_v38 = vadd.f32 %v1323_v3, %v1135_v2  ;;  %v3831_v3 = vld [vmem:[%s3983_s12 + $0x58] sm:$0xf] }
 0x167   : > { %v1426_v44 = vpop.f32.mrf.mxu2  ;;  %v885_v9 = vrot.slane %v3831_v3, 5 }
 0x168   : > { %v1553_v18 = vpop.f32.mrf.mxu3  ;;  %v1466_v58 = vadd.f32 %v1423_v12, %v1324_v38 }
 0x169   : > { %v1597_v46 = vadd.f32 %v1553_v18, %v1465_v35  ;;  %v1328_v36 = vpop.f32.mrf.mxu1  ;;  %v887_v12 = vrot.slane %v885_v9, 4  ;;  %v886_v30 = vsel %vm4303_vm7, %v3408_v20, %v885_v9  ;;  %v4509_v35 = vld [vmem:[%s5281_s3] ss:$0 sm:$0xff] }
 0x16a   : > { %v1690_v23 = vunpack.c.l.b16 %v886_v30 }
 0x16b   : > { %v1632_v52 = vadd.f32 %v4162_v40, %v1597_v46  ;;  %v889_v32 = vsel %vm4303_vm7, %v887_v12, %v888_v22 }
 0x16c   : > { %v1691_v41 = vunpack.c.l.b16 %v889_v32 }
 0x16d   : > { %1664 = vst.msk [vmem:[%s4171_s22 + $0xc0] sm:$0xff] %vm1011_vm1, %v1632_v52  ;;  %v1138_v48 = vpop.f32.mrf.mxu0 }
 0x16e   : > { %v1327_v0 = vadd.f32 %v1326_v24, %v1138_v48  ;;  %v4516_v51 = vpack.c.b16 %v1691_v41, %v1690_v23 }
 0x16f   : > { %v1428_v59 = vpop.f32.mrf.mxu2 }
 0x170   : > { %v1555_v61 = vpop.f32.mrf.mxu3  ;;  %3561 = vmatmul.msk.bf16.gmra.mxu0 %vm1011_vm1, %v4465_v11  ;;  %v1467_v15 = vadd.f32 %v1426_v44, %v1327_v0 }
 0x171   : > { %v1598_v62 = vadd.f32 %v1555_v61, %v1466_v58  ;;  %v1331_v6 = vpop.f32.mrf.mxu1  ;;  %v3836_v58 = vld [vmem:[%s3983_s12 + $0x60] sm:$0xf] }
 0x173   : > { %v1633_v54 = vadd.f32 %v4162_v40, %v1598_v62  ;;  %v3837_v62 = vld [vmem:[%s3983_s12 + $0x68] sm:$0x1] }
 0x174   : > { %3595 = vmatmul.msk.bf16.gmra.mxu2 %vm1011_vm1, %v4118_v29  ;;  %3578 = vmatmul.msk.bf16.gmra.mxu1 %vm1011_vm1, %v4102_v7  ;;  %v895_v0 = vrot.slane %v3837_v62, 5 }
 0x175   : > { %1665 = vst.msk [vmem:[%s4171_s22 + $0xc8] sm:$0xff] %vm1011_vm1, %v1633_v54  ;;  %3611 = vmatmul.msk.bf16.gmra.mxu3 %vm1011_vm1, %v4488_v8  ;;  %v1140_v50 = vpop.f32.mrf.mxu0 }
 0x176   : > { %v1329_v37 = vadd.f32 %v1328_v36, %v1140_v50  ;;  %v3835_v36 = vld [vmem:[%s3983_s12 + $0x64] sm:$0xf] }
 0x177   : > { %v1431_v40 = vpop.f32.mrf.mxu2  ;;  %v892_v38 = vrot.slane %v3835_v36, 5 }
 0x178   : > { %v1558_v16 = vpop.f32.mrf.mxu3  ;;  %v1468_v25 = vadd.f32 %v1428_v59, %v1329_v37  ;;  %v3409_v59 = vrot.slane %v3836_v58, 9 }
 0x179   : > { %v1599_v24 = vadd.f32 %v1558_v16, %v1467_v15  ;;  %v1333_v27 = vpop.f32.mrf.mxu1  ;;  %v894_v61 = vrot.slane %v892_v38, 4 }
 0x17a   : > { %v893_v15 = vsel %vm4303_vm7, %v3409_v59, %v892_v38 }
 0x17b   : > { %v1634_v2 = vadd.f32 %v4509_v35, %v1599_v24  ;;  %v896_v50 = vsel %vm4303_vm7, %v894_v61, %v895_v0  ;;  %v1692_v12 = vunpack.c.l.b16 %v893_v15 }
 0x17c   : > { %v1693_v63 = vunpack.c.l.b16 %v896_v50 }
 0x17d   : > { %1666 = vst.msk [vmem:[%s4171_s22 + $0xd0] sm:$0xff] %vm1011_vm1, %v1634_v2  ;;  %v1143_v42 = vpop.f32.mrf.mxu0 }
 0x17e   : > { %v1332_v47 = vadd.f32 %v1331_v6, %v1143_v42  ;;  %v4539_v2 = vpack.c.b16 %v1693_v63, %v1692_v12 }
 0x17f   : > { %v1433_v44 = vpop.f32.mrf.mxu2 }
 0x180   : > { %v1560_v18 = vpop.f32.mrf.mxu3  ;;  %3562 = vmatmul.msk.bf16.gmra.mxu0 %vm1011_vm1, %v4488_v8  ;;  %v1469_v34 = vadd.f32 %v1431_v40, %v1332_v47  ;;  %v3840_v47 = vld [vmem:[%s3983_s12 + $0x74] sm:$0x1] }
 0x181   : > { %v1600_v46 = vadd.f32 %v1560_v18, %v1468_v25  ;;  %v1336_v52 = vpop.f32.mrf.mxu1 }
 0x183   : > { %v1635_v56 = vadd.f32 %v4509_v35, %v1600_v46 }
 0x184   : > { %3596 = vmatmul.msk.bf16.gmra.mxu2 %vm1011_vm1, %v4134_v55  ;;  %3579 = vmatmul.msk.bf16.gmra.mxu1 %vm1011_vm1, %v4118_v29 }
 0x185   : > { %1667 = vst.msk [vmem:[%s4171_s22 + $0xd8] sm:$0xff] %vm1011_vm1, %v1635_v56  ;;  %3612 = vmatmul.msk.bf16.gmra.mxu3 %vm1011_vm1, %v4516_v51  ;;  %v1145_v48 = vpop.f32.mrf.mxu0 }
 0x186   : > { %v1334_v20 = vadd.f32 %v1333_v27, %v1145_v48  ;;  %v3838_v27 = vld [vmem:[%s3983_s12 + $0x70] sm:$0xf] }
 0x187   : > { %v1436_v6 = vpop.f32.mrf.mxu2  ;;  %v899_v23 = vrot.slane %v3838_v27, 5 }
 0x188   : > { %v1563_v3 = vpop.f32.mrf.mxu3  ;;  %v1470_v40 = vadd.f32 %v1433_v44, %v1334_v20  ;;  %v3839_v44 = vld [vmem:[%s3983_s12 + $0x6c] sm:$0xf] }
 0x189   : > { %v1601_v9 = vadd.f32 %v1563_v3, %v1469_v34  ;;  %v1338_v54 = vpop.f32.mrf.mxu1  ;;  %v3410_v18 = vrot.slane %v3839_v44, 9  ;;  %v901_v46 = vrot.slane %v899_v23, 4 }
 0x18b   : > { %v1636_v17 = vadd.f32 %v4509_v35, %v1601_v9  ;;  %v900_v48 = vsel %vm4303_vm7, %v3410_v18, %v899_v23 }
 0x18c   : > { %v1694_v62 = vunpack.c.l.b16 %v900_v48 }
 0x18d   : > { %1668 = vst.msk [vmem:[%s4171_s22 + $0xe0] sm:$0xff] %vm1011_vm1, %v1636_v17  ;;  %v1148_v22 = vpop.f32.mrf.mxu0 }
 0x18e   : > { %v1337_v32 = vadd.f32 %v1336_v52, %v1148_v22  ;;  %v902_v52 = vrot.slane %v3840_v47, 5 }
 0x18f   : > { %v1438_v16 = vpop.f32.mrf.mxu2 }
 0x190   : > { %v1565_v24 = vpop.f32.mrf.mxu3  ;;  %3563 = vmatmul.msk.bf16.gmra.mxu0 %vm1011_vm1, %v4516_v51  ;;  %v1471_v42 = vadd.f32 %v1436_v6, %v1337_v32  ;;  %v903_v58 = vsel %vm4303_vm7, %v901_v46, %v902_v52 }
 0x191   : > { %v1602_v30 = vadd.f32 %v1565_v24, %v1470_v40  ;;  %v1876_v37 = vpop.f32.mrf.mxu1  ;;  %v1695_v0 = vunpack.c.l.b16 %v903_v58  ;;  %v3842_v24 = vld [vmem:[%s3983_s12 + $0x78] sm:$0xf] }
 0x193   : > { %v1637_v41 = vadd.f32 %v4509_v35, %v1602_v30  ;;  %v4562_v20 = vpack.c.b16 %v1695_v0, %v1694_v62  ;;  %v3411_v30 = vrot.slane %v3842_v24, 9 }
 0x194   : > { %3597 = vmatmul.msk.bf16.gmra.mxu2 %vm1011_vm1, %v4150_v26  ;;  %3580 = vmatmul.msk.bf16.gmra.mxu1 %vm1011_vm1, %v4134_v55 }
 0x195   : > { %1669 = vst.msk [vmem:[%s4171_s22 + $0xe8] sm:$0xff] %vm1011_vm1, %v1637_v41  ;;  %3613 = vmatmul.msk.bf16.gmra.mxu3 %vm1011_vm1, %v4539_v2  ;;  %v1150_v25 = vpop.f32.mrf.mxu0 }
 0x196   : > { %v1339_v61 = vadd.f32 %v1338_v54, %v1150_v25  ;;  %v3841_v54 = vld [vmem:[%s3983_s12 + $0x7c] sm:$0xf] }
 0x197   : > { %v1970_v36 = vpop.f32.mrf.mxu2  ;;  %v906_v63 = vrot.slane %v3841_v54, 5  ;;  %v3846_v54 = vld [vmem:[%s3983_s12 + $0x8c] sm:$0x1] }
 0x198   : > { %v1568_v38 = vpop.f32.mrf.mxu3  ;;  %v1472_v3 = vadd.f32 %v1438_v16, %v1339_v61 }
 0x199   : > { %v1603_v56 = vadd.f32 %v1568_v38, %v1471_v42  ;;  %v1878_v34 = vpop.f32.mrf.mxu1  ;;  %v908_v32 = vrot.slane %v906_v63, 4  ;;  %v907_v44 = vsel %vm4303_vm7, %v3411_v30, %v906_v63  ;;  %v916_v63 = vrot.slane %v3846_v54, 5 }
 0x19a   : > { %v1696_v52 = vunpack.c.l.b16 %v907_v44 }
 0x19b   : > { %v1638_v59 = vadd.f32 %v4509_v35, %v1603_v56 }
 0x19d   : > { %1670 = vst.msk [vmem:[%s4171_s22 + $0xf0] sm:$0xff] %vm1011_vm1, %v1638_v59  ;;  %v1784_v6 = vpop.f32.mrf.mxu0 }
 0x19e   : > { %v1877_v17 = vadd.f32 %v1876_v37, %v1784_v6  ;;  %v3843_v37 = vld [vmem:[%s3983_s12 + $0x80] sm:$0x1] }
 0x19f   : > { %v1972_v9 = vpop.f32.mrf.mxu2  ;;  %v909_v27 = vrot.slane %v3843_v37, 5 }
 0x1a0   : > { %v1570_v15 = vpop.f32.mrf.mxu3  ;;  %3564 = vmatmul.msk.bf16.gmra.mxu0 %vm1011_vm1, %v4539_v2  ;;  %v2050_v40 = vadd.f32 %v1970_v36, %v1877_v17 }
 0x1a1   : > { %v1604_v50 = vadd.f32 %v1570_v15, %v1472_v3  ;;  %v1881_v12 = vpop.f32.mrf.mxu1  ;;  %v910_v18 = vsel %vm4303_vm7, %v908_v32, %v909_v27 }
 0x1a2   : > { %v1697_v36 = vunpack.c.l.b16 %v910_v18 }
 0x1a3   : > { %v1639_v22 = vadd.f32 %v4509_v35, %v1604_v50  ;;  %v3845_v50 = vld [vmem:[%s3983_s12 + $0x84] sm:$0xf] }
 0x1a4   : > { %3598 = vmatmul.msk.bf16.gmra.mxu2 %vm1011_vm1, %v4177_v4  ;;  %3581 = vmatmul.msk.bf16.gmra.mxu1 %vm1011_vm1, %v4150_v26  ;;  %v4585_v62 = vpack.c.b16 %v1697_v36, %v1696_v52  ;;  %v3412_v17 = vrot.slane %v3845_v50, 9 }
 0x1a5   : > { %1671 = vst.msk [vmem:[%s4171_s22 + $0xf8] sm:$0xff] %vm1011_vm1, %v1639_v22  ;;  %3614 = vmatmul.msk.bf16.gmra.mxu3 %vm1011_vm1, %v4562_v20  ;;  %v1786_v16 = vpop.f32.mrf.mxu0 }
 0x1a6   : > { %v1879_v47 = vadd.f32 %v1878_v34, %v1786_v16  ;;  %v3844_v34 = vld [vmem:[%s3983_s12 + $0x88] sm:$0xf] }
 0x1a7   : > { %v1975_v23 = vpop.f32.mrf.mxu2  ;;  %v913_v6 = vrot.slane %v3844_v34, 5 }
 0x1a8   : > { %v2102_v41 = vpop.f32.mrf.mxu3  ;;  %v2051_v56 = vadd.f32 %v1972_v9, %v1879_v47 }
 0x1a9   : > { %v2182_v42 = vadd.f32 %v2102_v41, %v2050_v40  ;;  %v1883_v25 = vpop.f32.mrf.mxu1  ;;  %v914_v30 = vsel %vm4303_vm7, %v3412_v17, %v913_v6 }
 0x1ab   : > { %v2214_v46 = vadd.f32 %v4509_v35, %v2182_v42 }
 0x1ad   : > { %2246 = vst.msk [vmem:[%s4171_s22 + $0x100] sm:$0xff] %vm1011_vm1, %v2214_v46  ;;  %v1789_v38 = vpop.f32.mrf.mxu0 }
 0x1ae   : > { %v1882_v61 = vadd.f32 %v1881_v12, %v1789_v38  ;;  %v915_v12 = vrot.slane %v913_v6, 4  ;;  %v3849_v6 = vld [vmem:[%s3983_s12 + $0x98] sm:$0x1] }
 0x1af   : > { %v1977_v48 = vpop.f32.mrf.mxu2 }
 0x1b0   : > { %v2104_v58 = vpop.f32.mrf.mxu3  ;;  %3565 = vmatmul.msk.bf16.gmra.mxu0 %vm1011_vm1, %v4562_v20  ;;  %v2052_v9 = vadd.f32 %v1975_v23, %v1882_v61  ;;  %v917_v32 = vsel %vm4303_vm7, %v915_v12, %v916_v63  ;;  %v1698_v23 = vunpack.c.l.b16 %v914_v30  ;;  %v3848_v61 = vld [vmem:[%s3983_s12 + $0x90] sm:$0xf] }
 0x1b1   : > { %v2183_v59 = vadd.f32 %v2104_v58, %v2051_v56  ;;  %v1886_v0 = vpop.f32.mrf.mxu1  ;;  %v1699_v41 = vunpack.c.l.b16 %v917_v32 }
 0x1b3   : > { %v2215_v3 = vadd.f32 %v4509_v35, %v2183_v59  ;;  %v4608_v36 = vpack.c.b16 %v1699_v41, %v1698_v23 }
 0x1b4   : > { %3599 = vmatmul.msk.bf16.gmra.mxu2 %vm1011_vm1, %v4199_v53  ;;  %3582 = vmatmul.msk.bf16.gmra.mxu1 %vm1011_vm1, %v4177_v4 }
 0x1b5   : > { %2247 = vst.msk [vmem:[%s4171_s22 + $0x108] sm:$0xff] %vm1011_vm1, %v2215_v3  ;;  %3615 = vmatmul.msk.bf16.gmra.mxu3 %vm1011_vm1, %v4585_v62  ;;  %v1791_v15 = vpop.f32.mrf.mxu0  ;;  %v923_v3 = vrot.slane %v3849_v6, 5 }
 0x1b6   : > { %v1884_v27 = vadd.f32 %v1883_v25, %v1791_v15  ;;  %v3847_v25 = vld [vmem:[%s3983_s12 + $0x94] sm:$0xf] }
 0x1b7   : > { %v1980_v22 = vpop.f32.mrf.mxu2  ;;  %v920_v56 = vrot.slane %v3847_v25, 5 }
 0x1b8   : > { %v2107_v40 = vpop.f32.mrf.mxu3  ;;  %v2053_v44 = vadd.f32 %v1977_v48, %v1884_v27 }
 0x1b9   : > { %v2184_v16 = vadd.f32 %v2107_v40, %v2052_v9  ;;  %v1888_v24 = vpop.f32.mrf.mxu1  ;;  %v922_v34 = vrot.slane %v920_v56, 4 }
 0x1bb   : > { %v2216_v37 = vadd.f32 %v4509_v35, %v2184_v16  ;;  %v924_v54 = vsel %vm4303_vm7, %v922_v34, %v923_v3 }
 0x1bc   : > { %v1701_v16 = vunpack.c.l.b16 %v924_v54 }
 0x1bd   : > { %2248 = vst.msk [vmem:[%s4171_s22 + $0x110] sm:$0xff] %vm1011_vm1, %v2216_v37  ;;  %v1794_v42 = vpop.f32.mrf.mxu0 }
 0x1be   : > { %v1887_v52 = vadd.f32 %v1886_v0, %v1794_v42  ;;  %v3413_v0 = vrot.slane %v3848_v61, 9 }
 0x1bf   : > { %v1982_v18 = vpop.f32.mrf.mxu2 }
 0x1c0   : > { %v2109_v46 = vpop.f32.mrf.mxu3  ;;  %3566 = vmatmul.msk.bf16.gmra.mxu0 %vm1011_vm1, %v4585_v62  ;;  %v2054_v48 = vadd.f32 %v1980_v22, %v1887_v52  ;;  %v921_v12 = vsel %vm4303_vm7, %v3413_v0, %v920_v56 }
 0x1c1   : > { %v2185_v47 = vadd.f32 %v2109_v46, %v2053_v44  ;;  %v1891_v38 = vpop.f32.mrf.mxu1  ;;  %v1700_v40 = vunpack.c.l.b16 %v921_v12 }
 0x1c3   : > { %v2217_v58 = vadd.f32 %v4509_v35, %v2185_v47  ;;  %v4631_v42 = vpack.c.b16 %v1701_v16, %v1700_v40 }
 0x1c4   : > { %3600 = vmatmul.msk.bf16.gmra.mxu2 %vm1011_vm1, %v4224_v31  ;;  %3583 = vmatmul.msk.bf16.gmra.mxu1 %vm1011_vm1, %v4199_v53 }
 0x1c5   : > { %2249 = vst.msk [vmem:[%s4171_s22 + $0x118] sm:$0xff] %vm1011_vm1, %v2217_v58  ;;  %3616 = vmatmul.msk.bf16.gmra.mxu3 %vm1011_vm1, %v4608_v36  ;;  %v1796_v59 = vpop.f32.mrf.mxu0  ;;  %v3852_v58 = vld [vmem:[%s3983_s12 + $0xa4] sm:$0x1] }
 0x1c6   : > { %v1889_v22 = vadd.f32 %v1888_v24, %v1796_v59  ;;  %v3850_v24 = vld [vmem:[%s3983_s12 + $0xa0] sm:$0xf] }
 0x1c7   : > { %v1985_v9 = vpop.f32.mrf.mxu2  ;;  %v927_v46 = vrot.slane %v3850_v24, 5  ;;  %v3854_v24 = vld [vmem:[%s3983_s12 + $0xa8] sm:$0xf] }
 0x1c8   : > { %v2112_v15 = vpop.f32.mrf.mxu3  ;;  %v2055_v32 = vadd.f32 %v1982_v18, %v1889_v22 }
 0x1c9   : > { %v2186_v50 = vadd.f32 %v2112_v15, %v2054_v48  ;;  %v1893_v17 = vpop.f32.mrf.mxu1  ;;  %v929_v56 = vrot.slane %v927_v46, 4  ;;  %v930_v48 = vrot.slane %v3852_v58, 5 }
 0x1cb   : > { %v2218_v63 = vadd.f32 %v4509_v35, %v2186_v50  ;;  %v931_v3 = vsel %vm4303_vm7, %v929_v56, %v930_v48 }
 0x1cc   : > { %v1703_v12 = vunpack.c.l.b16 %v931_v3 }
 0x1cd   : > { %2250 = vst.msk [vmem:[%s4171_s22 + $0x120] sm:$0xff] %vm1011_vm1, %v2218_v63  ;;  %v1799_v30 = vpop.f32.mrf.mxu0 }
 0x1ce   : > { %v1892_v41 = vadd.f32 %v1891_v38, %v1799_v30  ;;  %v3851_v38 = vld [vmem:[%s3983_s12 + $0x9c] sm:$0xf] }
 0x1cf   : > { %v1987_v37 = vpop.f32.mrf.mxu2  ;;  %v3414_v25 = vrot.slane %v3851_v38, 9 }
 0x1d0   : > { %v2114_v27 = vpop.f32.mrf.mxu3  ;;  %3567 = vmatmul.msk.bf16.gmra.mxu0 %vm1011_vm1, %v4608_v36  ;;  %v2056_v18 = vadd.f32 %v1985_v9, %v1892_v41 }
 0x1d1   : > { %v2187_v23 = vadd.f32 %v2114_v27, %v2055_v32  ;;  %v1896_v44 = vpop.f32.mrf.mxu1  ;;  %v928_v6 = vsel %vm4303_vm7, %v3414_v25, %v927_v46  ;;  %v3415_v46 = vrot.slane %v3854_v24, 9 }
 0x1d2   : > { %v1702_v50 = vunpack.c.l.b16 %v928_v6 }
 0x1d3   : > { %v2219_v47 = vadd.f32 %v4509_v35, %v2187_v23 }
 0x1d4   : > { %3601 = vmatmul.msk.bf16.gmra.mxu2 %vm1011_vm1, %v4246_v14  ;;  %3584 = vmatmul.msk.bf16.gmra.mxu1 %vm1011_vm1, %v4224_v31  ;;  %v4654_v32 = vpack.c.b16 %v1703_v12, %v1702_v50 }
 0x1d5   : > { %2251 = vst.msk [vmem:[%s4171_s22 + $0x128] sm:$0xff] %vm1011_vm1, %v2219_v47  ;;  %3617 = vmatmul.msk.bf16.gmra.mxu3 %vm1011_vm1, %v4631_v42  ;;  %v1801_v52 = vpop.f32.mrf.mxu0 }
 0x1d6   : > { %v1894_v9 = vadd.f32 %v1893_v17, %v1801_v52  ;;  %v3853_v17 = vld [vmem:[%s3983_s12 + $0xac] sm:$0xf] }
 0x1d7   : > { %v1990_v59 = vpop.f32.mrf.mxu2  ;;  %v934_v23 = vrot.slane %v3853_v17, 5 }
 0x1d8   : > { %v2117_v61 = vpop.f32.mrf.mxu3  ;;  %v2057_v63 = vadd.f32 %v1987_v37, %v1894_v9 }
 0x1d9   : > { %v2188_v0 = vadd.f32 %v2117_v61, %v2056_v18  ;;  %v1898_v34 = vpop.f32.mrf.mxu1  ;;  %v936_v47 = vrot.slane %v934_v23, 4  ;;  %v3855_v18 = vld [vmem:[%s3983_s12 + $0xb0] sm:$0x1]  ;;  %v935_v48 = vsel %vm4303_vm7, %v3415_v46, %v934_v23  ;;  %v3857_v23 = vld [vmem:[%s3983_s12 + $0xb4] sm:$0xf] }
 0x1da   : > { %v937_v52 = vrot.slane %v3855_v18, 5  ;;  %v1704_v6 = vunpack.c.l.b16 %v935_v48 }
 0x1db   : > { %v2220_v15 = vadd.f32 %v4509_v35, %v2188_v0 }
 0x1dc   : > { %v938_v61 = vsel %vm4303_vm7, %v936_v47, %v937_v52 }
 0x1dd   : > { %2252 = vst.msk [vmem:[%s4171_s22 + $0x130] sm:$0xff] %vm1011_vm1, %v2220_v15  ;;  %v1804_v54 = vpop.f32.mrf.mxu0  ;;  %v1705_v3 = vunpack.c.l.b16 %v938_v61 }
 0x1de   : > { %v1897_v30 = vadd.f32 %v1896_v44, %v1804_v54 }
 0x1df   : > { %v1992_v22 = vpop.f32.mrf.mxu2 }
 0x1e0   : > { %v2119_v40 = vpop.f32.mrf.mxu3  ;;  %3568 = vmatmul.msk.bf16.gmra.mxu0 %vm1011_vm1, %v4631_v42  ;;  %v2058_v37 = vadd.f32 %v1990_v59, %v1897_v30 }
 0x1e1   : > { %v2189_v16 = vadd.f32 %v2119_v40, %v2057_v63  ;;  %v1901_v27 = vpop.f32.mrf.mxu1  ;;  %v4677_v40 = vpack.c.b16 %v1705_v3, %v1704_v6 }
 0x1e3   : > { %v2221_v41 = vadd.f32 %v4509_v35, %v2189_v16 }
 0x1e4   : > { %3602 = vmatmul.msk.bf16.gmra.mxu2 %vm1011_vm1, %v4271_v21  ;;  %3585 = vmatmul.msk.bf16.gmra.mxu1 %vm1011_vm1, %v4246_v14 }
 0x1e5   : > { %2253 = vst.msk [vmem:[%s4171_s22 + $0x138] sm:$0xff] %vm1011_vm1, %v2221_v41  ;;  %3618 = vmatmul.msk.bf16.gmra.mxu3 %vm1011_vm1, %v4654_v32  ;;  %v1806_v44 = vpop.f32.mrf.mxu0  ;;  %v3416_v41 = vrot.slane %v3857_v23, 9 }
 0x1e6   : > { %v1899_v59 = vadd.f32 %v1898_v34, %v1806_v44  ;;  %v3856_v34 = vld [vmem:[%s3983_s12 + $0xb8] sm:$0xf]  ;;  %v3858_v44 = vld [vmem:[%s3983_s12 + $0xbc] sm:$0x1] }
 0x1e7   : > { %v1995_v38 = vpop.f32.mrf.mxu2  ;;  %v941_v30 = vrot.slane %v3856_v34, 5  ;;  %v944_v24 = vrot.slane %v3858_v44, 5 }
 0x1e8   : > { %v2122_v25 = vpop.f32.mrf.mxu3  ;;  %v2059_v9 = vadd.f32 %v1992_v22, %v1899_v59 }
 0x1e9   : > { %v2190_v56 = vadd.f32 %v2122_v25, %v2058_v37  ;;  %v1903_v58 = vpop.f32.mrf.mxu1  ;;  %v943_v37 = vrot.slane %v941_v30, 4  ;;  %v942_v25 = vsel %vm4303_vm7, %v3416_v41, %v941_v30  ;;  %v3728_v41 = vld [vmem:[%s5280_s2 + $0x1c] sm:$0x3] }
 0x1ea   : > { %v1706_v61 = vunpack.c.l.b16 %v942_v25 }
 0x1eb   : > { %v2222_v0 = vadd.f32 %v4509_v35, %v2190_v56  ;;  %v945_v56 = vsel %vm4303_vm7, %v943_v37, %v944_v24  ;;  %v3745_v37 = vld [vmem:[%s5280_s2 + $0x1e] sm:$0x3]  ;;  %v2985_v24 = vsel %vm1060_vm0, %v3728_v41, 0 }
 0x1ec   : > { %2994 = vmatpush.bf16.msrb.mxu2 %v2985_v24 }
 0x1ed   : > { %2254 = vst.msk [vmem:[%s4171_s22 + $0x140] sm:$0xff] %vm1011_vm1, %v2222_v0  ;;  %v1809_v15 = vpop.f32.mrf.mxu0  ;;  %v1707_v0 = vunpack.c.l.b16 %v945_v56 }
 0x1ee   : > { %v1902_v63 = vadd.f32 %v1901_v27, %v1809_v15 }
 0x1ef   : > { %v1997_v50 = vpop.f32.mrf.mxu2  ;;  %v4701_v34 = vpack.c.b16 %v1707_v0, %v1706_v61 }
 0x1f0   : > { %v2124_v12 = vpop.f32.mrf.mxu3  ;;  %3569 = vmatmul.msk.bf16.gmra.mxu0 %vm1011_vm1, %v4654_v32  ;;  %v2060_v22 = vadd.f32 %v1995_v38, %v1902_v63 }
 0x1f1   : > { %v2191_v54 = vadd.f32 %v2124_v12, %v2059_v9  ;;  %v1906_v16 = vpop.f32.mrf.mxu1  ;;  %v3859_v9 = vld [vmem:[%s4276_s25 + $0x4] sm:$0xf] }
 0x1f2   : > { %v948_v12 = vrot.slane %v3859_v9, 5 }
 0x1f3   : > { %v2223_v17 = vadd.f32 %v4509_v35, %v2191_v54 }
 0x1f4   : > { %3603 = vmatmul.msk.bf16.gmra.mxu2 %vm1011_vm1, %v4301_v10  ;;  %3586 = vmatmul.msk.bf16.gmra.mxu1 %vm1011_vm1, %v4271_v21 }
 0x1f5   : > { %2255 = vst.msk [vmem:[%s4171_s22 + $0x148] sm:$0xff] %vm1011_vm1, %v2223_v17  ;;  %3619 = vmatmul.msk.bf16.gmra.mxu3 %vm1011_vm1, %v4677_v40  ;;  %v1811_v27 = vpop.f32.mrf.mxu0 }
 0x1f6   : > { %v1904_v38 = vadd.f32 %v1903_v58, %v1811_v27  ;;  %v3861_v27 = vld [vmem:[%s4276_s25 + $0x8] sm:$0x1] }
 0x1f7   : > { %v2000_v46 = vpop.f32.mrf.mxu2  ;;  %v951_v23 = vrot.slane %v3861_v27, 5 }
 0x1f8   : > { %v2127_v47 = vpop.f32.mrf.mxu3  ;;  %v2061_v6 = vadd.f32 %v1997_v50, %v1904_v38  ;;  %v3860_v50 = vld [vmem:[%s4276_s25] sm:$0xf] }
 0x1f9   : > { %v2192_v18 = vadd.f32 %v2127_v47, %v2060_v22  ;;  %v1908_v52 = vpop.f32.mrf.mxu1  ;;  %v3417_v17 = vrot.slane %v3860_v50, 9  ;;  %v950_v22 = vrot.slane %v948_v12, 4  ;;  %v3117_v47 = vsel %vm1060_vm0, %v3745_v37, 0 }
 0x1fa   : > { %3126 = vmatpush.bf16.msrb.mxu3 %v3117_v47 }
 0x1fb   : > { %v2224_v48 = vadd.f32 %v4509_v35, %v2192_v18  ;;  %v3695_v18 = vld [vmem:[%s5280_s2 + $0x1a] sm:$0x3] }
 0x1fc   : > { %v2799_v56 = vsel %vm1060_vm0, %v3695_v18, 0 }
 0x1fd   : > { %2256 = vst.msk [vmem:[%s4171_s22 + $0x150] sm:$0xff] %vm1011_vm1, %v2224_v48  ;;  %v1814_v59 = vpop.f32.mrf.mxu0  ;;  %2808 = vmatpush.bf16.msrb.mxu0 %v2799_v56 }
 0x1fe   : > { %v1907_v63 = vadd.f32 %v1906_v16, %v1814_v59  ;;  %v949_v59 = vsel %vm4303_vm7, %v3417_v17, %v948_v12 }
 0x1ff   : > { %v2002_v3 = vpop.f32.mrf.mxu2 }
 0x200   : > { %v2129_v15 = vpop.f32.mrf.mxu3  ;;  %3570 = vmatmul.msk.bf16.gmra.mxu0 %vm1011_vm1, %v4677_v40  ;;  %v2062_v16 = vadd.f32 %v2000_v46, %v1907_v63  ;;  %v3694_v46 = vld [vmem:[%s5280_s2 + $0x18] sm:$0x3] }
 0x201   : > { %v2193_v54 = vadd.f32 %v2129_v15, %v2061_v6  ;;  %v1911_v58 = vpop.f32.mrf.mxu1  ;;  %v2891_v48 = vsel %vm1060_vm0, %v3694_v46, 0  ;;  %v952_v6 = vsel %vm4303_vm7, %v950_v22, %v951_v23  ;;  %v3862_v22 = vld [vmem:[%s3983_s12 + $0x18] sm:$0xff]  ;;  %v3863_v23 = vld [vmem:[%s3983_s12 + $0xc] sm:$0xff] }
 0x202   : > { %2900 = vmatpush.bf16.msrb.mxu1 %v2891_v48  ;;  %v2085_v63 = vunpack.c.l.b16 %v952_v6 }
 0x203   : > { %v2225_v30 = vadd.f32 %v4509_v35, %v2193_v54  ;;  %v2084_v54 = vunpack.c.l.b16 %v949_v59 }
 0x204   : > { %3604 = vmatmul.msk.bf16.gmra.mxu2 %vm1011_vm1, %v4350_v5  ;;  %3587 = vmatmul.msk.bf16.gmra.mxu1 %vm1011_vm1, %v4301_v10 }
 0x205   : > { %2257 = vst.msk [vmem:[%s4171_s22 + $0x158] sm:$0xff] %vm1011_vm1, %v2225_v30  ;;  %3620 = vmatmul.msk.bf16.gmra.mxu3 %vm1011_vm1, %v4701_v34  ;;  %v1816_v44 = vpop.f32.mrf.mxu0  ;;  %v4739_v12 = vpack.c.b16 %v2085_v63, %v2084_v54  ;;  %v3864_v54 = vld [vmem:[%s3983_s12 + $0x24] sm:$0xff] }
 0x206   : > { %v1909_v9 = vadd.f32 %v1908_v52, %v1816_v44 }
 0x207   : > { %v2005_v25 = vpop.f32.mrf.mxu2 }
 0x208   : > { %v2132_v38 = vpop.f32.mrf.mxu3  ;;  %v2063_v50 = vadd.f32 %v2002_v3, %v1909_v9 }
 0x209   : > { %v2194_v61 = vadd.f32 %v2132_v38, %v2062_v16  ;;  %v1913_v0 = vpop.f32.mrf.mxu1 }
 0x20b   : > { %v2226_v15 = vadd.f32 %v4509_v35, %v2194_v61 }
 0x20d   : > { %2258 = vst.msk [vmem:[%s4171_s22 + $0x160] sm:$0xff] %vm1011_vm1, %v2226_v15  ;;  %v1819_v30 = vpop.f32.mrf.mxu0 }
 0x20e   : > { %v1912_v37 = vadd.f32 %v1911_v58, %v1819_v30 }
 0x20f   : > { %v2007_v16 = vpop.f32.mrf.mxu2 }
 0x210   : > { %v2134_v27 = vpop.f32.mrf.mxu3  ;;  %3571 = vmatmul.msk.bf16.gmra.mxu0 %vm1011_vm1, %v4701_v34  ;;  %v2064_v3 = vadd.f32 %v2005_v25, %v1912_v37 }
 0x211   : > { %v2195_v41 = vadd.f32 %v2134_v27, %v2063_v50  ;;  %v1916_v17 = vpop.f32.mrf.mxu1 }
 0x213   : > { %v2227_v52 = vadd.f32 %v4509_v35, %v2195_v41 }
 0x214   : > { %3661 = vmatmul.msk.bf16.vlgmr.msra.gmra.mxu2 %vm1011_vm1, %v3862_v22  ;;  %3640 = vmatmul.msk.bf16.vlgmr.msra.gmra.mxu1 %vm1011_vm1, %v3863_v23 }
 0x215   : > { %2259 = vst.msk [vmem:[%s4171_s22 + $0x168] sm:$0xff] %vm1011_vm1, %v2227_v52  ;;  %3621 = vmatmul.msk.bf16.gmra.mxu3 %vm1011_vm1, %v4739_v12  ;;  %v1821_v58 = vpop.f32.mrf.mxu0 }
 0x216   : > { %v1914_v56 = vadd.f32 %v1913_v0, %v1821_v58 }
 0x217   : > { %v2010_v44 = vpop.f32.mrf.mxu2 }
 0x218   : > { %v2137_v24 = vpop.f32.mrf.mxu3  ;;  %v2065_v38 = vadd.f32 %v2007_v16, %v1914_v56 }
 0x219   : > { %v2196_v47 = vadd.f32 %v2137_v24, %v2064_v3  ;;  %v1918_v18 = vpop.f32.mrf.mxu1 }
 0x21b   : > { %v2228_v46 = vadd.f32 %v4509_v35, %v2196_v47  ;;  %v3865_v47 = vld [vmem:[%s3983_s12 + $0x30] sm:$0xff] }
 0x21d   : > { %2260 = vst.msk [vmem:[%s4171_s22 + $0x170] sm:$0xff] %vm1011_vm1, %v2228_v46  ;;  %v1824_v48 = vpop.f32.mrf.mxu0 }
 0x21e   : > { %v1917_v15 = vadd.f32 %v1916_v17, %v1824_v48 }
 0x21f   : > { %v2012_v61 = vpop.f32.mrf.mxu2 }
 0x220   : > { %v2139_v59 = vpop.f32.mrf.mxu3  ;;  %3624 = vmatmul.msk.bf16.vlgmr.msra.gmra.mxu0 %vm1011_vm1, %v4021_v13  ;;  %v2066_v0 = vadd.f32 %v2010_v44, %v1917_v15 }
 0x221   : > { %v2197_v6 = vadd.f32 %v2139_v59, %v2065_v38  ;;  %v1921_v25 = vpop.f32.mrf.mxu1 }
 0x223   : > { %v2229_v9 = vadd.f32 %v4509_v35, %v2197_v6 }
 0x224   : > { %3662 = vmatmul.msk.bf16.gmra.mxu2 %vm1011_vm1, %v3864_v54  ;;  %3641 = vmatmul.msk.bf16.gmra.mxu1 %vm1011_vm1, %v3862_v22 }
 0x225   : > { %2261 = vst.msk [vmem:[%s4171_s22 + $0x178] sm:$0xff] %vm1011_vm1, %v2229_v9  ;;  %3678 = vmatmul.msk.bf16.vlgmr.msra.gmra.mxu3 %vm1011_vm1, %v4038_v33  ;;  %v1826_v63 = vpop.f32.mrf.mxu0 }
 0x226   : > { %v1919_v37 = vadd.f32 %v1918_v18, %v1826_v63 }
 0x227   : > { %v2015_v30 = vpop.f32.mrf.mxu2 }
 0x228   : > { %v2142_v50 = vpop.f32.mrf.mxu3  ;;  %v2067_v52 = vadd.f32 %v2012_v61, %v1919_v37 }
 0x229   : > { %v2198_v16 = vadd.f32 %v2142_v50, %v2066_v0  ;;  %v1923_v27 = vpop.f32.mrf.mxu1 }
 0x22b   : > { %v2230_v41 = vadd.f32 %v4509_v35, %v2198_v16  ;;  %v3866_v16 = vld [vmem:[%s3983_s12 + $0x3c] sm:$0xff] }
 0x22d   : > { %2262 = vst.msk [vmem:[%s4171_s22 + $0x180] sm:$0xff] %vm1011_vm1, %v2230_v41  ;;  %v1829_v17 = vpop.f32.mrf.mxu0 }
 0x22e   : > { %v1922_v58 = vadd.f32 %v1921_v25, %v1829_v17 }
 0x22f   : > { %v2017_v22 = vpop.f32.mrf.mxu2 }
 0x230   : > { %v2144_v23 = vpop.f32.mrf.mxu3  ;;  %3625 = vmatmul.msk.bf16.gmra.mxu0 %vm1011_vm1, %v4038_v33  ;;  %v2068_v18 = vadd.f32 %v2015_v30, %v1922_v58 }
 0x231   : > { %v2199_v3 = vadd.f32 %v2144_v23, %v2067_v52  ;;  %v1926_v44 = vpop.f32.mrf.mxu1 }
 0x233   : > { %v2231_v24 = vadd.f32 %v4509_v35, %v2199_v3 }
 0x234   : > { %3663 = vmatmul.msk.bf16.gmra.mxu2 %vm1011_vm1, %v3865_v47  ;;  %3642 = vmatmul.msk.bf16.gmra.mxu1 %vm1011_vm1, %v3864_v54 }
 0x235   : > { %2263 = vst.msk [vmem:[%s4171_s22 + $0x188] sm:$0xff] %vm1011_vm1, %v2231_v24  ;;  %3679 = vmatmul.msk.bf16.gmra.mxu3 %vm1011_vm1, %v4054_v60  ;;  %v1831_v46 = vpop.f32.mrf.mxu0 }
 0x236   : > { %v1924_v6 = vadd.f32 %v1923_v27, %v1831_v46 }
 0x237   : > { %v2020_v56 = vpop.f32.mrf.mxu2 }
 0x238   : > { %v2147_v48 = vpop.f32.mrf.mxu3  ;;  %v2069_v25 = vadd.f32 %v2017_v22, %v1924_v6 }
 0x239   : > { %v2200_v38 = vadd.f32 %v2147_v48, %v2068_v18  ;;  %v1928_v61 = vpop.f32.mrf.mxu1 }
 0x23b   : > { %v2232_v59 = vadd.f32 %v4509_v35, %v2200_v38  ;;  %v3867_v38 = vld [vmem:[%s3983_s12 + $0x48] sm:$0xff] }
 0x23d   : > { %2264 = vst.msk [vmem:[%s4171_s22 + $0x190] sm:$0xff] %vm1011_vm1, %v2232_v59  ;;  %v1834_v15 = vpop.f32.mrf.mxu0 }
 0x23e   : > { %v1927_v63 = vadd.f32 %v1926_v44, %v1834_v15 }
 0x23f   : > { %v2022_v9 = vpop.f32.mrf.mxu2 }
 0x240   : > { %v2149_v54 = vpop.f32.mrf.mxu3  ;;  %3626 = vmatmul.msk.bf16.gmra.mxu0 %vm1011_vm1, %v4054_v60  ;;  %v2070_v27 = vadd.f32 %v2020_v56, %v1927_v63 }
 0x241   : > { %v2201_v0 = vadd.f32 %v2149_v54, %v2069_v25  ;;  %v1931_v30 = vpop.f32.mrf.mxu1 }
 0x243   : > { %v2233_v50 = vadd.f32 %v4509_v35, %v2201_v0 }
 0x244   : > { %3664 = vmatmul.msk.bf16.gmra.mxu2 %vm1011_vm1, %v3866_v16  ;;  %3643 = vmatmul.msk.bf16.gmra.mxu1 %vm1011_vm1, %v3865_v47 }
 0x245   : > { %2265 = vst.msk [vmem:[%s4171_s22 + $0x198] sm:$0xff] %vm1011_vm1, %v2233_v50  ;;  %3680 = vmatmul.msk.bf16.gmra.mxu3 %vm1011_vm1, %v4070_v19  ;;  %v1836_v41 = vpop.f32.mrf.mxu0 }
 0x246   : > { %v1929_v3 = vadd.f32 %v1928_v61, %v1836_v41 }
 0x247   : > { %v2025_v37 = vpop.f32.mrf.mxu2 }
 0x248   : > { %v2152_v17 = vpop.f32.mrf.mxu3  ;;  %v2071_v44 = vadd.f32 %v2022_v9, %v1929_v3 }
 0x249   : > { %v2202_v52 = vadd.f32 %v2152_v17, %v2070_v27  ;;  %v1933_v22 = vpop.f32.mrf.mxu1 }
 0x24b   : > { %v2234_v23 = vadd.f32 %v4509_v35, %v2202_v52  ;;  %v3868_v52 = vld [vmem:[%s3983_s12 + $0x54] sm:$0xff] }
 0x24d   : > { %2266 = vst.msk [vmem:[%s4171_s22 + $0x1a0] sm:$0xff] %vm1011_vm1, %v2234_v23  ;;  %v1839_v58 = vpop.f32.mrf.mxu0 }
 0x24e   : > { %v1932_v46 = vadd.f32 %v1931_v30, %v1839_v58 }
 0x24f   : > { %v2027_v24 = vpop.f32.mrf.mxu2 }
 0x250   : > { %v2154_v47 = vpop.f32.mrf.mxu3  ;;  %3627 = vmatmul.msk.bf16.gmra.mxu0 %vm1011_vm1, %v4070_v19  ;;  %v2072_v61 = vadd.f32 %v2025_v37, %v1932_v46 }
 0x251   : > { %v2203_v18 = vadd.f32 %v2154_v47, %v2071_v44  ;;  %v1936_v56 = vpop.f32.mrf.mxu1 }
 0x253   : > { %v2235_v48 = vadd.f32 %v4509_v35, %v2203_v18 }
 0x254   : > { %3665 = vmatmul.msk.bf16.gmra.mxu2 %vm1011_vm1, %v3867_v38  ;;  %3644 = vmatmul.msk.bf16.gmra.mxu1 %vm1011_vm1, %v3866_v16 }
 0x255   : > { %2267 = vst.msk [vmem:[%s4171_s22 + $0x1a8] sm:$0xff] %vm1011_vm1, %v2235_v48  ;;  %3681 = vmatmul.msk.bf16.gmra.mxu3 %vm1011_vm1, %v4086_v43  ;;  %v1841_v59 = vpop.f32.mrf.mxu0 }
 0x256   : > { %v1934_v0 = vadd.f32 %v1933_v22, %v1841_v59 }
 0x257   : > { %v2030_v6 = vpop.f32.mrf.mxu2 }
 0x258   : > { %v2157_v15 = vpop.f32.mrf.mxu3  ;;  %v2073_v30 = vadd.f32 %v2027_v24, %v1934_v0 }
 0x259   : > { %v2204_v25 = vadd.f32 %v2157_v15, %v2072_v61  ;;  %v1938_v9 = vpop.f32.mrf.mxu1 }
 0x25b   : > { %v2236_v54 = vadd.f32 %v4509_v35, %v2204_v25  ;;  %v3869_v25 = vld [vmem:[%s3983_s12 + $0x60] sm:$0xff] }
 0x25d   : > { %2268 = vst.msk [vmem:[%s4171_s22 + $0x1b0] sm:$0xff] %vm1011_vm1, %v2236_v54  ;;  %v1844_v63 = vpop.f32.mrf.mxu0 }
 0x25e   : > { %v1937_v41 = vadd.f32 %v1936_v56, %v1844_v63 }
 0x25f   : > { %v2032_v50 = vpop.f32.mrf.mxu2 }
 0x260   : > { %v2159_v16 = vpop.f32.mrf.mxu3  ;;  %3628 = vmatmul.msk.bf16.gmra.mxu0 %vm1011_vm1, %v4086_v43  ;;  %v2074_v22 = vadd.f32 %v2030_v6, %v1937_v41 }
 0x261   : > { %v2205_v27 = vadd.f32 %v2159_v16, %v2073_v30  ;;  %v1941_v37 = vpop.f32.mrf.mxu1 }
 0x263   : > { %v2237_v17 = vadd.f32 %v4509_v35, %v2205_v27 }
 0x264   : > { %3666 = vmatmul.msk.bf16.gmra.mxu2 %vm1011_vm1, %v3868_v52  ;;  %3645 = vmatmul.msk.bf16.gmra.mxu1 %vm1011_vm1, %v3867_v38 }
 0x265   : > { %2269 = vst.msk [vmem:[%s4171_s22 + $0x1b8] sm:$0xff] %vm1011_vm1, %v2237_v17  ;;  %3682 = vmatmul.msk.bf16.gmra.mxu3 %vm1011_vm1, %v4102_v7  ;;  %v1846_v23 = vpop.f32.mrf.mxu0 }
 0x266   : > { %v1939_v18 = vadd.f32 %v1938_v9, %v1846_v23 }
 0x267   : > { %v2035_v3 = vpop.f32.mrf.mxu2 }
 0x268   : > { %v2162_v58 = vpop.f32.mrf.mxu3  ;;  %v2075_v56 = vadd.f32 %v2032_v50, %v1939_v18 }
 0x269   : > { %v2206_v44 = vadd.f32 %v2162_v58, %v2074_v22  ;;  %v1943_v24 = vpop.f32.mrf.mxu1 }
 0x26b   : > { %v2238_v47 = vadd.f32 %v4509_v35, %v2206_v44  ;;  %v3870_v44 = vld [vmem:[%s3983_s12 + $0x6c] sm:$0xff] }
 0x26d   : > { %2270 = vst.msk [vmem:[%s4171_s22 + $0x1c0] sm:$0xff] %vm1011_vm1, %v2238_v47  ;;  %v1849_v46 = vpop.f32.mrf.mxu0 }
 0x26e   : > { %v1942_v59 = vadd.f32 %v1941_v37, %v1849_v46 }
 0x26f   : > { %v2037_v48 = vpop.f32.mrf.mxu2 }
 0x270   : > { %v2164_v38 = vpop.f32.mrf.mxu3  ;;  %3629 = vmatmul.msk.bf16.gmra.mxu0 %vm1011_vm1, %v4102_v7  ;;  %v2076_v9 = vadd.f32 %v2035_v3, %v1942_v59 }
 0x271   : > { %v2207_v61 = vadd.f32 %v2164_v38, %v2075_v56  ;;  %v1946_v6 = vpop.f32.mrf.mxu1 }
 0x273   : > { %v2239_v15 = vadd.f32 %v4509_v35, %v2207_v61 }
 0x274   : > { %3667 = vmatmul.msk.bf16.gmra.mxu2 %vm1011_vm1, %v3869_v25  ;;  %3646 = vmatmul.msk.bf16.gmra.mxu1 %vm1011_vm1, %v3868_v52 }
 0x275   : > { %2271 = vst.msk [vmem:[%s4171_s22 + $0x1c8] sm:$0xff] %vm1011_vm1, %v2239_v15  ;;  %3683 = vmatmul.msk.bf16.gmra.mxu3 %vm1011_vm1, %v4118_v29  ;;  %v1851_v54 = vpop.f32.mrf.mxu0 }
 0x276   : > { %v1944_v27 = vadd.f32 %v1943_v24, %v1851_v54 }
 0x277   : > { %v2040_v0 = vpop.f32.mrf.mxu2 }
 0x278   : > { %v2167_v63 = vpop.f32.mrf.mxu3  ;;  %v2077_v37 = vadd.f32 %v2037_v48, %v1944_v27 }
 0x279   : > { %v2208_v30 = vadd.f32 %v2167_v63, %v2076_v9  ;;  %v1948_v50 = vpop.f32.mrf.mxu1 }
 0x27b   : > { %v2240_v16 = vadd.f32 %v4509_v35, %v2208_v30  ;;  %v3871_v30 = vld [vmem:[%s3983_s12 + $0x78] sm:$0xff] }
 0x27d   : > { %2272 = vst.msk [vmem:[%s4171_s22 + $0x1d0] sm:$0xff] %vm1011_vm1, %v2240_v16  ;;  %v1854_v41 = vpop.f32.mrf.mxu0 }
 0x27e   : > { %v1947_v23 = vadd.f32 %v1946_v6, %v1854_v41 }
 0x27f   : > { %v2042_v17 = vpop.f32.mrf.mxu2 }
 0x280   : > { %v2169_v52 = vpop.f32.mrf.mxu3  ;;  %3630 = vmatmul.msk.bf16.gmra.mxu0 %vm1011_vm1, %v4118_v29  ;;  %v2078_v24 = vadd.f32 %v2040_v0, %v1947_v23 }
 0x281   : > { %v2209_v22 = vadd.f32 %v2169_v52, %v2077_v37  ;;  %v1951_v3 = vpop.f32.mrf.mxu1 }
 0x283   : > { %v2241_v58 = vadd.f32 %v4509_v35, %v2209_v22 }
 0x284   : > { %3668 = vmatmul.msk.bf16.gmra.mxu2 %vm1011_vm1, %v3870_v44  ;;  %3647 = vmatmul.msk.bf16.gmra.mxu1 %vm1011_vm1, %v3869_v25 }
 0x285   : > { %2273 = vst.msk [vmem:[%s4171_s22 + $0x1d8] sm:$0xff] %vm1011_vm1, %v2241_v58  ;;  %3684 = vmatmul.msk.bf16.gmra.mxu3 %vm1011_vm1, %v4134_v55  ;;  %v1856_v47 = vpop.f32.mrf.mxu0 }
 0x286   : > { %v1949_v61 = vadd.f32 %v1948_v50, %v1856_v47 }
 0x287   : > { %v2045_v18 = vpop.f32.mrf.mxu2 }
 0x288   : > { %v2172_v46 = vpop.f32.mrf.mxu3  ;;  %v2079_v6 = vadd.f32 %v2042_v17, %v1949_v61 }
 0x289   : > { %v2210_v56 = vadd.f32 %v2172_v46, %v2078_v24  ;;  %v1953_v48 = vpop.f32.mrf.mxu1 }
 0x28b   : > { %v2242_v38 = vadd.f32 %v4509_v35, %v2210_v56  ;;  %v3872_v56 = vld [vmem:[%s3983_s12 + $0x84] sm:$0xff] }
 0x28d   : > { %2274 = vst.msk [vmem:[%s4171_s22 + $0x1e0] sm:$0xff] %vm1011_vm1, %v2242_v38  ;;  %v1859_v59 = vpop.f32.mrf.mxu0 }
 0x28e   : > { %v1952_v54 = vadd.f32 %v1951_v3, %v1859_v59 }
 0x28f   : > { %v2047_v15 = vpop.f32.mrf.mxu2 }
 0x290   : > { %v2174_v25 = vpop.f32.mrf.mxu3  ;;  %3631 = vmatmul.msk.bf16.gmra.mxu0 %vm1011_vm1, %v4134_v55  ;;  %v2080_v50 = vadd.f32 %v2045_v18, %v1952_v54 }
 0x291   : > { %v2211_v9 = vadd.f32 %v2174_v25, %v2079_v6  ;;  %v2386_v0 = vpop.f32.mrf.mxu1 }
 0x293   : > { %v2243_v63 = vadd.f32 %v4509_v35, %v2211_v9 }
 0x294   : > { %3669 = vmatmul.msk.bf16.gmra.mxu2 %vm1011_vm1, %v3871_v30  ;;  %3648 = vmatmul.msk.bf16.gmra.mxu1 %vm1011_vm1, %v3870_v44 }
 0x295   : > { %2275 = vst.msk [vmem:[%s4171_s22 + $0x1e8] sm:$0xff] %vm1011_vm1, %v2243_v63  ;;  %3685 = vmatmul.msk.bf16.gmra.mxu3 %vm1011_vm1, %v4150_v26  ;;  %v1861_v16 = vpop.f32.mrf.mxu0 }
 0x296   : > { %v1954_v22 = vadd.f32 %v1953_v48, %v1861_v16 }
 0x297   : > { %v2486_v27 = vpop.f32.mrf.mxu2 }
 0x298   : > { %v2177_v41 = vpop.f32.mrf.mxu3  ;;  %v2081_v3 = vadd.f32 %v2047_v15, %v1954_v22 }
 0x299   : > { %v2212_v37 = vadd.f32 %v2177_v41, %v2080_v50  ;;  %v2388_v17 = vpop.f32.mrf.mxu1 }
 0x29b   : > { %v2244_v52 = vadd.f32 %v4509_v35, %v2212_v37  ;;  %v3874_v37 = vld [vmem:[%s3983_s12 + $0x90] sm:$0xff] }
 0x29d   : > { %2276 = vst.msk [vmem:[%s4171_s22 + $0x1f0] sm:$0xff] %vm1011_vm1, %v2244_v52  ;;  %v2294_v23 = vpop.f32.mrf.mxu0 }
 0x29e   : > { %v2387_v47 = vadd.f32 %v2386_v0, %v2294_v23 }
 0x29f   : > { %v2488_v58 = vpop.f32.mrf.mxu2 }
 0x2a0   : > { %v2179_v44 = vpop.f32.mrf.mxu3  ;;  %3632 = vmatmul.msk.bf16.gmra.mxu0 %vm1011_vm1, %v4150_v26  ;;  %v2566_v48 = vadd.f32 %v2486_v27, %v2387_v47 }
 0x2a1   : > { %v2213_v24 = vadd.f32 %v2179_v44, %v2081_v3  ;;  %v2391_v18 = vpop.f32.mrf.mxu1 }
 0x2a3   : > { %v2245_v46 = vadd.f32 %v4509_v35, %v2213_v24  ;;  %v4870_v35 = vld [vmem:[%s5281_s3] ss:$0 sm:$0xff] }
 0x2a4   : > { %3670 = vmatmul.msk.bf16.gmra.mxu2 %vm1011_vm1, %v3872_v56  ;;  %3649 = vmatmul.msk.bf16.gmra.mxu1 %vm1011_vm1, %v3871_v30 }
 0x2a5   : > { %2277 = vst.msk [vmem:[%s4171_s22 + $0x1f8] sm:$0xff] %vm1011_vm1, %v2245_v46  ;;  %3686 = vmatmul.msk.bf16.gmra.mxu3 %vm1011_vm1, %v4177_v4  ;;  %v2296_v38 = vpop.f32.mrf.mxu0 }
 0x2a6   : > { %v2389_v9 = vadd.f32 %v2388_v17, %v2296_v38 }
 0x2a7   : > { %v2491_v61 = vpop.f32.mrf.mxu2 }
 0x2a8   : > { %v2618_v59 = vpop.f32.mrf.mxu3  ;;  %v2567_v0 = vadd.f32 %v2488_v58, %v2389_v9 }
 0x2a9   : > { %v2698_v6 = vadd.f32 %v2618_v59, %v2566_v48  ;;  %v2393_v15 = vpop.f32.mrf.mxu1 }
 0x2ab   : > { %v2730_v25 = vadd.f32 %v4870_v35, %v2698_v6  ;;  %v3875_v6 = vld [vmem:[%s3983_s12 + $0x9c] sm:$0xff] }
 0x2ad   : > { %2762 = vst.msk [vmem:[%s4171_s22 + $0x200] sm:$0xff] %vm1011_vm1, %v2730_v25  ;;  %v2299_v54 = vpop.f32.mrf.mxu0 }
 0x2ae   : > { %v2392_v16 = vadd.f32 %v2391_v18, %v2299_v54 }
 0x2af   : > { %v2493_v63 = vpop.f32.mrf.mxu2 }
 0x2b0   : > { %v2620_v30 = vpop.f32.mrf.mxu3  ;;  %3633 = vmatmul.msk.bf16.gmra.mxu0 %vm1011_vm1, %v4177_v4  ;;  %v2568_v17 = vadd.f32 %v2491_v61, %v2392_v16 }
 0x2b1   : > { %v2699_v50 = vadd.f32 %v2620_v30, %v2567_v0  ;;  %v2396_v27 = vpop.f32.mrf.mxu1 }
 0x2b3   : > { %v2731_v41 = vadd.f32 %v4870_v35, %v2699_v50 }
 0x2b4   : > { %3671 = vmatmul.msk.bf16.gmra.mxu2 %vm1011_vm1, %v3874_v37  ;;  %3650 = vmatmul.msk.bf16.gmra.mxu1 %vm1011_vm1, %v3872_v56 }
 0x2b5   : > { %2763 = vst.msk [vmem:[%s4171_s22 + $0x208] sm:$0xff] %vm1011_vm1, %v2731_v41  ;;  %3687 = vmatmul.msk.bf16.gmra.mxu3 %vm1011_vm1, %v4199_v53  ;;  %v2301_v52 = vpop.f32.mrf.mxu0 }
 0x2b6   : > { %v2394_v24 = vadd.f32 %v2393_v15, %v2301_v52 }
 0x2b7   : > { %v2496_v22 = vpop.f32.mrf.mxu2 }
 0x2b8   : > { %v2623_v23 = vpop.f32.mrf.mxu3  ;;  %v2569_v18 = vadd.f32 %v2493_v63, %v2394_v24 }
 0x2b9   : > { %v2700_v3 = vadd.f32 %v2623_v23, %v2568_v17  ;;  %v2398_v58 = vpop.f32.mrf.mxu1 }
 0x2bb   : > { %v2732_v44 = vadd.f32 %v4870_v35, %v2700_v3  ;;  %v3876_v3 = vld [vmem:[%s3983_s12 + $0xa8] sm:$0xff] }
 0x2bd   : > { %2764 = vst.msk [vmem:[%s4171_s22 + $0x210] sm:$0xff] %vm1011_vm1, %v2732_v44  ;;  %v2304_v47 = vpop.f32.mrf.mxu0 }
 0x2be   : > { %v2397_v38 = vadd.f32 %v2396_v27, %v2304_v47 }
 0x2bf   : > { %v2498_v46 = vpop.f32.mrf.mxu2 }
 0x2c0   : > { %v2625_v56 = vpop.f32.mrf.mxu3  ;;  %3634 = vmatmul.msk.bf16.gmra.mxu0 %vm1011_vm1, %v4199_v53  ;;  %v2570_v15 = vadd.f32 %v2496_v22, %v2397_v38 }
 0x2c1   : > { %v2701_v48 = vadd.f32 %v2625_v56, %v2569_v18  ;;  %v2401_v61 = vpop.f32.mrf.mxu1 }
 0x2c3   : > { %v2733_v59 = vadd.f32 %v4870_v35, %v2701_v48 }
 0x2c4   : > { %3672 = vmatmul.msk.bf16.gmra.mxu2 %vm1011_vm1, %v3875_v6  ;;  %3651 = vmatmul.msk.bf16.gmra.mxu1 %vm1011_vm1, %v3874_v37 }
 0x2c5   : > { %2765 = vst.msk [vmem:[%s4171_s22 + $0x218] sm:$0xff] %vm1011_vm1, %v2733_v59  ;;  %3688 = vmatmul.msk.bf16.gmra.mxu3 %vm1011_vm1, %v4224_v31  ;;  %v2306_v25 = vpop.f32.mrf.mxu0 }
 0x2c6   : > { %v2399_v50 = vadd.f32 %v2398_v58, %v2306_v25 }
 0x2c7   : > { %v2501_v9 = vpop.f32.mrf.mxu2 }
 0x2c8   : > { %v2628_v54 = vpop.f32.mrf.mxu3  ;;  %v2571_v27 = vadd.f32 %v2498_v46, %v2399_v50 }
 0x2c9   : > { %v2702_v0 = vadd.f32 %v2628_v54, %v2570_v15  ;;  %v2403_v63 = vpop.f32.mrf.mxu1 }
 0x2cb   : > { %v2734_v30 = vadd.f32 %v4870_v35, %v2702_v0  ;;  %v3877_v0 = vld [vmem:[%s3983_s12 + $0xb4] sm:$0xff] }
 0x2cd   : > { %2766 = vst.msk [vmem:[%s4171_s22 + $0x220] sm:$0xff] %vm1011_vm1, %v2734_v30  ;;  %v2309_v16 = vpop.f32.mrf.mxu0 }
 0x2ce   : > { %v2402_v52 = vadd.f32 %v2401_v61, %v2309_v16 }
 0x2cf   : > { %v2503_v41 = vpop.f32.mrf.mxu2 }
 0x2d0   : > { %v2630_v37 = vpop.f32.mrf.mxu3  ;;  %3635 = vmatmul.msk.bf16.gmra.mxu0 %vm1011_vm1, %v4224_v31  ;;  %v2572_v58 = vadd.f32 %v2501_v9, %v2402_v52 }
 0x2d1   : > { %v2703_v17 = vadd.f32 %v2630_v37, %v2571_v27  ;;  %v2406_v22 = vpop.f32.mrf.mxu1 }
 0x2d3   : > { %v2735_v23 = vadd.f32 %v4870_v35, %v2703_v17 }
 0x2d4   : > { %3673 = vmatmul.msk.bf16.gmra.mxu2 %vm1011_vm1, %v3876_v3  ;;  %3652 = vmatmul.msk.bf16.gmra.mxu1 %vm1011_vm1, %v3875_v6 }
 0x2d5   : > { %2767 = vst.msk [vmem:[%s4171_s22 + $0x228] sm:$0xff] %vm1011_vm1, %v2735_v23  ;;  %3689 = vmatmul.msk.bf16.gmra.mxu3 %vm1011_vm1, %v4246_v14  ;;  %v2311_v44 = vpop.f32.mrf.mxu0 }
 0x2d6   : > { %v2404_v48 = vadd.f32 %v2403_v63, %v2311_v44 }
 0x2d7   : > { %v2506_v24 = vpop.f32.mrf.mxu2 }
 0x2d8   : > { %v2633_v47 = vpop.f32.mrf.mxu3  ;;  %v2573_v61 = vadd.f32 %v2503_v41, %v2404_v48 }
 0x2d9   : > { %v2704_v18 = vadd.f32 %v2633_v47, %v2572_v58  ;;  %v2408_v46 = vpop.f32.mrf.mxu1 }
 0x2db   : > { %v2736_v56 = vadd.f32 %v4870_v35, %v2704_v18  ;;  %v3878_v18 = vld [vmem:[%s4276_s25] sm:$0xff] }
 0x2dd   : > { %2768 = vst.msk [vmem:[%s4171_s22 + $0x230] sm:$0xff] %vm1011_vm1, %v2736_v56  ;;  %v2314_v38 = vpop.f32.mrf.mxu0 }
 0x2de   : > { %v2407_v25 = vadd.f32 %v2406_v22, %v2314_v38  ;;  %v4938_v38 = vld [vmem:[%s4276_s25 + $0xc] sm:$0xf] }
 0x2df   : > { %v2508_v59 = vpop.f32.mrf.mxu2 }
 0x2e0   : > { %v2635_v6 = vpop.f32.mrf.mxu3  ;;  %3636 = vmatmul.msk.bf16.gmra.mxu0 %vm1011_vm1, %v4246_v14  ;;  %v2574_v63 = vadd.f32 %v2506_v24, %v2407_v25  ;;  %v754_v25 = vshrl.u32 %v4938_v38, 16 }
 0x2e1   : > { %v2705_v15 = vadd.f32 %v2635_v6, %v2573_v61  ;;  %v2411_v9 = vpop.f32.mrf.mxu1  ;;  %v4941_v61 = vld [vmem:[%s4276_s25 + $0x10] sm:$0xf] }
 0x2e3   : > { %v2737_v54 = vadd.f32 %v4870_v35, %v2705_v15 }
 0x2e4   : > { %3674 = vmatmul.msk.bf16.gmra.mxu2 %vm1011_vm1, %v3877_v0  ;;  %3653 = vmatmul.msk.bf16.gmra.mxu1 %vm1011_vm1, %v3876_v3 }
 0x2e5   : > { %2769 = vst.msk [vmem:[%s4171_s22 + $0x238] sm:$0xff] %vm1011_vm1, %v2737_v54  ;;  %3690 = vmatmul.msk.bf16.gmra.mxu3 %vm1011_vm1, %v4271_v21  ;;  %v2316_v30 = vpop.f32.mrf.mxu0  ;;  %v763_v54 = vshll.u32 %v4941_v61, 16 }
 0x2e6   : > { %v2409_v17 = vadd.f32 %v2408_v46, %v2316_v30 }
 0x2e7   : > { %v2511_v50 = vpop.f32.mrf.mxu2 }
 0x2e8   : > { %v2638_v16 = vpop.f32.mrf.mxu3  ;;  %v2575_v22 = vadd.f32 %v2508_v59, %v2409_v17 }
 0x2e9   : > { %v2706_v27 = vadd.f32 %v2638_v16, %v2574_v63  ;;  %v2413_v41 = vpop.f32.mrf.mxu1  ;;  %v756_v16 = vrot.slane %v754_v25, 4 }
 0x2eb   : > { %v2738_v37 = vadd.f32 %v4870_v35, %v2706_v27 }
 0x2ed   : > { %2770 = vst.msk [vmem:[%s4171_s22 + $0x240] sm:$0xff] %vm1011_vm1, %v2738_v37  ;;  %v2319_v52 = vpop.f32.mrf.mxu0  ;;  %v765_v37 = vrot.slane %v763_v54, 5 }
 0x2ee   : > { %v2412_v44 = vadd.f32 %v2411_v9, %v2319_v52  ;;  %v757_v9 = vshll.u32 %v4938_v38, 16 }
 0x2ef   : > { %v2513_v23 = vpop.f32.mrf.mxu2 }
 0x2f0   : > { %v2640_v3 = vpop.f32.mrf.mxu3  ;;  %3637 = vmatmul.msk.bf16.gmra.mxu0 %vm1011_vm1, %v4271_v21  ;;  %v2576_v46 = vadd.f32 %v2511_v50, %v2412_v44  ;;  %v759_v27 = vrot.slane %v757_v9, 5  ;;  %v3782_v44 = vld [vmem:[%s4276_s25 + $0xc] sm:$0xff] }
 0x2f1   : > { %v2707_v58 = vadd.f32 %v2640_v3, %v2575_v22  ;;  %v2416_v24 = vpop.f32.mrf.mxu1  ;;  %v4951_v3 = vld [vmem:[%s4276_s25 + $0x14] sm:$0x1] }
 0x2f3   : > { %v2739_v47 = vadd.f32 %v4870_v35, %v2707_v58 }
 0x2f4   : > { %3675 = vmatmul.msk.bf16.gmra.mxu2 %vm1011_vm1, %v3878_v18  ;;  %3654 = vmatmul.msk.bf16.gmra.mxu1 %vm1011_vm1, %v3877_v0  ;;  %v767_v0 = vshrl.u32 %v4941_v61, 16 }
 0x2f5   : > { %2771 = vst.msk [vmem:[%s4171_s22 + $0x248] sm:$0xff] %vm1011_vm1, %v2739_v47  ;;  %3691 = vmatmul.msk.bf16.gmra.mxu3 %vm1011_vm1, %v4301_v10  ;;  %v2321_v56 = vpop.f32.mrf.mxu0 }
 0x2f6   : > { %v2414_v30 = vadd.f32 %v2413_v41, %v2321_v56  ;;  %v769_v17 = vrot.slane %v767_v0, 4  ;;  %v760_v56 = vor.u32 %v759_v27, %v756_v16 }
 0x2f7   : > { %v2516_v48 = vpop.f32.mrf.mxu2 }
 0x2f8   : > { %v2643_v59 = vpop.f32.mrf.mxu3  ;;  %v2577_v52 = vadd.f32 %v2513_v23, %v2414_v30  ;;  %v761_v9 = vrot.slane %v760_v56, 4 }
 0x2f9   : > { %v2708_v6 = vadd.f32 %v2643_v59, %v2576_v46  ;;  %v2418_v15 = vpop.f32.mrf.mxu1  ;;  %v770_v59 = vor.u32 %v769_v17, %v765_v37 }
 0x2fa   : > { %v766_v27 = vsel %vm4002_vm4, %v761_v9, %v765_v37 }
 0x2fb   : > { %v2740_v63 = vadd.f32 %v4870_v35, %v2708_v6  ;;  %v773_v6 = vshll.u32 %v4951_v3, 16  ;;  %v771_v54 = vrot.slane %v770_v59, 4 }
 0x2fd   : > { %2772 = vst.msk [vmem:[%s4171_s22 + $0x250] sm:$0xff] %vm1011_vm1, %v2740_v63  ;;  %v2324_v50 = vpop.f32.mrf.mxu0  ;;  %v775_v0 = vrot.slane %v773_v6, 5 }
 0x2fe   : > { %v2417_v46 = vadd.f32 %v2416_v24, %v2324_v50 }
 0x2ff   : > { %v2518_v22 = vpop.f32.mrf.mxu2 }
 0x300   : > { %v2645_v58 = vpop.f32.mrf.mxu3  ;;  %3638 = vmatmul.msk.bf16.gmra.mxu0 %vm1011_vm1, %v4301_v10  ;;  %v2578_v23 = vadd.f32 %v2516_v48, %v2417_v46  ;;  %v2600_v48 = vunpack.c.l.b16 %v766_v27 }
 0x301   : > { %v2709_v47 = vadd.f32 %v2645_v58, %v2577_v52  ;;  %v2421_v41 = vpop.f32.mrf.mxu1 }
 0x303   : > { %v2741_v25 = vadd.f32 %v4870_v35, %v2709_v47 }
 0x304   : > { %3676 = vmatmul.msk.bf16.gmra.mxu2 %vm1011_vm1, %v3782_v44  ;;  %3655 = vmatmul.msk.bf16.gmra.mxu1 %vm1011_vm1, %v3878_v18  ;;  %v776_v18 = vsel %vm4002_vm4, %v771_v54, %v775_v0 }
 0x305   : > { %2773 = vst.msk [vmem:[%s4171_s22 + $0x258] sm:$0xff] %vm1011_vm1, %v2741_v25  ;;  %3692 = vmatmul.msk.bf16.gmra.mxu3 %vm1011_vm1, %v4350_v5  ;;  %v2326_v24 = vpop.f32.mrf.mxu0  ;;  %v2601_v58 = vunpack.c.l.b16 %v776_v18 }
 0x306   : > { %v2419_v52 = vadd.f32 %v2418_v15, %v2326_v24 }
 0x307   : > { %v2521_v63 = vpop.f32.mrf.mxu2  ;;  %v4973_v39 = vpack.c.b16 %v2601_v58, %v2600_v48 }
 0x308   : > { %v2648_v30 = vpop.f32.mrf.mxu3  ;;  %v2579_v47 = vadd.f32 %v2518_v22, %v2419_v52 }
 0x309   : > { %v2710_v50 = vadd.f32 %v2648_v30, %v2578_v23  ;;  %v2423_v16 = vpop.f32.mrf.mxu1 }
 0x30b   : > { %v2742_v17 = vadd.f32 %v4870_v35, %v2710_v50 }
 0x30d   : > { %2774 = vst.msk [vmem:[%s4171_s22 + $0x260] sm:$0xff] %vm1011_vm1, %v2742_v17  ;;  %v2329_v44 = vpop.f32.mrf.mxu0 }
 0x30e   : > { %v2422_v6 = vadd.f32 %v2421_v41, %v2329_v44 }
 0x30f   : > { %v2523_v46 = vpop.f32.mrf.mxu2 }
 0x310   : > { %v2650_v56 = vpop.f32.mrf.mxu3  ;;  %3639 = vmatmul.msk.bf16.gmra.mxu0 %vm1011_vm1, %v4350_v5  ;;  %v2580_v22 = vadd.f32 %v2521_v63, %v2422_v6 }
 0x311   : > { %v2711_v59 = vadd.f32 %v2650_v56, %v2579_v47  ;;  %v2426_v37 = vpop.f32.mrf.mxu1 }
 0x313   : > { %v2743_v15 = vadd.f32 %v4870_v35, %v2711_v59 }
 0x314   : > { %3729 = vmatmul.msk.bf16.vlgmr.msrb.gmra.mxu2 %vm1011_vm1, %v4038_v33  ;;  %3712 = vmatmul.msk.bf16.vlgmr.msrb.gmra.mxu1 %vm1011_vm1, %v4021_v13 }
 0x315   : > { %2775 = vst.msk [vmem:[%s4171_s22 + $0x268] sm:$0xff] %vm1011_vm1, %v2743_v15  ;;  %3693 = vmatmul.msk.bf16.gmra.mxu3 %vm1011_vm1, %v4973_v39  ;;  %v2331_v41 = vpop.f32.mrf.mxu0 }
 0x316   : > { %v2424_v0 = vadd.f32 %v2423_v16, %v2331_v41 }
 0x317   : > { %v2526_v25 = vpop.f32.mrf.mxu2 }
 0x318   : > { %v2653_v23 = vpop.f32.mrf.mxu3  ;;  %v2581_v50 = vadd.f32 %v2523_v46, %v2424_v0 }
 0x319   : > { %v2712_v24 = vadd.f32 %v2653_v23, %v2580_v22  ;;  %v2428_v9 = vpop.f32.mrf.mxu1 }
 0x31b   : > { %v2744_v54 = vadd.f32 %v4870_v35, %v2712_v24 }
 0x31d   : > { %2776 = vst.msk [vmem:[%s4171_s22 + $0x270] sm:$0xff] %vm1011_vm1, %v2744_v54  ;;  %v2334_v30 = vpop.f32.mrf.mxu0 }
 0x31e   : > { %v2427_v17 = vadd.f32 %v2426_v37, %v2334_v30 }
 0x31f   : > { %v2528_v13 = vpop.f32.mrf.mxu2 }
 0x320   : > { %v2655_v27 = vpop.f32.mrf.mxu3  ;;  %3696 = vmatmul.msk.bf16.vlgmr.msrb.gmra.mxu0 %vm1011_vm1, %v4373_v49  ;;  %v2582_v16 = vadd.f32 %v2526_v25, %v2427_v17 }
 0x321   : > { %v2713_v18 = vadd.f32 %v2655_v27, %v2581_v50  ;;  %v2431_v63 = vpop.f32.mrf.mxu1 }
 0x323   : > { %v2745_v52 = vadd.f32 %v4870_v35, %v2713_v18 }
 0x324   : > { %3730 = vmatmul.msk.bf16.gmra.mxu2 %vm1011_vm1, %v4054_v60  ;;  %3713 = vmatmul.msk.bf16.gmra.mxu1 %vm1011_vm1, %v4038_v33 }
 0x325   : > { %2777 = vst.msk [vmem:[%s4171_s22 + $0x278] sm:$0xff] %vm1011_vm1, %v2745_v52  ;;  %3746 = vmatmul.msk.bf16.vlgmr.msrb.gmra.mxu3 %vm1011_vm1, %v4396_v28  ;;  %v2336_v48 = vpop.f32.mrf.mxu0 }
 0x326   : > { %v2429_v56 = vadd.f32 %v2428_v9, %v2336_v48 }
 0x327   : > { %v2531_v58 = vpop.f32.mrf.mxu2 }
 0x328   : > { %v2658_v44 = vpop.f32.mrf.mxu3  ;;  %v2583_v6 = vadd.f32 %v2528_v13, %v2429_v56 }
 0x329   : > { %v2714_v47 = vadd.f32 %v2658_v44, %v2582_v16  ;;  %v2433_v49 = vpop.f32.mrf.mxu1 }
 0x32b   : > { %v2746_v46 = vadd.f32 %v4870_v35, %v2714_v47 }
 0x32d   : > { %2778 = vst.msk [vmem:[%s4171_s22 + $0x280] sm:$0xff] %vm1011_vm1, %v2746_v46  ;;  %v2339_v59 = vpop.f32.mrf.mxu0 }
 0x32e   : > { %v2432_v22 = vadd.f32 %v2431_v63, %v2339_v59 }
 0x32f   : > { %v2533_v33 = vpop.f32.mrf.mxu2 }
 0x330   : > { %v2660_v37 = vpop.f32.mrf.mxu3  ;;  %3697 = vmatmul.msk.bf16.gmra.mxu0 %vm1011_vm1, %v4396_v28  ;;  %v2584_v23 = vadd.f32 %v2531_v58, %v2432_v22 }
 0x331   : > { %v2715_v15 = vadd.f32 %v2660_v37, %v2583_v6  ;;  %v2436_v41 = vpop.f32.mrf.mxu1 }
 0x333   : > { %v2747_v25 = vadd.f32 %v4870_v35, %v2715_v15 }
 0x334   : > { %3731 = vmatmul.msk.bf16.gmra.mxu2 %vm1011_vm1, %v4070_v19  ;;  %3714 = vmatmul.msk.bf16.gmra.mxu1 %vm1011_vm1, %v4054_v60 }
 0x335   : > { %2779 = vst.msk [vmem:[%s4171_s22 + $0x288] sm:$0xff] %vm1011_vm1, %v2747_v25  ;;  %3747 = vmatmul.msk.bf16.gmra.mxu3 %vm1011_vm1, %v4419_v1  ;;  %v2341_v24 = vpop.f32.mrf.mxu0 }
 0x336   : > { %v2434_v50 = vadd.f32 %v2433_v49, %v2341_v24 }
 0x337   : > { %v2536_v9 = vpop.f32.mrf.mxu2 }
 0x338   : > { %v2663_v54 = vpop.f32.mrf.mxu3  ;;  %v2585_v27 = vadd.f32 %v2533_v33, %v2434_v50 }
 0x339   : > { %v2716_v0 = vadd.f32 %v2663_v54, %v2584_v23  ;;  %v2438_v28 = vpop.f32.mrf.mxu1 }
 0x33b   : > { %v2748_v30 = vadd.f32 %v4870_v35, %v2716_v0 }
 0x33d   : > { %2780 = vst.msk [vmem:[%s4171_s22 + $0x290] sm:$0xff] %vm1011_vm1, %v2748_v30  ;;  %v2344_v13 = vpop.f32.mrf.mxu0 }
 0x33e   : > { %v2437_v63 = vadd.f32 %v2436_v41, %v2344_v13 }
 0x33f   : > { %v2538_v60 = vpop.f32.mrf.mxu2 }
 0x340   : > { %v2665_v18 = vpop.f32.mrf.mxu3  ;;  %3698 = vmatmul.msk.bf16.gmra.mxu0 %vm1011_vm1, %v4419_v1  ;;  %v2586_v48 = vadd.f32 %v2536_v9, %v2437_v63 }
 0x341   : > { %v2717_v17 = vadd.f32 %v2665_v18, %v2585_v27  ;;  %v2441_v52 = vpop.f32.mrf.mxu1 }
 0x343   : > { %v2749_v16 = vadd.f32 %v4870_v35, %v2717_v17 }
 0x344   : > { %3732 = vmatmul.msk.bf16.gmra.mxu2 %vm1011_vm1, %v4086_v43  ;;  %3715 = vmatmul.msk.bf16.gmra.mxu1 %vm1011_vm1, %v4070_v19 }
 0x345   : > { %2781 = vst.msk [vmem:[%s4171_s22 + $0x298] sm:$0xff] %vm1011_vm1, %v2749_v16  ;;  %3748 = vmatmul.msk.bf16.gmra.mxu3 %vm1011_vm1, %v4442_v45  ;;  %v2346_v58 = vpop.f32.mrf.mxu0 }
 0x346   : > { %v2439_v56 = vadd.f32 %v2438_v28, %v2346_v58 }
 0x347   : > { %v2541_v44 = vpop.f32.mrf.mxu2 }
 0x348   : > { %v2668_v47 = vpop.f32.mrf.mxu3  ;;  %v2587_v6 = vadd.f32 %v2538_v60, %v2439_v56 }
 0x349   : > { %v2718_v49 = vadd.f32 %v2668_v47, %v2586_v48  ;;  %v2443_v1 = vpop.f32.mrf.mxu1 }
 0x34b   : > { %v2750_v46 = vadd.f32 %v4870_v35, %v2718_v49 }
 0x34d   : > { %2782 = vst.msk [vmem:[%s4171_s22 + $0x2a0] sm:$0xff] %vm1011_vm1, %v2750_v46  ;;  %v2349_v59 = vpop.f32.mrf.mxu0 }
 0x34e   : > { %v2442_v15 = vadd.f32 %v2441_v52, %v2349_v59 }
 0x34f   : > { %v2543_v19 = vpop.f32.mrf.mxu2 }
 0x350   : > { %v2670_v33 = vpop.f32.mrf.mxu3  ;;  %3699 = vmatmul.msk.bf16.gmra.mxu0 %vm1011_vm1, %v4442_v45  ;;  %v2588_v25 = vadd.f32 %v2541_v44, %v2442_v15 }
 0x351   : > { %v2719_v37 = vadd.f32 %v2670_v33, %v2587_v6  ;;  %v2446_v22 = vpop.f32.mrf.mxu1 }
 0x353   : > { %v2751_v41 = vadd.f32 %v4870_v35, %v2719_v37 }
 0x354   : > { %3733 = vmatmul.msk.bf16.gmra.mxu2 %vm1011_vm1, %v4102_v7  ;;  %3716 = vmatmul.msk.bf16.gmra.mxu1 %vm1011_vm1, %v4086_v43 }
 0x355   : > { %2783 = vst.msk [vmem:[%s4171_s22 + $0x2a8] sm:$0xff] %vm1011_vm1, %v2751_v41  ;;  %3749 = vmatmul.msk.bf16.gmra.mxu3 %vm1011_vm1, %v4465_v11  ;;  %v2351_v23 = vpop.f32.mrf.mxu0 }
 0x356   : > { %v2444_v28 = vadd.f32 %v2443_v1, %v2351_v23 }
 0x357   : > { %v2546_v24 = vpop.f32.mrf.mxu2 }
 0x358   : > { %v2673_v9 = vpop.f32.mrf.mxu3  ;;  %v2589_v50 = vadd.f32 %v2543_v19, %v2444_v28 }
 0x359   : > { %v2720_v54 = vadd.f32 %v2673_v9, %v2588_v25  ;;  %v2448_v45 = vpop.f32.mrf.mxu1 }
 0x35b   : > { %v2752_v0 = vadd.f32 %v4870_v35, %v2720_v54 }
 0x35d   : > { %2784 = vst.msk [vmem:[%s4171_s22 + $0x2b0] sm:$0xff] %vm1011_vm1, %v2752_v0  ;;  %v2354_v30 = vpop.f32.mrf.mxu0 }
 0x35e   : > { %v2447_v60 = vadd.f32 %v2446_v22, %v2354_v30 }
 0x35f   : > { %v2548_v43 = vpop.f32.mrf.mxu2 }
 0x360   : > { %v2675_v13 = vpop.f32.mrf.mxu3  ;;  %3700 = vmatmul.msk.bf16.gmra.mxu0 %vm1011_vm1, %v4465_v11  ;;  %v2590_v63 = vadd.f32 %v2546_v24, %v2447_v60 }
 0x361   : > { %v2721_v27 = vadd.f32 %v2675_v13, %v2589_v50  ;;  %v2451_v18 = vpop.f32.mrf.mxu1 }
 0x363   : > { %v2753_v17 = vadd.f32 %v4870_v35, %v2721_v27 }
 0x364   : > { %3734 = vmatmul.msk.bf16.gmra.mxu2 %vm1011_vm1, %v4118_v29  ;;  %3717 = vmatmul.msk.bf16.gmra.mxu1 %vm1011_vm1, %v4102_v7 }
 0x365   : > { %2785 = vst.msk [vmem:[%s4171_s22 + $0x2b8] sm:$0xff] %vm1011_vm1, %v2753_v17  ;;  %3750 = vmatmul.msk.bf16.gmra.mxu3 %vm1011_vm1, %v4488_v8  ;;  %v2356_v52 = vpop.f32.mrf.mxu0 }
 0x366   : > { %v2449_v47 = vadd.f32 %v2448_v45, %v2356_v52 }
 0x367   : > { %v2551_v16 = vpop.f32.mrf.mxu2 }
 0x368   : > { %v2678_v48 = vpop.f32.mrf.mxu3  ;;  %v2591_v1 = vadd.f32 %v2548_v43, %v2449_v47 }
 0x369   : > { %v2722_v58 = vadd.f32 %v2678_v48, %v2590_v63  ;;  %v2453_v11 = vpop.f32.mrf.mxu1 }
 0x36b   : > { %v2754_v44 = vadd.f32 %v4870_v35, %v2722_v58 }
 0x36d   : > { %2786 = vst.msk [vmem:[%s4171_s22 + $0x2c0] sm:$0xff] %vm1011_vm1, %v2754_v44  ;;  %v2359_v49 = vpop.f32.mrf.mxu0 }
 0x36e   : > { %v2452_v59 = vadd.f32 %v2451_v18, %v2359_v49 }
 0x36f   : > { %v2553_v7 = vpop.f32.mrf.mxu2 }
 0x370   : > { %v2680_v46 = vpop.f32.mrf.mxu3  ;;  %3701 = vmatmul.msk.bf16.gmra.mxu0 %vm1011_vm1, %v4488_v8  ;;  %v2592_v33 = vadd.f32 %v2551_v16, %v2452_v59 }
 0x371   : > { %v2723_v56 = vadd.f32 %v2680_v46, %v2591_v1  ;;  %v2456_v6 = vpop.f32.mrf.mxu1 }
 0x373   : > { %v2755_v19 = vadd.f32 %v4870_v35, %v2723_v56 }
 0x374   : > { %3735 = vmatmul.msk.bf16.gmra.mxu2 %vm1011_vm1, %v4134_v55  ;;  %3718 = vmatmul.msk.bf16.gmra.mxu1 %vm1011_vm1, %v4118_v29 }
 0x375   : > { %2787 = vst.msk [vmem:[%s4171_s22 + $0x2c8] sm:$0xff] %vm1011_vm1, %v2755_v19  ;;  %3751 = vmatmul.msk.bf16.gmra.mxu3 %vm1011_vm1, %v4516_v51  ;;  %v2361_v37 = vpop.f32.mrf.mxu0 }
 0x376   : > { %v2454_v23 = vadd.f32 %v2453_v11, %v2361_v37 }
 0x377   : > { %v2556_v15 = vpop.f32.mrf.mxu2 }
 0x378   : > { %v2683_v22 = vpop.f32.mrf.mxu3  ;;  %v2593_v9 = vadd.f32 %v2553_v7, %v2454_v23 }
 0x379   : > { %v2724_v41 = vadd.f32 %v2683_v22, %v2592_v33  ;;  %v2458_v8 = vpop.f32.mrf.mxu1 }
 0x37b   : > { %v2756_v25 = vadd.f32 %v4870_v35, %v2724_v41 }
 0x37d   : > { %2788 = vst.msk [vmem:[%s4171_s22 + $0x2d0] sm:$0xff] %vm1011_vm1, %v2756_v25  ;;  %v2364_v24 = vpop.f32.mrf.mxu0 }
 0x37e   : > { %v2457_v0 = vadd.f32 %v2456_v6, %v2364_v24 }
 0x37f   : > { %v2558_v29 = vpop.f32.mrf.mxu2 }
 0x380   : > { %v2685_v54 = vpop.f32.mrf.mxu3  ;;  %3702 = vmatmul.msk.bf16.gmra.mxu0 %vm1011_vm1, %v4516_v51  ;;  %v2594_v50 = vadd.f32 %v2556_v15, %v2457_v0 }
 0x381   : > { %v2725_v45 = vadd.f32 %v2685_v54, %v2593_v9  ;;  %v2461_v28 = vpop.f32.mrf.mxu1 }
 0x383   : > { %v2757_v30 = vadd.f32 %v4870_v35, %v2725_v45 }
 0x384   : > { %3736 = vmatmul.msk.bf16.gmra.mxu2 %vm1011_vm1, %v4150_v26  ;;  %3719 = vmatmul.msk.bf16.gmra.mxu1 %vm1011_vm1, %v4134_v55 }
 0x385   : > { %2789 = vst.msk [vmem:[%s4171_s22 + $0x2d8] sm:$0xff] %vm1011_vm1, %v2757_v30  ;;  %3752 = vmatmul.msk.bf16.gmra.mxu3 %vm1011_vm1, %v4539_v2  ;;  %v2366_v43 = vpop.f32.mrf.mxu0 }
 0x386   : > { %v2459_v17 = vadd.f32 %v2458_v8, %v2366_v43 }
 0x387   : > { %v2561_v13 = vpop.f32.mrf.mxu2 }
 0x388   : > { %v2688_v27 = vpop.f32.mrf.mxu3  ;;  %v2595_v52 = vadd.f32 %v2558_v29, %v2459_v17 }
 0x389   : > { %v2726_v60 = vadd.f32 %v2688_v27, %v2594_v50  ;;  %v2463_v51 = vpop.f32.mrf.mxu1 }
 0x38b   : > { %v2758_v18 = vadd.f32 %v4870_v35, %v2726_v60 }
 0x38d   : > { %2790 = vst.msk [vmem:[%s4171_s22 + $0x2e0] sm:$0xff] %vm1011_vm1, %v2758_v18  ;;  %v2369_v63 = vpop.f32.mrf.mxu0 }
 0x38e   : > { %v2462_v58 = vadd.f32 %v2461_v28, %v2369_v63 }
 0x38f   : > { %v2563_v55 = vpop.f32.mrf.mxu2 }
 0x390   : > { %v2690_v16 = vpop.f32.mrf.mxu3  ;;  %3703 = vmatmul.msk.bf16.gmra.mxu0 %vm1011_vm1, %v4539_v2  ;;  %v2596_v47 = vadd.f32 %v2561_v13, %v2462_v58 }
 0x391   : > { %v2727_v48 = vadd.f32 %v2690_v16, %v2595_v52  ;;  %v2902_v11 = vpop.f32.mrf.mxu1 }
 0x393   : > { %v2759_v44 = vadd.f32 %v4870_v35, %v2727_v48 }
 0x394   : > { %3737 = vmatmul.msk.bf16.gmra.mxu2 %vm1011_vm1, %v4177_v4  ;;  %3720 = vmatmul.msk.bf16.gmra.mxu1 %vm1011_vm1, %v4150_v26 }
 0x395   : > { %2791 = vst.msk [vmem:[%s4171_s22 + $0x2e8] sm:$0xff] %vm1011_vm1, %v2759_v44  ;;  %3753 = vmatmul.msk.bf16.gmra.mxu3 %vm1011_vm1, %v4562_v20  ;;  %v2371_v49 = vpop.f32.mrf.mxu0 }
 0x396   : > { %v2464_v59 = vadd.f32 %v2463_v51, %v2371_v49 }
 0x397   : > { %v2996_v1 = vpop.f32.mrf.mxu2 }
 0x398   : > { %v2693_v7 = vpop.f32.mrf.mxu3  ;;  %v2597_v19 = vadd.f32 %v2563_v55, %v2464_v59 }
 0x399   : > { %v2728_v46 = vadd.f32 %v2693_v7, %v2596_v47  ;;  %v2904_v2 = vpop.f32.mrf.mxu1 }
 0x39b   : > { %v2760_v56 = vadd.f32 %v4870_v35, %v2728_v46 }
 0x39d   : > { %2792 = vst.msk [vmem:[%s4171_s22 + $0x2f0] sm:$0xff] %vm1011_vm1, %v2760_v56  ;;  %v2810_v6 = vpop.f32.mrf.mxu0 }
 0x39e   : > { %v2903_v15 = vadd.f32 %v2902_v11, %v2810_v6 }
 0x39f   : > { %v2998_v26 = vpop.f32.mrf.mxu2 }
 0x3a0   : > { %v2695_v33 = vpop.f32.mrf.mxu3  ;;  %3704 = vmatmul.msk.bf16.gmra.mxu0 %vm1011_vm1, %v4562_v20  ;;  %v3076_v8 = vadd.f32 %v2996_v1, %v2903_v15 }
 0x3a1   : > { %v2729_v37 = vadd.f32 %v2695_v33, %v2597_v19  ;;  %v2907_v22 = vpop.f32.mrf.mxu1 }
 0x3a3   : > { %v2761_v41 = vadd.f32 %v4870_v35, %v2729_v37 }
 0x3a4   : > { %3738 = vmatmul.msk.bf16.gmra.mxu2 %vm1011_vm1, %v4199_v53  ;;  %3721 = vmatmul.msk.bf16.gmra.mxu1 %vm1011_vm1, %v4177_v4 }
 0x3a5   : > { %2793 = vst.msk [vmem:[%s4171_s22 + $0x2f8] sm:$0xff] %vm1011_vm1, %v2761_v41  ;;  %3754 = vmatmul.msk.bf16.gmra.mxu3 %vm1011_vm1, %v4585_v62  ;;  %v2812_v25 = vpop.f32.mrf.mxu0 }
 0x3a6   : > { %v2905_v54 = vadd.f32 %v2904_v2, %v2812_v25 }
 0x3a7   : > { %v3001_v23 = vpop.f32.mrf.mxu2 }
 0x3a8   : > { %v3128_v24 = vpop.f32.mrf.mxu3  ;;  %v3077_v0 = vadd.f32 %v2998_v26, %v2905_v54 }
 0x3a9   : > { %v3208_v9 = vadd.f32 %v3128_v24, %v3076_v8  ;;  %v2909_v20 = vpop.f32.mrf.mxu1 }
 0x3ab   : > { %v3240_v29 = vadd.f32 %v4870_v35, %v3208_v9 }
 0x3ad   : > { %3272 = vst.msk [vmem:[%s4171_s22 + $0x300] sm:$0xff] %vm1011_vm1, %v3240_v29  ;;  %v2815_v45 = vpop.f32.mrf.mxu0 }
 0x3ae   : > { %v2908_v50 = vadd.f32 %v2907_v22, %v2815_v45 }
 0x3af   : > { %v3003_v4 = vpop.f32.mrf.mxu2 }
 0x3b0   : > { %v3130_v28 = vpop.f32.mrf.mxu3  ;;  %3705 = vmatmul.msk.bf16.gmra.mxu0 %vm1011_vm1, %v4585_v62  ;;  %v3078_v27 = vadd.f32 %v3001_v23, %v2908_v50 }
 0x3b1   : > { %v3209_v30 = vadd.f32 %v3130_v28, %v3077_v0  ;;  %v2912_v43 = vpop.f32.mrf.mxu1 }
 0x3b3   : > { %v3241_v13 = vadd.f32 %v4870_v35, %v3209_v30 }
 0x3b4   : > { %3739 = vmatmul.msk.bf16.gmra.mxu2 %vm1011_vm1, %v4224_v31  ;;  %3722 = vmatmul.msk.bf16.gmra.mxu1 %vm1011_vm1, %v4199_v53 }
 0x3b5   : > { %3273 = vst.msk [vmem:[%s4171_s22 + $0x308] sm:$0xff] %vm1011_vm1, %v3241_v13  ;;  %3755 = vmatmul.msk.bf16.gmra.mxu3 %vm1011_vm1, %v4608_v36  ;;  %v2817_v60 = vpop.f32.mrf.mxu0 }
 0x3b6   : > { %v2910_v52 = vadd.f32 %v2909_v20, %v2817_v60 }
 0x3b7   : > { %v3006_v51 = vpop.f32.mrf.mxu2 }
 0x3b8   : > { %v3133_v18 = vpop.f32.mrf.mxu3  ;;  %v3079_v16 = vadd.f32 %v3003_v4, %v2910_v52 }
 0x3b9   : > { %v3210_v17 = vadd.f32 %v3133_v18, %v3078_v27  ;;  %v2914_v62 = vpop.f32.mrf.mxu1 }
 0x3bb   : > { %v3242_v63 = vadd.f32 %v4870_v35, %v3210_v17 }
 0x3bd   : > { %3274 = vst.msk [vmem:[%s4171_s22 + $0x310] sm:$0xff] %vm1011_vm1, %v3242_v63  ;;  %v2820_v55 = vpop.f32.mrf.mxu0 }
 0x3be   : > { %v2913_v11 = vadd.f32 %v2912_v43, %v2820_v55 }
 0x3bf   : > { %v3008_v53 = vpop.f32.mrf.mxu2 }
 0x3c0   : > { %v3135_v48 = vpop.f32.mrf.mxu3  ;;  %3706 = vmatmul.msk.bf16.gmra.mxu0 %vm1011_vm1, %v4608_v36  ;;  %v3080_v49 = vadd.f32 %v3006_v51, %v2913_v11 }
 0x3c1   : > { %v3211_v58 = vadd.f32 %v3135_v48, %v3079_v16  ;;  %v2917_v44 = vpop.f32.mrf.mxu1 }
 0x3c3   : > { %v3243_v47 = vadd.f32 %v4870_v35, %v3211_v58 }
 0x3c4   : > { %3740 = vmatmul.msk.bf16.gmra.mxu2 %vm1011_vm1, %v4246_v14  ;;  %3723 = vmatmul.msk.bf16.gmra.mxu1 %vm1011_vm1, %v4224_v31 }
 0x3c5   : > { %3275 = vst.msk [vmem:[%s4171_s22 + $0x318] sm:$0xff] %vm1011_vm1, %v3243_v47  ;;  %3756 = vmatmul.msk.bf16.gmra.mxu3 %vm1011_vm1, %v4631_v42  ;;  %v2822_v1 = vpop.f32.mrf.mxu0 }
 0x3c6   : > { %v2915_v59 = vadd.f32 %v2914_v62, %v2822_v1 }
 0x3c7   : > { %v3011_v7 = vpop.f32.mrf.mxu2 }
 0x3c8   : > { %v3138_v46 = vpop.f32.mrf.mxu3  ;;  %v3081_v19 = vadd.f32 %v3008_v53, %v2915_v59 }
 0x3c9   : > { %v3212_v2 = vadd.f32 %v3138_v46, %v3080_v49  ;;  %v2919_v36 = vpop.f32.mrf.mxu1 }
 0x3cb   : > { %v3244_v56 = vadd.f32 %v4870_v35, %v3212_v2 }
 0x3cd   : > { %3276 = vst.msk [vmem:[%s4171_s22 + $0x320] sm:$0xff] %vm1011_vm1, %v3244_v56  ;;  %v2825_v6 = vpop.f32.mrf.mxu0 }
 0x3ce   : > { %v2918_v37 = vadd.f32 %v2917_v44, %v2825_v6  ;;  %v955_v6 = vrot.slane %v4941_v61, 5  ;;  %v958_v61 = vrot.slane %v4951_v3, 5 }
 0x3cf   : > { %v3013_v31 = vpop.f32.mrf.mxu2 }
 0x3d0   : > { %v3140_v26 = vpop.f32.mrf.mxu3  ;;  %3707 = vmatmul.msk.bf16.gmra.mxu0 %vm1011_vm1, %v4631_v42  ;;  %v3082_v41 = vadd.f32 %v3011_v7, %v2918_v37 }
 0x3d1   : > { %v3213_v33 = vadd.f32 %v3140_v26, %v3081_v19  ;;  %v2922_v15 = vpop.f32.mrf.mxu1 }
 0x3d3   : > { %v3245_v22 = vadd.f32 %v4870_v35, %v3213_v33  ;;  %v957_v33 = vrot.slane %v955_v6, 4 }
 0x3d4   : > { %3741 = vmatmul.msk.bf16.gmra.mxu2 %vm1011_vm1, %v4271_v21  ;;  %3724 = vmatmul.msk.bf16.gmra.mxu1 %vm1011_vm1, %v4246_v14 }
 0x3d5   : > { %3277 = vst.msk [vmem:[%s4171_s22 + $0x328] sm:$0xff] %vm1011_vm1, %v3245_v22  ;;  %3757 = vmatmul.msk.bf16.gmra.mxu3 %vm1011_vm1, %v4654_v32  ;;  %v2827_v8 = vpop.f32.mrf.mxu0  ;;  %v959_v22 = vsel %vm4303_vm7, %v957_v33, %v958_v61 }
 0x3d6   : > { %v2920_v20 = vadd.f32 %v2919_v36, %v2827_v8 }
 0x3d7   : > { %v3016_v25 = vpop.f32.mrf.mxu2 }
 0x3d8   : > { %v3143_v23 = vpop.f32.mrf.mxu3  ;;  %v3083_v54 = vadd.f32 %v3013_v31, %v2920_v20 }
 0x3d9   : > { %v3214_v24 = vadd.f32 %v3143_v23, %v3082_v41  ;;  %v2924_v42 = vpop.f32.mrf.mxu1  ;;  %v5204_v41 = vld [vmem:[%s5281_s3] ss:$0 sm:$0xff] }
 0x3db   : > { %v3246_v9 = vadd.f32 %v4870_v35, %v3214_v24 }
 0x3dd   : > { %3278 = vst.msk [vmem:[%s4171_s22 + $0x330] sm:$0xff] %vm1011_vm1, %v3246_v9  ;;  %v2830_v29 = vpop.f32.mrf.mxu0 }
 0x3de   : > { %v2923_v4 = vadd.f32 %v2922_v15, %v2830_v29 }
 0x3df   : > { %v3018_v14 = vpop.f32.mrf.mxu2 }
 0x3e0   : > { %v3145_v45 = vpop.f32.mrf.mxu3  ;;  %3708 = vmatmul.msk.bf16.gmra.mxu0 %vm1011_vm1, %v4654_v32  ;;  %v3084_v50 = vadd.f32 %v3016_v25, %v2923_v4  ;;  %v3111_v25 = vunpack.c.l.b16 %v959_v22 }
 0x3e1   : > { %v3215_v0 = vadd.f32 %v3145_v45, %v3083_v54  ;;  %v2927_v28 = vpop.f32.mrf.mxu1 }
 0x3e3   : > { %v3247_v30 = vadd.f32 %v4870_v35, %v3215_v0 }
 0x3e4   : > { %3742 = vmatmul.msk.bf16.gmra.mxu2 %vm1011_vm1, %v4301_v10  ;;  %3725 = vmatmul.msk.bf16.gmra.mxu1 %vm1011_vm1, %v4271_v21 }
 0x3e5   : > { %3279 = vst.msk [vmem:[%s4171_s22 + $0x338] sm:$0xff] %vm1011_vm1, %v3247_v30  ;;  %3758 = vmatmul.msk.bf16.gmra.mxu3 %vm1011_vm1, %v4677_v40  ;;  %v2832_v43 = vpop.f32.mrf.mxu0 }
 0x3e6   : > { %v2925_v18 = vadd.f32 %v2924_v42, %v2832_v43 }
 0x3e7   : > { %v3021_v13 = vpop.f32.mrf.mxu2 }
 0x3e8   : > { %v3148_v27 = vpop.f32.mrf.mxu3  ;;  %v3085_v62 = vadd.f32 %v3018_v14, %v2925_v18 }
 0x3e9   : > { %v3216_v60 = vadd.f32 %v3148_v27, %v3084_v50  ;;  %v2929_v32 = vpop.f32.mrf.mxu1 }
 0x3eb   : > { %v3248_v51 = vadd.f32 %v4870_v35, %v3216_v60 }
 0x3ed   : > { %3280 = vst.msk [vmem:[%s4171_s22 + $0x340] sm:$0xff] %vm1011_vm1, %v3248_v51  ;;  %v2835_v17 = vpop.f32.mrf.mxu0 }
 0x3ee   : > { %v2928_v55 = vadd.f32 %v2927_v28, %v2835_v17 }
 0x3ef   : > { %v3023_v21 = vpop.f32.mrf.mxu2 }
 0x3f0   : > { %v3150_v63 = vpop.f32.mrf.mxu3  ;;  %3709 = vmatmul.msk.bf16.gmra.mxu0 %vm1011_vm1, %v4677_v40  ;;  %v3086_v48 = vadd.f32 %v3021_v13, %v2928_v55 }
 0x3f1   : > { %v3217_v52 = vadd.f32 %v3150_v63, %v3085_v62  ;;  %v2932_v16 = vpop.f32.mrf.mxu1 }
 0x3f3   : > { %v3249_v53 = vadd.f32 %v4870_v35, %v3217_v52 }
 0x3f4   : > { %3743 = vmatmul.msk.bf16.gmra.mxu2 %vm1011_vm1, %v4350_v5  ;;  %3726 = vmatmul.msk.bf16.gmra.mxu1 %vm1011_vm1, %v4301_v10 }
 0x3f5   : > { %3281 = vst.msk [vmem:[%s4171_s22 + $0x348] sm:$0xff] %vm1011_vm1, %v3249_v53  ;;  %3759 = vmatmul.msk.bf16.gmra.mxu3 %vm1011_vm1, %v4701_v34  ;;  %v2837_v58 = vpop.f32.mrf.mxu0 }
 0x3f6   : > { %v2930_v1 = vadd.f32 %v2929_v32, %v2837_v58 }
 0x3f7   : > { %v3026_v11 = vpop.f32.mrf.mxu2 }
 0x3f8   : > { %v3153_v44 = vpop.f32.mrf.mxu3  ;;  %v3087_v46 = vadd.f32 %v3023_v21, %v2930_v1 }
 0x3f9   : > { %v3218_v47 = vadd.f32 %v3153_v44, %v3086_v48  ;;  %v2934_v40 = vpop.f32.mrf.mxu1 }
 0x3fb   : > { %v3250_v49 = vadd.f32 %v4870_v35, %v3218_v47 }
 0x3fd   : > { %3282 = vst.msk [vmem:[%s4171_s22 + $0x350] sm:$0xff] %vm1011_vm1, %v3250_v49  ;;  %v2840_v7 = vpop.f32.mrf.mxu0 }
 0x3fe   : > { %v2933_v56 = vadd.f32 %v2932_v16, %v2840_v7 }
 0x3ff   : > { %v3028_v10 = vpop.f32.mrf.mxu2 }
 0x400   : > { %v3155_v2 = vpop.f32.mrf.mxu3  ;;  %3710 = vmatmul.msk.bf16.gmra.mxu0 %vm1011_vm1, %v4701_v34  ;;  %v3088_v31 = vadd.f32 %v3026_v11, %v2933_v56  ;;  %v3418_v34 = vrot.slane %v4938_v38, 9 }
 0x401   : > { %v3219_v36 = vadd.f32 %v3155_v2, %v3087_v46  ;;  %v2937_v59 = vpop.f32.mrf.mxu1 }
 0x403   : > { %v3251_v19 = vadd.f32 %v4870_v35, %v3219_v36 }
 0x404   : > { %3744 = vmatmul.msk.bf16.gmra.mxu2 %vm1011_vm1, %v4973_v39  ;;  %3727 = vmatmul.msk.bf16.gmra.mxu1 %vm1011_vm1, %v4350_v5  ;;  %v956_v5 = vsel %vm4303_vm7, %v3418_v34, %v955_v6 }
 0x405   : > { %3283 = vst.msk [vmem:[%s4171_s22 + $0x358] sm:$0xff] %vm1011_vm1, %v3251_v19  ;;  %3760 = vmatmul.msk.bf16.gmra.mxu3 %vm1011_vm1, %v4739_v12  ;;  %v2842_v26 = vpop.f32.mrf.mxu0  ;;  %v3110_v3 = vunpack.c.l.b16 %v956_v5 }
 0x406   : > { %v2935_v8 = vadd.f32 %v2934_v40, %v2842_v26 }
 0x407   : > { %v3031_v35 = vpop.f32.mrf.mxu2  ;;  %v3112_v29 = vpack.c.b16 %v3111_v25, %v3110_v3 }
 0x408   : > { %v3158_v37 = vpop.f32.mrf.mxu3  ;;  %v3089_v24 = vadd.f32 %v3028_v10, %v2935_v8 }
 0x409   : > { %v3220_v15 = vadd.f32 %v3158_v37, %v3088_v31  ;;  %v2939_v39 = vpop.f32.mrf.mxu1 }
 0x40b   : > { %v3252_v38 = vadd.f32 %v5204_v41, %v3220_v15 }
 0x40d   : > { %3284 = vst.msk [vmem:[%s4171_s22 + $0x360] sm:$0xff] %vm1011_vm1, %v3252_v38  ;;  %v2845_v23 = vpop.f32.mrf.mxu0 }
 0x40e   : > { %v2938_v57 = vadd.f32 %v2937_v59, %v2845_v23 }
 0x40f   : > { %v3033_v42 = vpop.f32.mrf.mxu2 }
 0x410   : > { %v3160_v9 = vpop.f32.mrf.mxu3  ;;  %3711 = vmatmul.msk.bf16.gmra.mxu0 %vm1011_vm1, %v4739_v12  ;;  %v3090_v45 = vadd.f32 %v3031_v35, %v2938_v57 }
 0x411   : > { %v3221_v20 = vadd.f32 %v3160_v9, %v3089_v24  ;;  %v2942_v54 = vpop.f32.mrf.mxu1 }
 0x413   : > { %v3253_v14 = vadd.f32 %v5204_v41, %v3221_v20 }
 0x415   : > { %3285 = vst.msk [vmem:[%s4171_s22 + $0x368] sm:$0xff] %vm1011_vm1, %v3253_v14  ;;  %3761 = vmatmul.msk.bf16.gmra.mxu3 %vm1011_vm1, %v3112_v29  ;;  %v2847_v0 = vpop.f32.mrf.mxu0 }
 0x416   : > { %v2940_v13 = vadd.f32 %v2939_v39, %v2847_v0 }
 0x417   : > { %v3036_v4 = vpop.f32.mrf.mxu2 }
 0x418   : > { %v3163_v28 = vpop.f32.mrf.mxu3  ;;  %v3091_v27 = vadd.f32 %v3033_v42, %v2940_v13 }
 0x419   : > { %v3222_v30 = vadd.f32 %v3163_v28, %v3090_v45  ;;  %v2944_v50 = vpop.f32.mrf.mxu1 }
 0x41b   : > { %v3254_v43 = vadd.f32 %v5204_v41, %v3222_v30 }
 0x41d   : > { %3286 = vst.msk [vmem:[%s4171_s22 + $0x370] sm:$0xff] %vm1011_vm1, %v3254_v43  ;;  %v2850_v12 = vpop.f32.mrf.mxu0 }
 0x41e   : > { %v2943_v18 = vadd.f32 %v2942_v54, %v2850_v12 }
 0x41f   : > { %v3038_v60 = vpop.f32.mrf.mxu2 }
 0x420   : > { %v3165_v32 = vpop.f32.mrf.mxu3  ;;  %v3092_v21 = vadd.f32 %v3036_v4, %v2943_v18 }
 0x421   : > { %v3223_v51 = vadd.f32 %v3165_v32, %v3091_v27  ;;  %v2947_v17 = vpop.f32.mrf.mxu1 }
 0x423   : > { %v3255_v62 = vadd.f32 %v5204_v41, %v3223_v51 }
 0x425   : > { %3287 = vst.msk [vmem:[%s4171_s22 + $0x378] sm:$0xff] %vm1011_vm1, %v3255_v62  ;;  %v2852_v63 = vpop.f32.mrf.mxu0 }
 0x426   : > { %v2945_v58 = vadd.f32 %v2944_v50, %v2852_v63 }
 0x427   : > { %v3041_v52 = vpop.f32.mrf.mxu2 }
 0x428   : > { %v3168_v55 = vpop.f32.mrf.mxu3  ;;  %v3093_v44 = vadd.f32 %v3038_v60, %v2945_v58 }
 0x429   : > { %v3224_v16 = vadd.f32 %v3168_v55, %v3092_v21  ;;  %v2949_v53 = vpop.f32.mrf.mxu1 }
 0x42b   : > { %v3256_v48 = vadd.f32 %v5204_v41, %v3224_v16 }
 0x42d   : > { %3288 = vst.msk [vmem:[%s4171_s22 + $0x380] sm:$0xff] %vm1011_vm1, %v3256_v48  ;;  %v2855_v11 = vpop.f32.mrf.mxu0 }
 0x42e   : > { %v2948_v1 = vadd.f32 %v2947_v17, %v2855_v11 }
 0x42f   : > { %v3043_v47 = vpop.f32.mrf.mxu2 }
 0x430   : > { %v3170_v40 = vpop.f32.mrf.mxu3  ;;  %v3094_v10 = vadd.f32 %v3041_v52, %v2948_v1 }
 0x431   : > { %v3225_v49 = vadd.f32 %v3170_v40, %v3093_v44  ;;  %v2952_v7 = vpop.f32.mrf.mxu1 }
 0x433   : > { %v3257_v46 = vadd.f32 %v5204_v41, %v3225_v49 }
 0x435   : > { %3289 = vst.msk [vmem:[%s4171_s22 + $0x388] sm:$0xff] %vm1011_vm1, %v3257_v46  ;;  %v2857_v2 = vpop.f32.mrf.mxu0 }
 0x436   : > { %v2950_v31 = vadd.f32 %v2949_v53, %v2857_v2 }
 0x437   : > { %v3046_v36 = vpop.f32.mrf.mxu2 }
 0x438   : > { %v3173_v56 = vpop.f32.mrf.mxu3  ;;  %v3095_v34 = vadd.f32 %v3043_v47, %v2950_v31 }
 0x439   : > { %v3226_v59 = vadd.f32 %v3173_v56, %v3094_v10  ;;  %v2954_v6 = vpop.f32.mrf.mxu1 }
 0x43b   : > { %v3258_v19 = vadd.f32 %v5204_v41, %v3226_v59 }
 0x43d   : > { %3290 = vst.msk [vmem:[%s4171_s22 + $0x390] sm:$0xff] %vm1011_vm1, %v3258_v19  ;;  %v2860_v26 = vpop.f32.mrf.mxu0 }
 0x43e   : > { %v2953_v37 = vadd.f32 %v2952_v7, %v2860_v26 }
 0x43f   : > { %v3048_v33 = vpop.f32.mrf.mxu2 }
 0x440   : > { %v3175_v61 = vpop.f32.mrf.mxu3  ;;  %v3096_v5 = vadd.f32 %v3046_v36, %v2953_v37 }
 0x441   : > { %v3227_v35 = vadd.f32 %v3175_v61, %v3095_v34  ;;  %v2957_v15 = vpop.f32.mrf.mxu1 }
 0x443   : > { %v3259_v39 = vadd.f32 %v5204_v41, %v3227_v35 }
 0x445   : > { %3291 = vst.msk [vmem:[%s4171_s22 + $0x398] sm:$0xff] %vm1011_vm1, %v3259_v39  ;;  %v2862_v22 = vpop.f32.mrf.mxu0 }
 0x446   : > { %v2955_v24 = vadd.f32 %v2954_v6, %v2862_v22 }
 0x447   : > { %v3051_v38 = vpop.f32.mrf.mxu2 }
 0x448   : > { %v3178_v8 = vpop.f32.mrf.mxu3  ;;  %v3097_v9 = vadd.f32 %v3048_v33, %v2955_v24 }
 0x449   : > { %v3228_v3 = vadd.f32 %v3178_v8, %v3096_v5  ;;  %v2959_v25 = vpop.f32.mrf.mxu1 }
 0x44b   : > { %v3260_v23 = vadd.f32 %v5204_v41, %v3228_v3 }
 0x44d   : > { %3292 = vst.msk [vmem:[%s4171_s22 + $0x3a0] sm:$0xff] %vm1011_vm1, %v3260_v23  ;;  %v2865_v42 = vpop.f32.mrf.mxu0 }
 0x44e   : > { %v2958_v54 = vadd.f32 %v2957_v15, %v2865_v42 }
 0x44f   : > { %v3053_v20 = vpop.f32.mrf.mxu2 }
 0x450   : > { %v3180_v57 = vpop.f32.mrf.mxu3  ;;  %v3098_v0 = vadd.f32 %v3051_v38, %v2958_v54 }
 0x451   : > { %v3229_v29 = vadd.f32 %v3180_v57, %v3097_v9  ;;  %v2962_v45 = vpop.f32.mrf.mxu1 }
 0x453   : > { %v3261_v14 = vadd.f32 %v5204_v41, %v3229_v29 }
 0x455   : > { %3293 = vst.msk [vmem:[%s4171_s22 + $0x3a8] sm:$0xff] %vm1011_vm1, %v3261_v14  ;;  %v2867_v4 = vpop.f32.mrf.mxu0 }
 0x456   : > { %v2960_v13 = vadd.f32 %v2959_v25, %v2867_v4 }
 0x457   : > { %v3056_v30 = vpop.f32.mrf.mxu2 }
 0x458   : > { %v3183_v28 = vpop.f32.mrf.mxu3  ;;  %v3099_v60 = vadd.f32 %v3053_v20, %v2960_v13 }
 0x459   : > { %v3230_v50 = vadd.f32 %v3183_v28, %v3098_v0  ;;  %v2964_v27 = vpop.f32.mrf.mxu1 }
 0x45b   : > { %v3262_v43 = vadd.f32 %v5204_v41, %v3230_v50 }
 0x45d   : > { %3294 = vst.msk [vmem:[%s4171_s22 + $0x3b0] sm:$0xff] %vm1011_vm1, %v3262_v43  ;;  %v2870_v12 = vpop.f32.mrf.mxu0 }
 0x45e   : > { %v2963_v18 = vadd.f32 %v2962_v45, %v2870_v12 }
 0x45f   : > { %v3058_v17 = vpop.f32.mrf.mxu2 }
 0x460   : > { %v3185_v32 = vpop.f32.mrf.mxu3  ;;  %v3100_v21 = vadd.f32 %v3056_v30, %v2963_v18 }
 0x461   : > { %v3231_v51 = vadd.f32 %v3185_v32, %v3099_v60  ;;  %v2967_v55 = vpop.f32.mrf.mxu1 }
 0x463   : > { %v3263_v62 = vadd.f32 %v5204_v41, %v3231_v51 }
 0x465   : > { %3295 = vst.msk [vmem:[%s4171_s22 + $0x3b8] sm:$0xff] %vm1011_vm1, %v3263_v62  ;;  %v2872_v63 = vpop.f32.mrf.mxu0 }
 0x466   : > { %v2965_v48 = vadd.f32 %v2964_v27, %v2872_v63 }
 0x467   : > { %v3061_v58 = vpop.f32.mrf.mxu2 }
 0x468   : > { %v3188_v52 = vpop.f32.mrf.mxu3  ;;  %v3101_v44 = vadd.f32 %v3058_v17, %v2965_v48 }
 0x469   : > { %v3232_v16 = vadd.f32 %v3188_v52, %v3100_v21  ;;  %v2969_v1 = vpop.f32.mrf.mxu1 }
 0x46b   : > { %v3264_v53 = vadd.f32 %v5204_v41, %v3232_v16 }
 0x46d   : > { %3296 = vst.msk [vmem:[%s4171_s22 + $0x3c0] sm:$0xff] %vm1011_vm1, %v3264_v53  ;;  %v2875_v11 = vpop.f32.mrf.mxu0 }
 0x46e   : > { %v2968_v49 = vadd.f32 %v2967_v55, %v2875_v11 }
 0x46f   : > { %v3063_v10 = vpop.f32.mrf.mxu2 }
 0x470   : > { %v3190_v47 = vpop.f32.mrf.mxu3  ;;  %v3102_v46 = vadd.f32 %v3061_v58, %v2968_v49 }
 0x471   : > { %v3233_v40 = vadd.f32 %v3190_v47, %v3101_v44  ;;  %v2972_v19 = vpop.f32.mrf.mxu1 }
 0x473   : > { %v3265_v7 = vadd.f32 %v5204_v41, %v3233_v40 }
 0x475   : > { %3297 = vst.msk [vmem:[%s4171_s22 + $0x3c8] sm:$0xff] %vm1011_vm1, %v3265_v7  ;;  %v2877_v2 = vpop.f32.mrf.mxu0 }
 0x476   : > { %v2970_v6 = vadd.f32 %v2969_v1, %v2877_v2 }
 0x477   : > { %v3066_v34 = vpop.f32.mrf.mxu2 }
 0x478   : > { %v3193_v36 = vpop.f32.mrf.mxu3  ;;  %v3103_v26 = vadd.f32 %v3063_v10, %v2970_v6 }
 0x479   : > { %v3234_v56 = vadd.f32 %v3193_v36, %v3102_v46  ;;  %v2974_v39 = vpop.f32.mrf.mxu1 }
 0x47b   : > { %v3266_v59 = vadd.f32 %v5204_v41, %v3234_v56 }
 0x47d   : > { %3298 = vst.msk [vmem:[%s4171_s22 + $0x3d0] sm:$0xff] %vm1011_vm1, %v3266_v59  ;;  %v2880_v31 = vpop.f32.mrf.mxu0 }
 0x47e   : > { %v2973_v35 = vadd.f32 %v2972_v19, %v2880_v31 }
 0x47f   : > { %v3068_v8 = vpop.f32.mrf.mxu2 }
 0x480   : > { %v3195_v33 = vpop.f32.mrf.mxu3  ;;  %v3104_v15 = vadd.f32 %v3066_v34, %v2973_v35 }
 0x481   : > { %v3235_v61 = vadd.f32 %v3195_v33, %v3103_v26  ;;  %v2977_v42 = vpop.f32.mrf.mxu1 }
 0x483   : > { %v3267_v37 = vadd.f32 %v5204_v41, %v3235_v61 }
 0x485   : > { %3299 = vst.msk [vmem:[%s4171_s22 + $0x3d8] sm:$0xff] %vm1011_vm1, %v3267_v37  ;;  %v2882_v5 = vpop.f32.mrf.mxu0 }
 0x486   : > { %v2975_v25 = vadd.f32 %v2974_v39, %v2882_v5 }
 0x487   : > { %v3071_v54 = vpop.f32.mrf.mxu2 }
 0x488   : > { %v3198_v22 = vpop.f32.mrf.mxu3  ;;  %v3105_v24 = vadd.f32 %v3068_v8, %v2975_v25 }
 0x489   : > { %v3236_v38 = vadd.f32 %v3198_v22, %v3104_v15  ;;  %v2979_v28 = vpop.f32.mrf.mxu1 }
 0x48b   : > { %v3268_v3 = vadd.f32 %v5204_v41, %v3236_v38 }
 0x48d   : > { %3300 = vst.msk [vmem:[%s4171_s22 + $0x3e0] sm:$0xff] %vm1011_vm1, %v3268_v3  ;;  %v2885_v23 = vpop.f32.mrf.mxu0 }
 0x48e   : > { %v2978_v57 = vadd.f32 %v2977_v42, %v2885_v23 }
 0x48f   : > { %v3073_v43 = vpop.f32.mrf.mxu2 }
 0x490   : > { %v3200_v9 = vpop.f32.mrf.mxu3  ;;  %v3106_v14 = vadd.f32 %v3071_v54, %v2978_v57 }
 0x491   : > { %v3237_v20 = vadd.f32 %v3200_v9, %v3105_v24 }
 0x493   : > { %v3269_v29 = vadd.f32 %v5204_v41, %v3237_v20 }
 0x495   : > { %3301 = vst.msk [vmem:[%s4171_s22 + $0x3e8] sm:$0xff] %vm1011_vm1, %v3269_v29  ;;  %v2887_v0 = vpop.f32.mrf.mxu0 }
 0x496   : > { %v2980_v50 = vadd.f32 %v2979_v28, %v2887_v0 }
 0x498   : > { %v3203_v45 = vpop.f32.mrf.mxu3  ;;  %v3107_v13 = vadd.f32 %v3073_v43, %v2980_v50 }
 0x499   : > { %v3238_v4 = vadd.f32 %v3203_v45, %v3106_v14 }
 0x49b   : > { %v3270_v30 = vadd.f32 %v5204_v41, %v3238_v4 }
 0x49d   : > { %3302 = vst.msk [vmem:[%s4171_s22 + $0x3f0] sm:$0xff] %vm1011_vm1, %v3270_v30 }
 0x4a0   : > { %v3205_v12 = vpop.f32.mrf.mxu3 }
 0x4a1   : > { %v3239_v27 = vadd.f32 %v3205_v12, %v3107_v13 }
 0x4a3   : > { %v3271_v60 = vadd.f32 %v5204_v41, %v3239_v27 }
 0x4a5   : > { %3303 = vst.msk [vmem:[%s4171_s22 + $0x3f8] sm:$0xff] %vm1011_vm1, %v3271_v60 }
 0x4a6 PF: > { %s14_s17 = sadd.s32 1, %s3902_s17   ;;  %s5287_s15 = smov %s3898_s16 }
 0x4a7   : > { %p11_p5 = scmp.ge.s32.totalorder %s14_s17, 4   ;;  %s5288_s16 = smov %s5290_s18 }
 0x4a9   :  { %13 = sbr.rel (!%p11_p5) target bundleno = 2 (0x2), region = 84 }

</bundles_post_ra>
